<compile_context>
chip_gen: v7x
topology: tpu7x:2x2x1
jax: 0.10.0
libtpu: 0.0.40
codegen_flags: <defaults>
</compile_context>

<pallas_src>
import functools

import jax
import jax.numpy as jnp
from jax.experimental import pallas as pl
from jax.experimental.pallas import tpu as pltpu


# ------------------- Kernel A: fused l1 + l2 (200 -> 100 -> 1) ----------------

def _mlp12_kernel(x_ref, w1_ref, b1_ref, w2_ref, b2_ref, o_ref):
    h1 = jnp.dot(x_ref[...], w1_ref[...], preferred_element_type=jnp.float32)
    h1 = jnp.maximum(h1 + b1_ref[...], 0.0)
    h2 = jnp.dot(h1, w2_ref[...], preferred_element_type=jnp.float32)
    # b2 is a single scalar kept in SMEM (no padded VMEM tile for it).
    o_ref[...] = jnp.maximum(h2 + b2_ref[0], 0.0)


def mlp12(xf, w1, b1, w2, b2, *, row_block=1024):
    """relu(relu(xf @ w1 + b1) @ w2 + b2).  xf: (M, 200) -> (M, 1)."""
    M, L = xf.shape
    D1 = w1.shape[1]
    if M <= row_block:
        tm, Mp = M, M                       # single tile covers everything
    else:
        tm = row_block                      # multiple of 8; ~0.8 MiB/block
        Mp = ((M + tm - 1) // tm) * tm
    if Mp != M:
        xf = jnp.pad(xf, ((0, Mp - M), (0, 0)))
    out = pl.pallas_call(
        _mlp12_kernel,
        out_shape=jax.ShapeDtypeStruct((Mp, 1), jnp.float32),
        grid=(Mp // tm,),
        in_specs=[
            pl.BlockSpec((tm, L), lambda i: (i, 0)),
            pl.BlockSpec((L, D1), lambda i: (0, 0)),
            pl.BlockSpec((1, D1), lambda i: (0, 0)),
            pl.BlockSpec((D1, 1), lambda i: (0, 0)),
            pl.BlockSpec(memory_space=pltpu.MemorySpace.SMEM),   # b2 scalar
        ],
        out_specs=pl.BlockSpec((tm, 1), lambda i: (i, 0)),
        compiler_params=pltpu.CompilerParams(
            dimension_semantics=("parallel",),        # row tiles shard on TCs
            vmem_limit_bytes=32 * 1024 * 1024),       # safe on v5e/v6e/v7x
    )(xf, w1, b1.reshape(1, D1), w2, b2)
    return out if Mp == M else out[:M]


# ------- Kernel B: fused l3 + l4 + bidirectional LSTM + linear head -----------

def _lstm_head_kernel(x_ref, w3_ref, b3_ref, w4_ref, b4_ref,
                      wih_ref, bih_ref, whh_f_ref, whh_b_ref,
                      wm_ref, bm_ref, o_ref):
    N, T, C = x_ref.shape                    # (batch, time, 19)
    H = whh_f_ref.shape[0]                   # 16
    G = 4 * H                                # 64 gates per direction

    x_all = x_ref[...]                       # whole (N, T, 19) -- tiny
    w3 = w3_ref[...]; b3 = b3_ref[...]
    w4 = w4_ref[...]; b4 = b4_ref[...]
    wih = wih_ref[...]; bih = bih_ref[...]   # (2H, 2G) / (1, 2G) fwd||bwd

    # Phase 1: per-timestep MLP (l3, l4) + lane-dense (N, 128) input projection
    # for both LSTM directions; biases folded in once, outside the recurrence.
    gx = []
    for t in range(T):
        xt = x_all[:, t, :]                                          # (N, 19)
        h3 = jnp.maximum(
            jnp.dot(xt, w3, preferred_element_type=jnp.float32) + b3, 0.0)
        h4 = jnp.maximum(
            jnp.dot(h3, w4, preferred_element_type=jnp.float32) + b4, 0.0)
        gx.append(jnp.dot(h4, wih, preferred_element_type=jnp.float32) + bih)

    def cell(gates_x, h, c, whh):
        gates = gates_x + jnp.dot(h, whh, preferred_element_type=jnp.float32)
        i_g = jax.nn.sigmoid(gates[:, 0:H])
        f_g = jax.nn.sigmoid(gates[:, H:2 * H])
        g_g = jnp.tanh(gates[:, 2 * H:3 * H])
        o_g = jax.nn.sigmoid(gates[:, 3 * H:4 * H])
        c_new = f_g * c + i_g * g_g
        h_new = o_g * jnp.tanh(c_new)
        return h_new, c_new

    zero = jnp.zeros((N, H), jnp.float32)
    whh_f = whh_f_ref[...]; whh_b = whh_b_ref[...]

    # Phase 2: forward recurrence (fully unrolled -- T is a static constant).
    h, c = zero, zero
    h_fwd = []
    for t in range(T):
        h, c = cell(gx[t][:, 0:G], h, c, whh_f)
        h_fwd.append(h)

    # Phase 3: backward recurrence fused with the (2H -> 2) head.
    # NOTE: fwd/bwd could be split over a 2-wide "parallel" grid on v7x's two
    # TensorCores; kept in one body here (neutral on v5e/v6e, tiny T here).
    wm = wm_ref[...]
    wm_f = wm[0:H, :]; wm_b = wm[H:2 * H, :]
    bm = bm_ref[...]
    h, c = zero, zero
    for s in range(T):
        t = T - 1 - s
        h, c = cell(gx[t][:, G:2 * G], h, c, whh_b)
        o_ref[t] = (jnp.dot(h_fwd[t], wm_f, preferred_element_type=jnp.float32)
                    + jnp.dot(h, wm_b, preferred_element_type=jnp.float32)
                    + bm)


def lstm_head(x2, p):
    """x2: (N, T, 19) -> (T, N, 2) head logits."""
    N, T, C = x2.shape
    H = p['whh_f'].shape[0]
    G = 4 * H

    def full(shape):
        return pl.BlockSpec(shape, lambda i, _r=len(shape): (0,) * _r)

    return pl.pallas_call(
        _lstm_head_kernel,
        out_shape=jax.ShapeDtypeStruct((T, N, 2), jnp.float32),
        grid=(1,),
        in_specs=[
            full((N, T, C)),
            full((C, H)), full((1, H)),
            full((H, 2 * H)), full((1, 2 * H)),
            full((2 * H, 2 * G)), full((1, 2 * G)),
            full((H, G)), full((H, G)),
            full((2 * H, 2)), full((1, 2)),
        ],
        out_specs=full((T, N, 2)),
        compiler_params=pltpu.CompilerParams(
            dimension_semantics=("arbitrary",)),
    )(x2,
      p['w3'], p['b3'].reshape(1, H),
      p['w4'], p['b4'].reshape(1, 2 * H),
      p['wih_cat'], p['b_ih_cat'].reshape(1, 2 * G),
      p['whh_f'], p['whh_b'],
      p['wm'], p['bm'].reshape(1, 2))


# -------------------------------- Parameters ----------------------------------

def init_params(seed=0):
    H = 16  # nhidden_sz
    key = jax.random.PRNGKey(seed)
    ks = iter(jax.random.split(key, 32))

    def u(shape, bound):
        return jax.random.uniform(next(ks), shape, jnp.float32, -bound, bound)

    def lin(din, dout):
        bnd = 1.0 / float(din) ** 0.5
        return u((din, dout), bnd), u((dout,), bnd)

    p = {}
    p['w1'], p['b1'] = lin(200, 100)
    p['w2'], p['b2'] = lin(100, 1)
    p['w3'], p['b3'] = lin(19, 16)
    p['w4'], p['b4'] = lin(16, 32)

    bnd = 1.0 / float(H) ** 0.5
    wih_f = u((32, 4 * H), bnd)
    wih_b = u((32, 4 * H), bnd)
    p['whh_f'] = u((H, 4 * H), bnd)
    p['whh_b'] = u((H, 4 * H), bnd)
    b_f = u((4 * H,), bnd) + u((4 * H,), bnd)   # b_ih + b_hh folded
    b_b = u((4 * H,), bnd) + u((4 * H,), bnd)
    # Pre-concatenate fwd||bwd so the in-kernel input projection is 128 lanes.
    p['wih_cat'] = jnp.concatenate([wih_f, wih_b], axis=1)   # (32, 128)
    p['b_ih_cat'] = jnp.concatenate([b_f, b_b])              # (128,)

    p['wm'], p['bm'] = lin(2 * H, 2)
    return p


# -------------------------------- Forward pass ---------------------------------

@jax.jit
def mlp_lstm_forward(x, params):
    B, Nsz, T, C, L = x.shape
    N = B * Nsz
    h2 = mlp12(x.reshape(-1, L), params['w1'], params['b1'],
               params['w2'], params['b2'])               # (B*Nsz*T*C, 1)
    x2 = h2.reshape(N, T, C)                             # free reshape, no transpose
    out_tn = lstm_head(x2, params)                       # (T, N, 2)
    proba = out_tn.transpose(1, 0, 2).reshape(B, Nsz, T, 2)
    # h_c and sat are always None in the reference module.
    return proba, None, None


# ------------------------- Pure-JAX reference (for checking) -------------------

_dot = functools.partial(jnp.dot, precision=jax.lax.Precision.HIGHEST)


def reference_forward(x, p):
    B, Nsz, T, C, L = x.shape
    H = 16
    relu = jax.nn.relu
    h = x.reshape(-1, L)
    h = relu(_dot(h, p['w1']) + p['b1'])
    h = relu(_dot(h, p['w2']) + p['b2'])
    h = h.reshape(-1, C)
    h = relu(_dot(h, p['w3']) + p['b3'])
    h = relu(_dot(h, p['w4']) + p['b4'])
    N = B * Nsz
    xs = h.reshape(N, T, 2 * H)
    wih, bih = p['wih_cat'], p['b_ih_cat']

    def cell(xt, h_, c_, wih_d, whh_d, b_d):
        g = _dot(xt, wih_d) + _dot(h_, whh_d) + b_d
        i = jax.nn.sigmoid(g[:, :H]); f = jax.nn.sigmoid(g[:, H:2 * H])
        gg = jnp.tanh(g[:, 2 * H:3 * H]); o = jax.nn.sigmoid(g[:, 3 * H:])
        c_ = f * c_ + i * gg
        return o * jnp.tanh(c_), c_

    hf = []
    h_, c_ = jnp.zeros((N, H)), jnp.zeros((N, H))
    for t in range(T):
        h_, c_ = cell(xs[:, t, :], h_, c_, wih[:, :4 * H], p['whh_f'], bih[:4 * H])
        hf.append(h_)
    hb = [None] * T
    h_, c_ = jnp.zeros((N, H)), jnp.zeros((N, H))
    for t in range(T - 1, -1, -1):
        h_, c_ = cell(xs[:, t, :], h_, c_, wih[:, 4 * H:], p['whh_b'], bih[4 * H:])
        hb[t] = h_
    hm = jnp.stack([jnp.concatenate([hf[t], hb[t]], axis=1) for t in range(T)], axis=1)
    out = _dot(hm.reshape(N * T, 2 * H), p['wm']) + p['bm']
    return out.reshape(B, Nsz, T, 2)


# ------------------------------------- main -------------------------------------

if __name__ == "__main__":
    B, Nsz, T, C, L = 2, 2, 8, 19, 200     # C=19 and L=200 fixed by l3 / l1
    x = jax.random.normal(jax.random.PRNGKey(0), (B, Nsz, T, C, L), jnp.float32)
    params = init_params(seed=0)

    proba, h_c, sat = mlp_lstm_forward(x, params)
    proba = jax.block_until_ready(proba)

    assert proba.shape == (B, Nsz, T, 2)
    assert h_c is None and sat is None
    assert bool(jnp.all(jnp.isfinite(proba)))

    ref = reference_forward(x, params)
    max_err = float(jnp.max(jnp.abs(proba - ref)))
    assert bool(jnp.allclose(proba, ref, atol=2e-2, rtol=2e-2)), f"max|diff|={max_err}"

    print("KERNEL_OK")
</pallas_src>

<mosaic_0001>
module attributes {stable_mosaic.version = 11 : i64} {
  func.func @_mlp12_kernel(%arg0: i32, %arg1: memref<608x200xf32, #tpu.memory_space<vmem>>, %arg2: memref<200x100xf32, #tpu.memory_space<vmem>>, %arg3: memref<1x100xf32, #tpu.memory_space<vmem>>, %arg4: memref<100x1xf32, #tpu.memory_space<vmem>>, %arg5: memref<1xf32, #tpu.memory_space<smem>>, %arg6: memref<608x1xf32, #tpu.memory_space<vmem>>) attributes {dimension_semantics = [#tpu.dimension_semantics<parallel>], iteration_bounds = array<i64: 1>, scalar_prefetch = 0 : i64, scratch_operands = 0 : i64, tpu.core_type = #tpu.core_type<tc>, window_params = [{transform_indices = @transform_0, window_bounds = array<i64: 608, 200>}, {pipeline_mode = #tpu.pipeline_mode<synchronous>, transform_indices = @transform_1, window_bounds = array<i64: 200, 100>}, {pipeline_mode = #tpu.pipeline_mode<synchronous>, transform_indices = @transform_2, window_bounds = array<i64: 1, 100>}, {pipeline_mode = #tpu.pipeline_mode<synchronous>, transform_indices = @transform_3, window_bounds = array<i64: 100, 1>}, {transform_indices = @transform_4, window_bounds = array<i64: 1>}, {transform_indices = @transform_5, window_bounds = array<i64: 608, 1>}]} {
    %c0 = arith.constant 0 : index
    %c0_0 = arith.constant 0 : index
    %0 = vector.load %arg1[%c0, %c0_0] : memref<608x200xf32, #tpu.memory_space<vmem>>, vector<608x200xf32>
    %c0_1 = arith.constant 0 : index
    %c0_2 = arith.constant 0 : index
    %1 = vector.load %arg2[%c0_1, %c0_2] : memref<200x100xf32, #tpu.memory_space<vmem>>, vector<200x100xf32>
    %cst = arith.constant dense<0.000000e+00> : vector<608x100xf32>
    %2 = tpu.matmul %0, %1, %cst {dimension_numbers = #tpu.dot_dimension_numbers<[1], [0], [0], [1], [0, 0, 1, 1], [], []>} : vector<608x200xf32>, vector<200x100xf32>, vector<608x100xf32> -> vector<608x100xf32>
    %c0_3 = arith.constant 0 : index
    %c0_4 = arith.constant 0 : index
    %3 = vector.load %arg3[%c0_3, %c0_4] : memref<1x100xf32, #tpu.memory_space<vmem>>, vector<1x100xf32>
    %4 = vector.broadcast %3 : vector<1x100xf32> to vector<608x100xf32>
    %5 = arith.addf %2, %4 : vector<608x100xf32>
    %cst_5 = arith.constant 0.000000e+00 : f32
    %6 = vector.broadcast %cst_5 : f32 to vector<608x100xf32>
    %7 = arith.maximumf %5, %6 : vector<608x100xf32>
    %c0_6 = arith.constant 0 : index
    %c0_7 = arith.constant 0 : index
    %8 = vector.load %arg4[%c0_6, %c0_7] : memref<100x1xf32, #tpu.memory_space<vmem>>, vector<100x1xf32>
    %cst_8 = arith.constant dense<0.000000e+00> : vector<608x1xf32>
    %9 = tpu.matmul %7, %8, %cst_8 {dimension_numbers = #tpu.dot_dimension_numbers<[1], [0], [0], [1], [0, 0, 1, 1], [], []>} : vector<608x100xf32>, vector<100x1xf32>, vector<608x1xf32> -> vector<608x1xf32>
    %c0_9 = arith.constant 0 : index
    %10 = memref.load %arg5[%c0_9] : memref<1xf32, #tpu.memory_space<smem>>
    %11 = vector.broadcast %10 : f32 to vector<608x1xf32>
    %12 = arith.addf %9, %11 : vector<608x1xf32>
    %cst_10 = arith.constant 0.000000e+00 : f32
    %13 = vector.broadcast %cst_10 : f32 to vector<608x1xf32>
    %14 = arith.maximumf %12, %13 : vector<608x1xf32>
    %c0_11 = arith.constant 0 : index
    %c0_12 = arith.constant 0 : index
    %15 = vector.load %arg6[%c0_11, %c0_12] : memref<608x1xf32, #tpu.memory_space<vmem>>, vector<608x1xf32>
    tpu.vector_store %arg6[%c0_11, %c0_12], %14 {strides = array<i32>} : memref<608x1xf32, #tpu.memory_space<vmem>>, vector<608x1xf32>,
    return
  }
  func.func @transform_0(%arg0: i32) -> (i32, i32) {
    %c0_i32 = arith.constant 0 : i32
    %c0_i32_0 = arith.constant 0 : i32
    return %arg0, %c0_i32 : i32, i32
  }
  func.func @transform_1(%arg0: i32) -> (i32, i32) {
    %c0_i32 = arith.constant 0 : i32
    %c0_i32_0 = arith.constant 0 : i32
    %c0_i32_1 = arith.constant 0 : i32
    return %c0_i32, %c0_i32_0 : i32, i32
  }
  func.func @transform_2(%arg0: i32) -> (i32, i32) {
    %c0_i32 = arith.constant 0 : i32
    %c0_i32_0 = arith.constant 0 : i32
    %c0_i32_1 = arith.constant 0 : i32
    return %c0_i32, %c0_i32_0 : i32, i32
  }
  func.func @transform_3(%arg0: i32) -> (i32, i32) {
    %c0_i32 = arith.constant 0 : i32
    %c0_i32_0 = arith.constant 0 : i32
    %c0_i32_1 = arith.constant 0 : i32
    return %c0_i32, %c0_i32_0 : i32, i32
  }
  func.func @transform_4(%arg0: i32) -> i32 {
    %c0_i32 = arith.constant 0 : i32
    %c0_i32_0 = arith.constant 0 : i32
    return %c0_i32 : i32
  }
  func.func @transform_5(%arg0: i32) -> (i32, i32) {
    %c0_i32 = arith.constant 0 : i32
    %c0_i32_0 = arith.constant 0 : i32
    return %arg0, %c0_i32 : i32, i32
  }
}

module attributes {stable_mosaic.version = 11 : i64} {
  func.func @_lstm_head_kernel(%arg0: i32, %arg1: memref<4x8x19xf32, #tpu.memory_space<vmem>>, %arg2: memref<19x16xf32, #tpu.memory_space<vmem>>, %arg3: memref<1x16xf32, #tpu.memory_space<vmem>>, %arg4: memref<16x32xf32, #tpu.memory_space<vmem>>, %arg5: memref<1x32xf32, #tpu.memory_space<vmem>>, %arg6: memref<32x128xf32, #tpu.memory_space<vmem>>, %arg7: memref<1x128xf32, #tpu.memory_space<vmem>>, %arg8: memref<16x64xf32, #tpu.memory_space<vmem>>, %arg9: memref<16x64xf32, #tpu.memory_space<vmem>>, %arg10: memref<32x2xf32, #tpu.memory_space<vmem>>, %arg11: memref<1x2xf32, #tpu.memory_space<vmem>>, %arg12: memref<8x4x2xf32, #tpu.memory_space<vmem>>) attributes {dimension_semantics = [#tpu.dimension_semantics<arbitrary>], iteration_bounds = array<i64: 1>, scalar_prefetch = 0 : i64, scratch_operands = 0 : i64, tpu.core_type = #tpu.core_type<tc>, window_params = [{pipeline_mode = #tpu.pipeline_mode<synchronous>, transform_indices = @transform_0, window_bounds = array<i64: 4, 8, 19>}, {pipeline_mode = #tpu.pipeline_mode<synchronous>, transform_indices = @transform_1, window_bounds = array<i64: 19, 16>}, {pipeline_mode = #tpu.pipeline_mode<synchronous>, transform_indices = @transform_2, window_bounds = array<i64: 1, 16>}, {pipeline_mode = #tpu.pipeline_mode<synchronous>, transform_indices = @transform_3, window_bounds = array<i64: 16, 32>}, {pipeline_mode = #tpu.pipeline_mode<synchronous>, transform_indices = @transform_4, window_bounds = array<i64: 1, 32>}, {pipeline_mode = #tpu.pipeline_mode<synchronous>, transform_indices = @transform_5, window_bounds = array<i64: 32, 128>}, {pipeline_mode = #tpu.pipeline_mode<synchronous>, transform_indices = @transform_6, window_bounds = array<i64: 1, 128>}, {pipeline_mode = #tpu.pipeline_mode<synchronous>, transform_indices = @transform_7, window_bounds = array<i64: 16, 64>}, {pipeline_mode = #tpu.pipeline_mode<synchronous>, transform_indices = @transform_8, window_bounds = array<i64: 16, 64>}, {pipeline_mode = #tpu.pipeline_mode<synchronous>, transform_indices = @transform_9, window_bounds = array<i64: 32, 2>}, {pipeline_mode = #tpu.pipeline_mode<synchronous>, transform_indices = @transform_10, window_bounds = array<i64: 1, 2>}, {pipeline_mode = #tpu.pipeline_mode<synchronous>, transform_indices = @transform_11, window_bounds = array<i64: 8, 4, 2>}]} {
    %c0 = arith.constant 0 : index
    %c0_0 = arith.constant 0 : index
    %c0_1 = arith.constant 0 : index
    %0 = vector.load %arg1[%c0, %c0_0, %c0_1] : memref<4x8x19xf32, #tpu.memory_space<vmem>>, vector<4x8x19xf32>
    %c0_2 = arith.constant 0 : index
    %c0_3 = arith.constant 0 : index
    %1 = vector.load %arg2[%c0_2, %c0_3] : memref<19x16xf32, #tpu.memory_space<vmem>>, vector<19x16xf32>
    %c0_4 = arith.constant 0 : index
    %c0_5 = arith.constant 0 : index
    %2 = vector.load %arg3[%c0_4, %c0_5] : memref<1x16xf32, #tpu.memory_space<vmem>>, vector<1x16xf32>
    %c0_6 = arith.constant 0 : index
    %c0_7 = arith.constant 0 : index
    %3 = vector.load %arg4[%c0_6, %c0_7] : memref<16x32xf32, #tpu.memory_space<vmem>>, vector<16x32xf32>
    %c0_8 = arith.constant 0 : index
    %c0_9 = arith.constant 0 : index
    %4 = vector.load %arg5[%c0_8, %c0_9] : memref<1x32xf32, #tpu.memory_space<vmem>>, vector<1x32xf32>
    %c0_10 = arith.constant 0 : index
    %c0_11 = arith.constant 0 : index
    %5 = vector.load %arg6[%c0_10, %c0_11] : memref<32x128xf32, #tpu.memory_space<vmem>>, vector<32x128xf32>
    %c0_12 = arith.constant 0 : index
    %c0_13 = arith.constant 0 : index
    %6 = vector.load %arg7[%c0_12, %c0_13] : memref<1x128xf32, #tpu.memory_space<vmem>>, vector<1x128xf32>
    %7 = vector.extract_strided_slice %0 {offsets = [0, 0, 0], sizes = [4, 1, 19], strides = [1, 1, 1]} : vector<4x8x19xf32> to vector<4x1x19xf32>
    %8 = vector.shape_cast %7 : vector<4x1x19xf32> to vector<4x19xf32>
    %cst = arith.constant dense<0.000000e+00> : vector<4x16xf32>
    %9 = tpu.matmul %8, %1, %cst {dimension_numbers = #tpu.dot_dimension_numbers<[1], [0], [0], [1], [0, 0, 1, 1], [], []>} : vector<4x19xf32>, vector<19x16xf32>, vector<4x16xf32> -> vector<4x16xf32>
    %10 = vector.broadcast %2 : vector<1x16xf32> to vector<4x16xf32>
    %11 = arith.addf %9, %10 : vector<4x16xf32>
    %cst_14 = arith.constant 0.000000e+00 : f32
    %12 = vector.broadcast %cst_14 : f32 to vector<4x16xf32>
    %13 = arith.maximumf %11, %12 : vector<4x16xf32>
    %cst_15 = arith.constant dense<0.000000e+00> : vector<4x32xf32>
    %14 = tpu.matmul %13, %3, %cst_15 {dimension_numbers = #tpu.dot_dimension_numbers<[1], [0], [0], [1], [0, 0, 1, 1], [], []>} : vector<4x16xf32>, vector<16x32xf32>, vector<4x32xf32> -> vector<4x32xf32>
    %15 = vector.broadcast %4 : vector<1x32xf32> to vector<4x32xf32>
    %16 = arith.addf %14, %15 : vector<4x32xf32>
    %cst_16 = arith.constant 0.000000e+00 : f32
    %17 = vector.broadcast %cst_16 : f32 to vector<4x32xf32>
    %18 = arith.maximumf %16, %17 : vector<4x32xf32>
    %cst_17 = arith.constant dense<0.000000e+00> : vector<4x128xf32>
    %19 = tpu.matmul %18, %5, %cst_17 {dimension_numbers = #tpu.dot_dimension_numbers<[1], [0], [0], [1], [0, 0, 1, 1], [], []>} : vector<4x32xf32>, vector<32x128xf32>, vector<4x128xf32> -> vector<4x128xf32>
    %20 = vector.broadcast %6 : vector<1x128xf32> to vector<4x128xf32>
    %21 = arith.addf %19, %20 : vector<4x128xf32>
    %22 = vector.extract_strided_slice %0 {offsets = [0, 1, 0], sizes = [4, 1, 19], strides = [1, 1, 1]} : vector<4x8x19xf32> to vector<4x1x19xf32>
    %23 = vector.shape_cast %22 : vector<4x1x19xf32> to vector<4x19xf32>
    %cst_18 = arith.constant dense<0.000000e+00> : vector<4x16xf32>
    %24 = tpu.matmul %23, %1, %cst_18 {dimension_numbers = #tpu.dot_dimension_numbers<[1], [0], [0], [1], [0, 0, 1, 1], [], []>} : vector<4x19xf32>, vector<19x16xf32>, vector<4x16xf32> -> vector<4x16xf32>
    %25 = vector.broadcast %2 : vector<1x16xf32> to vector<4x16xf32>
    %26 = arith.addf %24, %25 : vector<4x16xf32>
    %cst_19 = arith.constant 0.000000e+00 : f32
    %27 = vector.broadcast %cst_19 : f32 to vector<4x16xf32>
    %28 = arith.maximumf %26, %27 : vector<4x16xf32>
    %cst_20 = arith.constant dense<0.000000e+00> : vector<4x32xf32>
    %29 = tpu.matmul %28, %3, %cst_20 {dimension_numbers = #tpu.dot_dimension_numbers<[1], [0], [0], [1], [0, 0, 1, 1], [], []>} : vector<4x16xf32>, vector<16x32xf32>, vector<4x32xf32> -> vector<4x32xf32>
    %30 = vector.broadcast %4 : vector<1x32xf32> to vector<4x32xf32>
    %31 = arith.addf %29, %30 : vector<4x32xf32>
    %cst_21 = arith.constant 0.000000e+00 : f32
    %32 = vector.broadcast %cst_21 : f32 to vector<4x32xf32>
    %33 = arith.maximumf %31, %32 : vector<4x32xf32>
    %cst_22 = arith.constant dense<0.000000e+00> : vector<4x128xf32>
    %34 = tpu.matmul %33, %5, %cst_22 {dimension_numbers = #tpu.dot_dimension_numbers<[1], [0], [0], [1], [0, 0, 1, 1], [], []>} : vector<4x32xf32>, vector<32x128xf32>, vector<4x128xf32> -> vector<4x128xf32>
    %35 = vector.broadcast %6 : vector<1x128xf32> to vector<4x128xf32>
    %36 = arith.addf %34, %35 : vector<4x128xf32>
    %37 = vector.extract_strided_slice %0 {offsets = [0, 2, 0], sizes = [4, 1, 19], strides = [1, 1, 1]} : vector<4x8x19xf32> to vector<4x1x19xf32>
    %38 = vector.shape_cast %37 : vector<4x1x19xf32> to vector<4x19xf32>
    %cst_23 = arith.constant dense<0.000000e+00> : vector<4x16xf32>
    %39 = tpu.matmul %38, %1, %cst_23 {dimension_numbers = #tpu.dot_dimension_numbers<[1], [0], [0], [1], [0, 0, 1, 1], [], []>} : vector<4x19xf32>, vector<19x16xf32>, vector<4x16xf32> -> vector<4x16xf32>
    %40 = vector.broadcast %2 : vector<1x16xf32> to vector<4x16xf32>
    %41 = arith.addf %39, %40 : vector<4x16xf32>
    %cst_24 = arith.constant 0.000000e+00 : f32
    %42 = vector.broadcast %cst_24 : f32 to vector<4x16xf32>
    %43 = arith.maximumf %41, %42 : vector<4x16xf32>
    %cst_25 = arith.constant dense<0.000000e+00> : vector<4x32xf32>
    %44 = tpu.matmul %43, %3, %cst_25 {dimension_numbers = #tpu.dot_dimension_numbers<[1], [0], [0], [1], [0, 0, 1, 1], [], []>} : vector<4x16xf32>, vector<16x32xf32>, vector<4x32xf32> -> vector<4x32xf32>
    %45 = vector.broadcast %4 : vector<1x32xf32> to vector<4x32xf32>
    %46 = arith.addf %44, %45 : vector<4x32xf32>
    %cst_26 = arith.constant 0.000000e+00 : f32
    %47 = vector.broadcast %cst_26 : f32 to vector<4x32xf32>
    %48 = arith.maximumf %46, %47 : vector<4x32xf32>
    %cst_27 = arith.constant dense<0.000000e+00> : vector<4x128xf32>
    %49 = tpu.matmul %48, %5, %cst_27 {dimension_numbers = #tpu.dot_dimension_numbers<[1], [0], [0], [1], [0, 0, 1, 1], [], []>} : vector<4x32xf32>, vector<32x128xf32>, vector<4x128xf32> -> vector<4x128xf32>
    %50 = vector.broadcast %6 : vector<1x128xf32> to vector<4x128xf32>
    %51 = arith.addf %49, %50 : vector<4x128xf32>
    %52 = vector.extract_strided_slice %0 {offsets = [0, 3, 0], sizes = [4, 1, 19], strides = [1, 1, 1]} : vector<4x8x19xf32> to vector<4x1x19xf32>
    %53 = vector.shape_cast %52 : vector<4x1x19xf32> to vector<4x19xf32>
    %cst_28 = arith.constant dense<0.000000e+00> : vector<4x16xf32>
    %54 = tpu.matmul %53, %1, %cst_28 {dimension_numbers = #tpu.dot_dimension_numbers<[1], [0], [0], [1], [0, 0, 1, 1], [], []>} : vector<4x19xf32>, vector<19x16xf32>, vector<4x16xf32> -> vector<4x16xf32>
    %55 = vector.broadcast %2 : vector<1x16xf32> to vector<4x16xf32>
    %56 = arith.addf %54, %55 : vector<4x16xf32>
    %cst_29 = arith.constant 0.000000e+00 : f32
    %57 = vector.broadcast %cst_29 : f32 to vector<4x16xf32>
    %58 = arith.maximumf %56, %57 : vector<4x16xf32>
    %cst_30 = arith.constant dense<0.000000e+00> : vector<4x32xf32>
    %59 = tpu.matmul %58, %3, %cst_30 {dimension_numbers = #tpu.dot_dimension_numbers<[1], [0], [0], [1], [0, 0, 1, 1], [], []>} : vector<4x16xf32>, vector<16x32xf32>, vector<4x32xf32> -> vector<4x32xf32>
    %60 = vector.broadcast %4 : vector<1x32xf32> to vector<4x32xf32>
    %61 = arith.addf %59, %60 : vector<4x32xf32>
    %cst_31 = arith.constant 0.000000e+00 : f32
    %62 = vector.broadcast %cst_31 : f32 to vector<4x32xf32>
    %63 = arith.maximumf %61, %62 : vector<4x32xf32>
    %cst_32 = arith.constant dense<0.000000e+00> : vector<4x128xf32>
    %64 = tpu.matmul %63, %5, %cst_32 {dimension_numbers = #tpu.dot_dimension_numbers<[1], [0], [0], [1], [0, 0, 1, 1], [], []>} : vector<4x32xf32>, vector<32x128xf32>, vector<4x128xf32> -> vector<4x128xf32>
    %65 = vector.broadcast %6 : vector<1x128xf32> to vector<4x128xf32>
    %66 = arith.addf %64, %65 : vector<4x128xf32>
    %67 = vector.extract_strided_slice %0 {offsets = [0, 4, 0], sizes = [4, 1, 19], strides = [1, 1, 1]} : vector<4x8x19xf32> to vector<4x1x19xf32>
    %68 = vector.shape_cast %67 : vector<4x1x19xf32> to vector<4x19xf32>
    %cst_33 = arith.constant dense<0.000000e+00> : vector<4x16xf32>
    %69 = tpu.matmul %68, %1, %cst_33 {dimension_numbers = #tpu.dot_dimension_numbers<[1], [0], [0], [1], [0, 0, 1, 1], [], []>} : vector<4x19xf32>, vector<19x16xf32>, vector<4x16xf32> -> vector<4x16xf32>
    %70 = vector.broadcast %2 : vector<1x16xf32> to vector<4x16xf32>
    %71 = arith.addf %69, %70 : vector<4x16xf32>
    %cst_34 = arith.constant 0.000000e+00 : f32
    %72 = vector.broadcast %cst_34 : f32 to vector<4x16xf32>
    %73 = arith.maximumf %71, %72 : vector<4x16xf32>
    %cst_35 = arith.constant dense<0.000000e+00> : vector<4x32xf32>
    %74 = tpu.matmul %73, %3, %cst_35 {dimension_numbers = #tpu.dot_dimension_numbers<[1], [0], [0], [1], [0, 0, 1, 1], [], []>} : vector<4x16xf32>, vector<16x32xf32>, vector<4x32xf32> -> vector<4x32xf32>
    %75 = vector.broadcast %4 : vector<1x32xf32> to vector<4x32xf32>
    %76 = arith.addf %74, %75 : vector<4x32xf32>
    %cst_36 = arith.constant 0.000000e+00 : f32
    %77 = vector.broadcast %cst_36 : f32 to vector<4x32xf32>
    %78 = arith.maximumf %76, %77 : vector<4x32xf32>
    %cst_37 = arith.constant dense<0.000000e+00> : vector<4x128xf32>
    %79 = tpu.matmul %78, %5, %cst_37 {dimension_numbers = #tpu.dot_dimension_numbers<[1], [0], [0], [1], [0, 0, 1, 1], [], []>} : vector<4x32xf32>, vector<32x128xf32>, vector<4x128xf32> -> vector<4x128xf32>
    %80 = vector.broadcast %6 : vector<1x128xf32> to vector<4x128xf32>
    %81 = arith.addf %79, %80 : vector<4x128xf32>
    %82 = vector.extract_strided_slice %0 {offsets = [0, 5, 0], sizes = [4, 1, 19], strides = [1, 1, 1]} : vector<4x8x19xf32> to vector<4x1x19xf32>
    %83 = vector.shape_cast %82 : vector<4x1x19xf32> to vector<4x19xf32>
    %cst_38 = arith.constant dense<0.000000e+00> : vector<4x16xf32>
    %84 = tpu.matmul %83, %1, %cst_38 {dimension_numbers = #tpu.dot_dimension_numbers<[1], [0], [0], [1], [0, 0, 1, 1], [], []>} : vector<4x19xf32>, vector<19x16xf32>, vector<4x16xf32> -> vector<4x16xf32>
    %85 = vector.broadcast %2 : vector<1x16xf32> to vector<4x16xf32>
    %86 = arith.addf %84, %85 : vector<4x16xf32>
    %cst_39 = arith.constant 0.000000e+00 : f32
    %87 = vector.broadcast %cst_39 : f32 to vector<4x16xf32>
    %88 = arith.maximumf %86, %87 : vector<4x16xf32>
    %cst_40 = arith.constant dense<0.000000e+00> : vector<4x32xf32>
    %89 = tpu.matmul %88, %3, %cst_40 {dimension_numbers = #tpu.dot_dimension_numbers<[1], [0], [0], [1], [0, 0, 1, 1], [], []>} : vector<4x16xf32>, vector<16x32xf32>, vector<4x32xf32> -> vector<4x32xf32>
    %90 = vector.broadcast %4 : vector<1x32xf32> to vector<4x32xf32>
    %91 = arith.addf %89, %90 : vector<4x32xf32>
    %cst_41 = arith.constant 0.000000e+00 : f32
    %92 = vector.broadcast %cst_41 : f32 to vector<4x32xf32>
    %93 = arith.maximumf %91, %92 : vector<4x32xf32>
    %cst_42 = arith.constant dense<0.000000e+00> : vector<4x128xf32>
    %94 = tpu.matmul %93, %5, %cst_42 {dimension_numbers = #tpu.dot_dimension_numbers<[1], [0], [0], [1], [0, 0, 1, 1], [], []>} : vector<4x32xf32>, vector<32x128xf32>, vector<4x128xf32> -> vector<4x128xf32>
    %95 = vector.broadcast %6 : vector<1x128xf32> to vector<4x128xf32>
    %96 = arith.addf %94, %95 : vector<4x128xf32>
    %97 = vector.extract_strided_slice %0 {offsets = [0, 6, 0], sizes = [4, 1, 19], strides = [1, 1, 1]} : vector<4x8x19xf32> to vector<4x1x19xf32>
    %98 = vector.shape_cast %97 : vector<4x1x19xf32> to vector<4x19xf32>
    %cst_43 = arith.constant dense<0.000000e+00> : vector<4x16xf32>
    %99 = tpu.matmul %98, %1, %cst_43 {dimension_numbers = #tpu.dot_dimension_numbers<[1], [0], [0], [1], [0, 0, 1, 1], [], []>} : vector<4x19xf32>, vector<19x16xf32>, vector<4x16xf32> -> vector<4x16xf32>
    %100 = vector.broadcast %2 : vector<1x16xf32> to vector<4x16xf32>
    %101 = arith.addf %99, %100 : vector<4x16xf32>
    %cst_44 = arith.constant 0.000000e+00 : f32
    %102 = vector.broadcast %cst_44 : f32 to vector<4x16xf32>
    %103 = arith.maximumf %101, %102 : vector<4x16xf32>
    %cst_45 = arith.constant dense<0.000000e+00> : vector<4x32xf32>
    %104 = tpu.matmul %103, %3, %cst_45 {dimension_numbers = #tpu.dot_dimension_numbers<[1], [0], [0], [1], [0, 0, 1, 1], [], []>} : vector<4x16xf32>, vector<16x32xf32>, vector<4x32xf32> -> vector<4x32xf32>
    %105 = vector.broadcast %4 : vector<1x32xf32> to vector<4x32xf32>
    %106 = arith.addf %104, %105 : vector<4x32xf32>
    %cst_46 = arith.constant 0.000000e+00 : f32
    %107 = vector.broadcast %cst_46 : f32 to vector<4x32xf32>
    %108 = arith.maximumf %106, %107 : vector<4x32xf32>
    %cst_47 = arith.constant dense<0.000000e+00> : vector<4x128xf32>
    %109 = tpu.matmul %108, %5, %cst_47 {dimension_numbers = #tpu.dot_dimension_numbers<[1], [0], [0], [1], [0, 0, 1, 1], [], []>} : vector<4x32xf32>, vector<32x128xf32>, vector<4x128xf32> -> vector<4x128xf32>
    %110 = vector.broadcast %6 : vector<1x128xf32> to vector<4x128xf32>
    %111 = arith.addf %109, %110 : vector<4x128xf32>
    %112 = vector.extract_strided_slice %0 {offsets = [0, 7, 0], sizes = [4, 1, 19], strides = [1, 1, 1]} : vector<4x8x19xf32> to vector<4x1x19xf32>
    %113 = vector.shape_cast %112 : vector<4x1x19xf32> to vector<4x19xf32>
    %cst_48 = arith.constant dense<0.000000e+00> : vector<4x16xf32>
    %114 = tpu.matmul %113, %1, %cst_48 {dimension_numbers = #tpu.dot_dimension_numbers<[1], [0], [0], [1], [0, 0, 1, 1], [], []>} : vector<4x19xf32>, vector<19x16xf32>, vector<4x16xf32> -> vector<4x16xf32>
    %115 = vector.broadcast %2 : vector<1x16xf32> to vector<4x16xf32>
    %116 = arith.addf %114, %115 : vector<4x16xf32>
    %cst_49 = arith.constant 0.000000e+00 : f32
    %117 = vector.broadcast %cst_49 : f32 to vector<4x16xf32>
    %118 = arith.maximumf %116, %117 : vector<4x16xf32>
    %cst_50 = arith.constant dense<0.000000e+00> : vector<4x32xf32>
    %119 = tpu.matmul %118, %3, %cst_50 {dimension_numbers = #tpu.dot_dimension_numbers<[1], [0], [0], [1], [0, 0, 1, 1], [], []>} : vector<4x16xf32>, vector<16x32xf32>, vector<4x32xf32> -> vector<4x32xf32>
    %120 = vector.broadcast %4 : vector<1x32xf32> to vector<4x32xf32>
    %121 = arith.addf %119, %120 : vector<4x32xf32>
    %cst_51 = arith.constant 0.000000e+00 : f32
    %122 = vector.broadcast %cst_51 : f32 to vector<4x32xf32>
    %123 = arith.maximumf %121, %122 : vector<4x32xf32>
    %cst_52 = arith.constant dense<0.000000e+00> : vector<4x128xf32>
    %124 = tpu.matmul %123, %5, %cst_52 {dimension_numbers = #tpu.dot_dimension_numbers<[1], [0], [0], [1], [0, 0, 1, 1], [], []>} : vector<4x32xf32>, vector<32x128xf32>, vector<4x128xf32> -> vector<4x128xf32>
    %125 = vector.broadcast %6 : vector<1x128xf32> to vector<4x128xf32>
    %126 = arith.addf %124, %125 : vector<4x128xf32>
    %cst_53 = arith.constant 0.000000e+00 : f32
    %127 = vector.broadcast %cst_53 : f32 to vector<4x16xf32>
    %c0_54 = arith.constant 0 : index
    %c0_55 = arith.constant 0 : index
    %128 = vector.load %arg8[%c0_54, %c0_55] : memref<16x64xf32, #tpu.memory_space<vmem>>, vector<16x64xf32>
    %c0_56 = arith.constant 0 : index
    %c0_57 = arith.constant 0 : index
    %129 = vector.load %arg9[%c0_56, %c0_57] : memref<16x64xf32, #tpu.memory_space<vmem>>, vector<16x64xf32>
    %130 = vector.extract_strided_slice %21 {offsets = [0, 0], sizes = [4, 64], strides = [1, 1]} : vector<4x128xf32> to vector<4x64xf32>
    %cst_58 = arith.constant dense<0.000000e+00> : vector<4x64xf32>
    %131 = tpu.matmul %127, %128, %cst_58 {dimension_numbers = #tpu.dot_dimension_numbers<[1], [0], [0], [1], [0, 0, 1, 1], [], []>} : vector<4x16xf32>, vector<16x64xf32>, vector<4x64xf32> -> vector<4x64xf32>
    %132 = arith.addf %130, %131 : vector<4x64xf32>
    %133 = vector.extract_strided_slice %132 {offsets = [0, 0], sizes = [4, 16], strides = [1, 1]} : vector<4x64xf32> to vector<4x16xf32>
    %134 = arith.negf %133 : vector<4x16xf32>
    %135 = math.exp %134 : vector<4x16xf32>
    %cst_59 = arith.constant 1.000000e+00 : f32
    %136 = vector.broadcast %cst_59 : f32 to vector<4x16xf32>
    %137 = arith.addf %136, %135 : vector<4x16xf32>
    %138 = arith.divf %136, %137 : vector<4x16xf32>
    %139 = vector.extract_strided_slice %132 {offsets = [0, 16], sizes = [4, 16], strides = [1, 1]} : vector<4x64xf32> to vector<4x16xf32>
    %140 = arith.negf %139 : vector<4x16xf32>
    %141 = math.exp %140 : vector<4x16xf32>
    %cst_60 = arith.constant 1.000000e+00 : f32
    %142 = vector.broadcast %cst_60 : f32 to vector<4x16xf32>
    %143 = arith.addf %142, %141 : vector<4x16xf32>
    %144 = arith.divf %142, %143 : vector<4x16xf32>
    %145 = vector.extract_strided_slice %132 {offsets = [0, 32], sizes = [4, 16], strides = [1, 1]} : vector<4x64xf32> to vector<4x16xf32>
    %146 = math.tanh %145 : vector<4x16xf32>
    %147 = vector.extract_strided_slice %132 {offsets = [0, 48], sizes = [4, 16], strides = [1, 1]} : vector<4x64xf32> to vector<4x16xf32>
    %148 = arith.negf %147 : vector<4x16xf32>
    %149 = math.exp %148 : vector<4x16xf32>
    %cst_61 = arith.constant 1.000000e+00 : f32
    %150 = vector.broadcast %cst_61 : f32 to vector<4x16xf32>
    %151 = arith.addf %150, %149 : vector<4x16xf32>
    %152 = arith.divf %150, %151 : vector<4x16xf32>
    %153 = arith.mulf %144, %127 : vector<4x16xf32>
    %154 = arith.mulf %138, %146 : vector<4x16xf32>
    %155 = arith.addf %153, %154 : vector<4x16xf32>
    %156 = math.tanh %155 : vector<4x16xf32>
    %157 = arith.mulf %152, %156 : vector<4x16xf32>
    %158 = vector.extract_strided_slice %36 {offsets = [0, 0], sizes = [4, 64], strides = [1, 1]} : vector<4x128xf32> to vector<4x64xf32>
    %cst_62 = arith.constant dense<0.000000e+00> : vector<4x64xf32>
    %159 = tpu.matmul %157, %128, %cst_62 {dimension_numbers = #tpu.dot_dimension_numbers<[1], [0], [0], [1], [0, 0, 1, 1], [], []>} : vector<4x16xf32>, vector<16x64xf32>, vector<4x64xf32> -> vector<4x64xf32>
    %160 = arith.addf %158, %159 : vector<4x64xf32>
    %161 = vector.extract_strided_slice %160 {offsets = [0, 0], sizes = [4, 16], strides = [1, 1]} : vector<4x64xf32> to vector<4x16xf32>
    %162 = arith.negf %161 : vector<4x16xf32>
    %163 = math.exp %162 : vector<4x16xf32>
    %cst_63 = arith.constant 1.000000e+00 : f32
    %164 = vector.broadcast %cst_63 : f32 to vector<4x16xf32>
    %165 = arith.addf %164, %163 : vector<4x16xf32>
    %166 = arith.divf %164, %165 : vector<4x16xf32>
    %167 = vector.extract_strided_slice %160 {offsets = [0, 16], sizes = [4, 16], strides = [1, 1]} : vector<4x64xf32> to vector<4x16xf32>
    %168 = arith.negf %167 : vector<4x16xf32>
    %169 = math.exp %168 : vector<4x16xf32>
    %cst_64 = arith.constant 1.000000e+00 : f32
    %170 = vector.broadcast %cst_64 : f32 to vector<4x16xf32>
    %171 = arith.addf %170, %169 : vector<4x16xf32>
    %172 = arith.divf %170, %171 : vector<4x16xf32>
    %173 = vector.extract_strided_slice %160 {offsets = [0, 32], sizes = [4, 16], strides = [1, 1]} : vector<4x64xf32> to vector<4x16xf32>
    %174 = math.tanh %173 : vector<4x16xf32>
    %175 = vector.extract_strided_slice %160 {offsets = [0, 48], sizes = [4, 16], strides = [1, 1]} : vector<4x64xf32> to vector<4x16xf32>
    %176 = arith.negf %175 : vector<4x16xf32>
    %177 = math.exp %176 : vector<4x16xf32>
    %cst_65 = arith.constant 1.000000e+00 : f32
    %178 = vector.broadcast %cst_65 : f32 to vector<4x16xf32>
    %179 = arith.addf %178, %177 : vector<4x16xf32>
    %180 = arith.divf %178, %179 : vector<4x16xf32>
    %181 = arith.mulf %172, %155 : vector<4x16xf32>
    %182 = arith.mulf %166, %174 : vector<4x16xf32>
    %183 = arith.addf %181, %182 : vector<4x16xf32>
    %184 = math.tanh %183 : vector<4x16xf32>
    %185 = arith.mulf %180, %184 : vector<4x16xf32>
    %186 = vector.extract_strided_slice %51 {offsets = [0, 0], sizes = [4, 64], strides = [1, 1]} : vector<4x128xf32> to vector<4x64xf32>
    %cst_66 = arith.constant dense<0.000000e+00> : vector<4x64xf32>
    %187 = tpu.matmul %185, %128, %cst_66 {dimension_numbers = #tpu.dot_dimension_numbers<[1], [0], [0], [1], [0, 0, 1, 1], [], []>} : vector<4x16xf32>, vector<16x64xf32>, vector<4x64xf32> -> vector<4x64xf32>
    %188 = arith.addf %186, %187 : vector<4x64xf32>
    %189 = vector.extract_strided_slice %188 {offsets = [0, 0], sizes = [4, 16], strides = [1, 1]} : vector<4x64xf32> to vector<4x16xf32>
    %190 = arith.negf %189 : vector<4x16xf32>
    %191 = math.exp %190 : vector<4x16xf32>
    %cst_67 = arith.constant 1.000000e+00 : f32
    %192 = vector.broadcast %cst_67 : f32 to vector<4x16xf32>
    %193 = arith.addf %192, %191 : vector<4x16xf32>
    %194 = arith.divf %192, %193 : vector<4x16xf32>
    %195 = vector.extract_strided_slice %188 {offsets = [0, 16], sizes = [4, 16], strides = [1, 1]} : vector<4x64xf32> to vector<4x16xf32>
    %196 = arith.negf %195 : vector<4x16xf32>
    %197 = math.exp %196 : vector<4x16xf32>
    %cst_68 = arith.constant 1.000000e+00 : f32
    %198 = vector.broadcast %cst_68 : f32 to vector<4x16xf32>
    %199 = arith.addf %198, %197 : vector<4x16xf32>
    %200 = arith.divf %198, %199 : vector<4x16xf32>
    %201 = vector.extract_strided_slice %188 {offsets = [0, 32], sizes = [4, 16], strides = [1, 1]} : vector<4x64xf32> to vector<4x16xf32>
    %202 = math.tanh %201 : vector<4x16xf32>
    %203 = vector.extract_strided_slice %188 {offsets = [0, 48], sizes = [4, 16], strides = [1, 1]} : vector<4x64xf32> to vector<4x16xf32>
    %204 = arith.negf %203 : vector<4x16xf32>
    %205 = math.exp %204 : vector<4x16xf32>
    %cst_69 = arith.constant 1.000000e+00 : f32
    %206 = vector.broadcast %cst_69 : f32 to vector<4x16xf32>
    %207 = arith.addf %206, %205 : vector<4x16xf32>
    %208 = arith.divf %206, %207 : vector<4x16xf32>
    %209 = arith.mulf %200, %183 : vector<4x16xf32>
    %210 = arith.mulf %194, %202 : vector<4x16xf32>
    %211 = arith.addf %209, %210 : vector<4x16xf32>
    %212 = math.tanh %211 : vector<4x16xf32>
    %213 = arith.mulf %208, %212 : vector<4x16xf32>
    %214 = vector.extract_strided_slice %66 {offsets = [0, 0], sizes = [4, 64], strides = [1, 1]} : vector<4x128xf32> to vector<4x64xf32>
    %cst_70 = arith.constant dense<0.000000e+00> : vector<4x64xf32>
    %215 = tpu.matmul %213, %128, %cst_70 {dimension_numbers = #tpu.dot_dimension_numbers<[1], [0], [0], [1], [0, 0, 1, 1], [], []>} : vector<4x16xf32>, vector<16x64xf32>, vector<4x64xf32> -> vector<4x64xf32>
    %216 = arith.addf %214, %215 : vector<4x64xf32>
    %217 = vector.extract_strided_slice %216 {offsets = [0, 0], sizes = [4, 16], strides = [1, 1]} : vector<4x64xf32> to vector<4x16xf32>
    %218 = arith.negf %217 : vector<4x16xf32>
    %219 = math.exp %218 : vector<4x16xf32>
    %cst_71 = arith.constant 1.000000e+00 : f32
    %220 = vector.broadcast %cst_71 : f32 to vector<4x16xf32>
    %221 = arith.addf %220, %219 : vector<4x16xf32>
    %222 = arith.divf %220, %221 : vector<4x16xf32>
    %223 = vector.extract_strided_slice %216 {offsets = [0, 16], sizes = [4, 16], strides = [1, 1]} : vector<4x64xf32> to vector<4x16xf32>
    %224 = arith.negf %223 : vector<4x16xf32>
    %225 = math.exp %224 : vector<4x16xf32>
    %cst_72 = arith.constant 1.000000e+00 : f32
    %226 = vector.broadcast %cst_72 : f32 to vector<4x16xf32>
    %227 = arith.addf %226, %225 : vector<4x16xf32>
    %228 = arith.divf %226, %227 : vector<4x16xf32>
    %229 = vector.extract_strided_slice %216 {offsets = [0, 32], sizes = [4, 16], strides = [1, 1]} : vector<4x64xf32> to vector<4x16xf32>
    %230 = math.tanh %229 : vector<4x16xf32>
    %231 = vector.extract_strided_slice %216 {offsets = [0, 48], sizes = [4, 16], strides = [1, 1]} : vector<4x64xf32> to vector<4x16xf32>
    %232 = arith.negf %231 : vector<4x16xf32>
    %233 = math.exp %232 : vector<4x16xf32>
    %cst_73 = arith.constant 1.000000e+00 : f32
    %234 = vector.broadcast %cst_73 : f32 to vector<4x16xf32>
    %235 = arith.addf %234, %233 : vector<4x16xf32>
    %236 = arith.divf %234, %235 : vector<4x16xf32>
    %237 = arith.mulf %228, %211 : vector<4x16xf32>
    %238 = arith.mulf %222, %230 : vector<4x16xf32>
    %239 = arith.addf %237, %238 : vector<4x16xf32>
    %240 = math.tanh %239 : vector<4x16xf32>
    %241 = arith.mulf %236, %240 : vector<4x16xf32>
    %242 = vector.extract_strided_slice %81 {offsets = [0, 0], sizes = [4, 64], strides = [1, 1]} : vector<4x128xf32> to vector<4x64xf32>
    %cst_74 = arith.constant dense<0.000000e+00> : vector<4x64xf32>
    %243 = tpu.matmul %241, %128, %cst_74 {dimension_numbers = #tpu.dot_dimension_numbers<[1], [0], [0], [1], [0, 0, 1, 1], [], []>} : vector<4x16xf32>, vector<16x64xf32>, vector<4x64xf32> -> vector<4x64xf32>
    %244 = arith.addf %242, %243 : vector<4x64xf32>
    %245 = vector.extract_strided_slice %244 {offsets = [0, 0], sizes = [4, 16], strides = [1, 1]} : vector<4x64xf32> to vector<4x16xf32>
    %246 = arith.negf %245 : vector<4x16xf32>
    %247 = math.exp %246 : vector<4x16xf32>
    %cst_75 = arith.constant 1.000000e+00 : f32
    %248 = vector.broadcast %cst_75 : f32 to vector<4x16xf32>
    %249 = arith.addf %248, %247 : vector<4x16xf32>
    %250 = arith.divf %248, %249 : vector<4x16xf32>
    %251 = vector.extract_strided_slice %244 {offsets = [0, 16], sizes = [4, 16], strides = [1, 1]} : vector<4x64xf32> to vector<4x16xf32>
    %252 = arith.negf %251 : vector<4x16xf32>
    %253 = math.exp %252 : vector<4x16xf32>
    %cst_76 = arith.constant 1.000000e+00 : f32
    %254 = vector.broadcast %cst_76 : f32 to vector<4x16xf32>
    %255 = arith.addf %254, %253 : vector<4x16xf32>
    %256 = arith.divf %254, %255 : vector<4x16xf32>
    %257 = vector.extract_strided_slice %244 {offsets = [0, 32], sizes = [4, 16], strides = [1, 1]} : vector<4x64xf32> to vector<4x16xf32>
    %258 = math.tanh %257 : vector<4x16xf32>
    %259 = vector.extract_strided_slice %244 {offsets = [0, 48], sizes = [4, 16], strides = [1, 1]} : vector<4x64xf32> to vector<4x16xf32>
    %260 = arith.negf %259 : vector<4x16xf32>
    %261 = math.exp %260 : vector<4x16xf32>
    %cst_77 = arith.constant 1.000000e+00 : f32
    %262 = vector.broadcast %cst_77 : f32 to vector<4x16xf32>
    %263 = arith.addf %262, %261 : vector<4x16xf32>
    %264 = arith.divf %262, %263 : vector<4x16xf32>
    %265 = arith.mulf %256, %239 : vector<4x16xf32>
    %266 = arith.mulf %250, %258 : vector<4x16xf32>
    %267 = arith.addf %265, %266 : vector<4x16xf32>
    %268 = math.tanh %267 : vector<4x16xf32>
    %269 = arith.mulf %264, %268 : vector<4x16xf32>
    %270 = vector.extract_strided_slice %96 {offsets = [0, 0], sizes = [4, 64], strides = [1, 1]} : vector<4x128xf32> to vector<4x64xf32>
    %cst_78 = arith.constant dense<0.000000e+00> : vector<4x64xf32>
    %271 = tpu.matmul %269, %128, %cst_78 {dimension_numbers = #tpu.dot_dimension_numbers<[1], [0], [0], [1], [0, 0, 1, 1], [], []>} : vector<4x16xf32>, vector<16x64xf32>, vector<4x64xf32> -> vector<4x64xf32>
    %272 = arith.addf %270, %271 : vector<4x64xf32>
    %273 = vector.extract_strided_slice %272 {offsets = [0, 0], sizes = [4, 16], strides = [1, 1]} : vector<4x64xf32> to vector<4x16xf32>
    %274 = arith.negf %273 : vector<4x16xf32>
    %275 = math.exp %274 : vector<4x16xf32>
    %cst_79 = arith.constant 1.000000e+00 : f32
    %276 = vector.broadcast %cst_79 : f32 to vector<4x16xf32>
    %277 = arith.addf %276, %275 : vector<4x16xf32>
    %278 = arith.divf %276, %277 : vector<4x16xf32>
    %279 = vector.extract_strided_slice %272 {offsets = [0, 16], sizes = [4, 16], strides = [1, 1]} : vector<4x64xf32> to vector<4x16xf32>
    %280 = arith.negf %279 : vector<4x16xf32>
    %281 = math.exp %280 : vector<4x16xf32>
    %cst_80 = arith.constant 1.000000e+00 : f32
    %282 = vector.broadcast %cst_80 : f32 to vector<4x16xf32>
    %283 = arith.addf %282, %281 : vector<4x16xf32>
    %284 = arith.divf %282, %283 : vector<4x16xf32>
    %285 = vector.extract_strided_slice %272 {offsets = [0, 32], sizes = [4, 16], strides = [1, 1]} : vector<4x64xf32> to vector<4x16xf32>
    %286 = math.tanh %285 : vector<4x16xf32>
    %287 = vector.extract_strided_slice %272 {offsets = [0, 48], sizes = [4, 16], strides = [1, 1]} : vector<4x64xf32> to vector<4x16xf32>
    %288 = arith.negf %287 : vector<4x16xf32>
    %289 = math.exp %288 : vector<4x16xf32>
    %cst_81 = arith.constant 1.000000e+00 : f32
    %290 = vector.broadcast %cst_81 : f32 to vector<4x16xf32>
    %291 = arith.addf %290, %289 : vector<4x16xf32>
    %292 = arith.divf %290, %291 : vector<4x16xf32>
    %293 = arith.mulf %284, %267 : vector<4x16xf32>
    %294 = arith.mulf %278, %286 : vector<4x16xf32>
    %295 = arith.addf %293, %294 : vector<4x16xf32>
    %296 = math.tanh %295 : vector<4x16xf32>
    %297 = arith.mulf %292, %296 : vector<4x16xf32>
    %298 = vector.extract_strided_slice %111 {offsets = [0, 0], sizes = [4, 64], strides = [1, 1]} : vector<4x128xf32> to vector<4x64xf32>
    %cst_82 = arith.constant dense<0.000000e+00> : vector<4x64xf32>
    %299 = tpu.matmul %297, %128, %cst_82 {dimension_numbers = #tpu.dot_dimension_numbers<[1], [0], [0], [1], [0, 0, 1, 1], [], []>} : vector<4x16xf32>, vector<16x64xf32>, vector<4x64xf32> -> vector<4x64xf32>
    %300 = arith.addf %298, %299 : vector<4x64xf32>
    %301 = vector.extract_strided_slice %300 {offsets = [0, 0], sizes = [4, 16], strides = [1, 1]} : vector<4x64xf32> to vector<4x16xf32>
    %302 = arith.negf %301 : vector<4x16xf32>
    %303 = math.exp %302 : vector<4x16xf32>
    %cst_83 = arith.constant 1.000000e+00 : f32
    %304 = vector.broadcast %cst_83 : f32 to vector<4x16xf32>
    %305 = arith.addf %304, %303 : vector<4x16xf32>
    %306 = arith.divf %304, %305 : vector<4x16xf32>
    %307 = vector.extract_strided_slice %300 {offsets = [0, 16], sizes = [4, 16], strides = [1, 1]} : vector<4x64xf32> to vector<4x16xf32>
    %308 = arith.negf %307 : vector<4x16xf32>
    %309 = math.exp %308 : vector<4x16xf32>
    %cst_84 = arith.constant 1.000000e+00 : f32
    %310 = vector.broadcast %cst_84 : f32 to vector<4x16xf32>
    %311 = arith.addf %310, %309 : vector<4x16xf32>
    %312 = arith.divf %310, %311 : vector<4x16xf32>
    %313 = vector.extract_strided_slice %300 {offsets = [0, 32], sizes = [4, 16], strides = [1, 1]} : vector<4x64xf32> to vector<4x16xf32>
    %314 = math.tanh %313 : vector<4x16xf32>
    %315 = vector.extract_strided_slice %300 {offsets = [0, 48], sizes = [4, 16], strides = [1, 1]} : vector<4x64xf32> to vector<4x16xf32>
    %316 = arith.negf %315 : vector<4x16xf32>
    %317 = math.exp %316 : vector<4x16xf32>
    %cst_85 = arith.constant 1.000000e+00 : f32
    %318 = vector.broadcast %cst_85 : f32 to vector<4x16xf32>
    %319 = arith.addf %318, %317 : vector<4x16xf32>
    %320 = arith.divf %318, %319 : vector<4x16xf32>
    %321 = arith.mulf %312, %295 : vector<4x16xf32>
    %322 = arith.mulf %306, %314 : vector<4x16xf32>
    %323 = arith.addf %321, %322 : vector<4x16xf32>
    %324 = math.tanh %323 : vector<4x16xf32>
    %325 = arith.mulf %320, %324 : vector<4x16xf32>
    %326 = vector.extract_strided_slice %126 {offsets = [0, 0], sizes = [4, 64], strides = [1, 1]} : vector<4x128xf32> to vector<4x64xf32>
    %cst_86 = arith.constant dense<0.000000e+00> : vector<4x64xf32>
    %327 = tpu.matmul %325, %128, %cst_86 {dimension_numbers = #tpu.dot_dimension_numbers<[1], [0], [0], [1], [0, 0, 1, 1], [], []>} : vector<4x16xf32>, vector<16x64xf32>, vector<4x64xf32> -> vector<4x64xf32>
    %328 = arith.addf %326, %327 : vector<4x64xf32>
    %329 = vector.extract_strided_slice %328 {offsets = [0, 0], sizes = [4, 16], strides = [1, 1]} : vector<4x64xf32> to vector<4x16xf32>
    %330 = arith.negf %329 : vector<4x16xf32>
    %331 = math.exp %330 : vector<4x16xf32>
    %cst_87 = arith.constant 1.000000e+00 : f32
    %332 = vector.broadcast %cst_87 : f32 to vector<4x16xf32>
    %333 = arith.addf %332, %331 : vector<4x16xf32>
    %334 = arith.divf %332, %333 : vector<4x16xf32>
    %335 = vector.extract_strided_slice %328 {offsets = [0, 16], sizes = [4, 16], strides = [1, 1]} : vector<4x64xf32> to vector<4x16xf32>
    %336 = arith.negf %335 : vector<4x16xf32>
    %337 = math.exp %336 : vector<4x16xf32>
    %cst_88 = arith.constant 1.000000e+00 : f32
    %338 = vector.broadcast %cst_88 : f32 to vector<4x16xf32>
    %339 = arith.addf %338, %337 : vector<4x16xf32>
    %340 = arith.divf %338, %339 : vector<4x16xf32>
    %341 = vector.extract_strided_slice %328 {offsets = [0, 32], sizes = [4, 16], strides = [1, 1]} : vector<4x64xf32> to vector<4x16xf32>
    %342 = math.tanh %341 : vector<4x16xf32>
    %343 = vector.extract_strided_slice %328 {offsets = [0, 48], sizes = [4, 16], strides = [1, 1]} : vector<4x64xf32> to vector<4x16xf32>
    %344 = arith.negf %343 : vector<4x16xf32>
    %345 = math.exp %344 : vector<4x16xf32>
    %cst_89 = arith.constant 1.000000e+00 : f32
    %346 = vector.broadcast %cst_89 : f32 to vector<4x16xf32>
    %347 = arith.addf %346, %345 : vector<4x16xf32>
    %348 = arith.divf %346, %347 : vector<4x16xf32>
    %349 = arith.mulf %340, %323 : vector<4x16xf32>
    %350 = arith.mulf %334, %342 : vector<4x16xf32>
    %351 = arith.addf %349, %350 : vector<4x16xf32>
    %352 = math.tanh %351 : vector<4x16xf32>
    %353 = arith.mulf %348, %352 : vector<4x16xf32>
    %c0_90 = arith.constant 0 : index
    %c0_91 = arith.constant 0 : index
    %354 = vector.load %arg10[%c0_90, %c0_91] : memref<32x2xf32, #tpu.memory_space<vmem>>, vector<32x2xf32>
    %355 = vector.extract_strided_slice %354 {offsets = [0, 0], sizes = [16, 2], strides = [1, 1]} : vector<32x2xf32> to vector<16x2xf32>
    %356 = vector.extract_strided_slice %354 {offsets = [16, 0], sizes = [16, 2], strides = [1, 1]} : vector<32x2xf32> to vector<16x2xf32>
    %c0_92 = arith.constant 0 : index
    %c0_93 = arith.constant 0 : index
    %357 = vector.load %arg11[%c0_92, %c0_93] : memref<1x2xf32, #tpu.memory_space<vmem>>, vector<1x2xf32>
    %358 = vector.extract_strided_slice %126 {offsets = [0, 64], sizes = [4, 64], strides = [1, 1]} : vector<4x128xf32> to vector<4x64xf32>
    %cst_94 = arith.constant dense<0.000000e+00> : vector<4x64xf32>
    %359 = tpu.matmul %127, %129, %cst_94 {dimension_numbers = #tpu.dot_dimension_numbers<[1], [0], [0], [1], [0, 0, 1, 1], [], []>} : vector<4x16xf32>, vector<16x64xf32>, vector<4x64xf32> -> vector<4x64xf32>
    %360 = arith.addf %358, %359 : vector<4x64xf32>
    %361 = vector.extract_strided_slice %360 {offsets = [0, 0], sizes = [4, 16], strides = [1, 1]} : vector<4x64xf32> to vector<4x16xf32>
    %362 = arith.negf %361 : vector<4x16xf32>
    %363 = math.exp %362 : vector<4x16xf32>
    %cst_95 = arith.constant 1.000000e+00 : f32
    %364 = vector.broadcast %cst_95 : f32 to vector<4x16xf32>
    %365 = arith.addf %364, %363 : vector<4x16xf32>
    %366 = arith.divf %364, %365 : vector<4x16xf32>
    %367 = vector.extract_strided_slice %360 {offsets = [0, 16], sizes = [4, 16], strides = [1, 1]} : vector<4x64xf32> to vector<4x16xf32>
    %368 = arith.negf %367 : vector<4x16xf32>
    %369 = math.exp %368 : vector<4x16xf32>
    %cst_96 = arith.constant 1.000000e+00 : f32
    %370 = vector.broadcast %cst_96 : f32 to vector<4x16xf32>
    %371 = arith.addf %370, %369 : vector<4x16xf32>
    %372 = arith.divf %370, %371 : vector<4x16xf32>
    %373 = vector.extract_strided_slice %360 {offsets = [0, 32], sizes = [4, 16], strides = [1, 1]} : vector<4x64xf32> to vector<4x16xf32>
    %374 = math.tanh %373 : vector<4x16xf32>
    %375 = vector.extract_strided_slice %360 {offsets = [0, 48], sizes = [4, 16], strides = [1, 1]} : vector<4x64xf32> to vector<4x16xf32>
    %376 = arith.negf %375 : vector<4x16xf32>
    %377 = math.exp %376 : vector<4x16xf32>
    %cst_97 = arith.constant 1.000000e+00 : f32
    %378 = vector.broadcast %cst_97 : f32 to vector<4x16xf32>
    %379 = arith.addf %378, %377 : vector<4x16xf32>
    %380 = arith.divf %378, %379 : vector<4x16xf32>
    %381 = arith.mulf %372, %127 : vector<4x16xf32>
    %382 = arith.mulf %366, %374 : vector<4x16xf32>
    %383 = arith.addf %381, %382 : vector<4x16xf32>
    %384 = math.tanh %383 : vector<4x16xf32>
    %385 = arith.mulf %380, %384 : vector<4x16xf32>
    %cst_98 = arith.constant dense<0.000000e+00> : vector<4x2xf32>
    %386 = tpu.matmul %353, %355, %cst_98 {dimension_numbers = #tpu.dot_dimension_numbers<[1], [0], [0], [1], [0, 0, 1, 1], [], []>} : vector<4x16xf32>, vector<16x2xf32>, vector<4x2xf32> -> vector<4x2xf32>
    %cst_99 = arith.constant dense<0.000000e+00> : vector<4x2xf32>
    %387 = tpu.matmul %385, %356, %cst_99 {dimension_numbers = #tpu.dot_dimension_numbers<[1], [0], [0], [1], [0, 0, 1, 1], [], []>} : vector<4x16xf32>, vector<16x2xf32>, vector<4x2xf32> -> vector<4x2xf32>
    %388 = arith.addf %386, %387 : vector<4x2xf32>
    %389 = vector.broadcast %357 : vector<1x2xf32> to vector<4x2xf32>
    %390 = arith.addf %388, %389 : vector<4x2xf32>
    %c7 = arith.constant 7 : index
    %c0_100 = arith.constant 0 : index
    %c0_101 = arith.constant 0 : index
    %391 = vector.load %arg12[%c7, %c0_100, %c0_101] : memref<8x4x2xf32, #tpu.memory_space<vmem>>, vector<1x4x2xf32>
    %392 = vector.shape_cast %391 : vector<1x4x2xf32> to vector<4x2xf32>
    %393 = vector.shape_cast %390 : vector<4x2xf32> to vector<1x4x2xf32>
    tpu.vector_store %arg12[%c7, %c0_100, %c0_101], %393 {strides = array<i32>} : memref<8x4x2xf32, #tpu.memory_space<vmem>>, vector<1x4x2xf32>,
    %394 = vector.extract_strided_slice %111 {offsets = [0, 64], sizes = [4, 64], strides = [1, 1]} : vector<4x128xf32> to vector<4x64xf32>
    %cst_102 = arith.constant dense<0.000000e+00> : vector<4x64xf32>
    %395 = tpu.matmul %385, %129, %cst_102 {dimension_numbers = #tpu.dot_dimension_numbers<[1], [0], [0], [1], [0, 0, 1, 1], [], []>} : vector<4x16xf32>, vector<16x64xf32>, vector<4x64xf32> -> vector<4x64xf32>
    %396 = arith.addf %394, %395 : vector<4x64xf32>
    %397 = vector.extract_strided_slice %396 {offsets = [0, 0], sizes = [4, 16], strides = [1, 1]} : vector<4x64xf32> to vector<4x16xf32>
    %398 = arith.negf %397 : vector<4x16xf32>
    %399 = math.exp %398 : vector<4x16xf32>
    %cst_103 = arith.constant 1.000000e+00 : f32
    %400 = vector.broadcast %cst_103 : f32 to vector<4x16xf32>
    %401 = arith.addf %400, %399 : vector<4x16xf32>
    %402 = arith.divf %400, %401 : vector<4x16xf32>
    %403 = vector.extract_strided_slice %396 {offsets = [0, 16], sizes = [4, 16], strides = [1, 1]} : vector<4x64xf32> to vector<4x16xf32>
    %404 = arith.negf %403 : vector<4x16xf32>
    %405 = math.exp %404 : vector<4x16xf32>
    %cst_104 = arith.constant 1.000000e+00 : f32
    %406 = vector.broadcast %cst_104 : f32 to vector<4x16xf32>
    %407 = arith.addf %406, %405 : vector<4x16xf32>
    %408 = arith.divf %406, %407 : vector<4x16xf32>
    %409 = vector.extract_strided_slice %396 {offsets = [0, 32], sizes = [4, 16], strides = [1, 1]} : vector<4x64xf32> to vector<4x16xf32>
    %410 = math.tanh %409 : vector<4x16xf32>
    %411 = vector.extract_strided_slice %396 {offsets = [0, 48], sizes = [4, 16], strides = [1, 1]} : vector<4x64xf32> to vector<4x16xf32>
    %412 = arith.negf %411 : vector<4x16xf32>
    %413 = math.exp %412 : vector<4x16xf32>
    %cst_105 = arith.constant 1.000000e+00 : f32
    %414 = vector.broadcast %cst_105 : f32 to vector<4x16xf32>
    %415 = arith.addf %414, %413 : vector<4x16xf32>
    %416 = arith.divf %414, %415 : vector<4x16xf32>
    %417 = arith.mulf %408, %383 : vector<4x16xf32>
    %418 = arith.mulf %402, %410 : vector<4x16xf32>
    %419 = arith.addf %417, %418 : vector<4x16xf32>
    %420 = math.tanh %419 : vector<4x16xf32>
    %421 = arith.mulf %416, %420 : vector<4x16xf32>
    %cst_106 = arith.constant dense<0.000000e+00> : vector<4x2xf32>
    %422 = tpu.matmul %325, %355, %cst_106 {dimension_numbers = #tpu.dot_dimension_numbers<[1], [0], [0], [1], [0, 0, 1, 1], [], []>} : vector<4x16xf32>, vector<16x2xf32>, vector<4x2xf32> -> vector<4x2xf32>
    %cst_107 = arith.constant dense<0.000000e+00> : vector<4x2xf32>
    %423 = tpu.matmul %421, %356, %cst_107 {dimension_numbers = #tpu.dot_dimension_numbers<[1], [0], [0], [1], [0, 0, 1, 1], [], []>} : vector<4x16xf32>, vector<16x2xf32>, vector<4x2xf32> -> vector<4x2xf32>
    %424 = arith.addf %422, %423 : vector<4x2xf32>
    %425 = vector.broadcast %357 : vector<1x2xf32> to vector<4x2xf32>
    %426 = arith.addf %424, %425 : vector<4x2xf32>
    %c6 = arith.constant 6 : index
    %c0_108 = arith.constant 0 : index
    %c0_109 = arith.constant 0 : index
    %427 = vector.load %arg12[%c6, %c0_108, %c0_109] : memref<8x4x2xf32, #tpu.memory_space<vmem>>, vector<1x4x2xf32>
    %428 = vector.shape_cast %427 : vector<1x4x2xf32> to vector<4x2xf32>
    %429 = vector.shape_cast %426 : vector<4x2xf32> to vector<1x4x2xf32>
    tpu.vector_store %arg12[%c6, %c0_108, %c0_109], %429 {strides = array<i32>} : memref<8x4x2xf32, #tpu.memory_space<vmem>>, vector<1x4x2xf32>,
    %430 = vector.extract_strided_slice %96 {offsets = [0, 64], sizes = [4, 64], strides = [1, 1]} : vector<4x128xf32> to vector<4x64xf32>
    %cst_110 = arith.constant dense<0.000000e+00> : vector<4x64xf32>
    %431 = tpu.matmul %421, %129, %cst_110 {dimension_numbers = #tpu.dot_dimension_numbers<[1], [0], [0], [1], [0, 0, 1, 1], [], []>} : vector<4x16xf32>, vector<16x64xf32>, vector<4x64xf32> -> vector<4x64xf32>
    %432 = arith.addf %430, %431 : vector<4x64xf32>
    %433 = vector.extract_strided_slice %432 {offsets = [0, 0], sizes = [4, 16], strides = [1, 1]} : vector<4x64xf32> to vector<4x16xf32>
    %434 = arith.negf %433 : vector<4x16xf32>
    %435 = math.exp %434 : vector<4x16xf32>
    %cst_111 = arith.constant 1.000000e+00 : f32
    %436 = vector.broadcast %cst_111 : f32 to vector<4x16xf32>
    %437 = arith.addf %436, %435 : vector<4x16xf32>
    %438 = arith.divf %436, %437 : vector<4x16xf32>
    %439 = vector.extract_strided_slice %432 {offsets = [0, 16], sizes = [4, 16], strides = [1, 1]} : vector<4x64xf32> to vector<4x16xf32>
    %440 = arith.negf %439 : vector<4x16xf32>
    %441 = math.exp %440 : vector<4x16xf32>
    %cst_112 = arith.constant 1.000000e+00 : f32
    %442 = vector.broadcast %cst_112 : f32 to vector<4x16xf32>
    %443 = arith.addf %442, %441 : vector<4x16xf32>
    %444 = arith.divf %442, %443 : vector<4x16xf32>
    %445 = vector.extract_strided_slice %432 {offsets = [0, 32], sizes = [4, 16], strides = [1, 1]} : vector<4x64xf32> to vector<4x16xf32>
    %446 = math.tanh %445 : vector<4x16xf32>
    %447 = vector.extract_strided_slice %432 {offsets = [0, 48], sizes = [4, 16], strides = [1, 1]} : vector<4x64xf32> to vector<4x16xf32>
    %448 = arith.negf %447 : vector<4x16xf32>
    %449 = math.exp %448 : vector<4x16xf32>
    %cst_113 = arith.constant 1.000000e+00 : f32
    %450 = vector.broadcast %cst_113 : f32 to vector<4x16xf32>
    %451 = arith.addf %450, %449 : vector<4x16xf32>
    %452 = arith.divf %450, %451 : vector<4x16xf32>
    %453 = arith.mulf %444, %419 : vector<4x16xf32>
    %454 = arith.mulf %438, %446 : vector<4x16xf32>
    %455 = arith.addf %453, %454 : vector<4x16xf32>
    %456 = math.tanh %455 : vector<4x16xf32>
    %457 = arith.mulf %452, %456 : vector<4x16xf32>
    %cst_114 = arith.constant dense<0.000000e+00> : vector<4x2xf32>
    %458 = tpu.matmul %297, %355, %cst_114 {dimension_numbers = #tpu.dot_dimension_numbers<[1], [0], [0], [1], [0, 0, 1, 1], [], []>} : vector<4x16xf32>, vector<16x2xf32>, vector<4x2xf32> -> vector<4x2xf32>
    %cst_115 = arith.constant dense<0.000000e+00> : vector<4x2xf32>
    %459 = tpu.matmul %457, %356, %cst_115 {dimension_numbers = #tpu.dot_dimension_numbers<[1], [0], [0], [1], [0, 0, 1, 1], [], []>} : vector<4x16xf32>, vector<16x2xf32>, vector<4x2xf32> -> vector<4x2xf32>
    %460 = arith.addf %458, %459 : vector<4x2xf32>
    %461 = vector.broadcast %357 : vector<1x2xf32> to vector<4x2xf32>
    %462 = arith.addf %460, %461 : vector<4x2xf32>
    %c5 = arith.constant 5 : index
    %c0_116 = arith.constant 0 : index
    %c0_117 = arith.constant 0 : index
    %463 = vector.load %arg12[%c5, %c0_116, %c0_117] : memref<8x4x2xf32, #tpu.memory_space<vmem>>, vector<1x4x2xf32>
    %464 = vector.shape_cast %463 : vector<1x4x2xf32> to vector<4x2xf32>
    %465 = vector.shape_cast %462 : vector<4x2xf32> to vector<1x4x2xf32>
    tpu.vector_store %arg12[%c5, %c0_116, %c0_117], %465 {strides = array<i32>} : memref<8x4x2xf32, #tpu.memory_space<vmem>>, vector<1x4x2xf32>,
    %466 = vector.extract_strided_slice %81 {offsets = [0, 64], sizes = [4, 64], strides = [1, 1]} : vector<4x128xf32> to vector<4x64xf32>
    %cst_118 = arith.constant dense<0.000000e+00> : vector<4x64xf32>
    %467 = tpu.matmul %457, %129, %cst_118 {dimension_numbers = #tpu.dot_dimension_numbers<[1], [0], [0], [1], [0, 0, 1, 1], [], []>} : vector<4x16xf32>, vector<16x64xf32>, vector<4x64xf32> -> vector<4x64xf32>
    %468 = arith.addf %466, %467 : vector<4x64xf32>
    %469 = vector.extract_strided_slice %468 {offsets = [0, 0], sizes = [4, 16], strides = [1, 1]} : vector<4x64xf32> to vector<4x16xf32>
    %470 = arith.negf %469 : vector<4x16xf32>
    %471 = math.exp %470 : vector<4x16xf32>
    %cst_119 = arith.constant 1.000000e+00 : f32
    %472 = vector.broadcast %cst_119 : f32 to vector<4x16xf32>
    %473 = arith.addf %472, %471 : vector<4x16xf32>
    %474 = arith.divf %472, %473 : vector<4x16xf32>
    %475 = vector.extract_strided_slice %468 {offsets = [0, 16], sizes = [4, 16], strides = [1, 1]} : vector<4x64xf32> to vector<4x16xf32>
    %476 = arith.negf %475 : vector<4x16xf32>
    %477 = math.exp %476 : vector<4x16xf32>
    %cst_120 = arith.constant 1.000000e+00 : f32
    %478 = vector.broadcast %cst_120 : f32 to vector<4x16xf32>
    %479 = arith.addf %478, %477 : vector<4x16xf32>
    %480 = arith.divf %478, %479 : vector<4x16xf32>
    %481 = vector.extract_strided_slice %468 {offsets = [0, 32], sizes = [4, 16], strides = [1, 1]} : vector<4x64xf32> to vector<4x16xf32>
    %482 = math.tanh %481 : vector<4x16xf32>
    %483 = vector.extract_strided_slice %468 {offsets = [0, 48], sizes = [4, 16], strides = [1, 1]} : vector<4x64xf32> to vector<4x16xf32>
    %484 = arith.negf %483 : vector<4x16xf32>
    %485 = math.exp %484 : vector<4x16xf32>
    %cst_121 = arith.constant 1.000000e+00 : f32
    %486 = vector.broadcast %cst_121 : f32 to vector<4x16xf32>
    %487 = arith.addf %486, %485 : vector<4x16xf32>
    %488 = arith.divf %486, %487 : vector<4x16xf32>
    %489 = arith.mulf %480, %455 : vector<4x16xf32>
    %490 = arith.mulf %474, %482 : vector<4x16xf32>
    %491 = arith.addf %489, %490 : vector<4x16xf32>
    %492 = math.tanh %491 : vector<4x16xf32>
    %493 = arith.mulf %488, %492 : vector<4x16xf32>
    %cst_122 = arith.constant dense<0.000000e+00> : vector<4x2xf32>
    %494 = tpu.matmul %269, %355, %cst_122 {dimension_numbers = #tpu.dot_dimension_numbers<[1], [0], [0], [1], [0, 0, 1, 1], [], []>} : vector<4x16xf32>, vector<16x2xf32>, vector<4x2xf32> -> vector<4x2xf32>
    %cst_123 = arith.constant dense<0.000000e+00> : vector<4x2xf32>
    %495 = tpu.matmul %493, %356, %cst_123 {dimension_numbers = #tpu.dot_dimension_numbers<[1], [0], [0], [1], [0, 0, 1, 1], [], []>} : vector<4x16xf32>, vector<16x2xf32>, vector<4x2xf32> -> vector<4x2xf32>
    %496 = arith.addf %494, %495 : vector<4x2xf32>
    %497 = vector.broadcast %357 : vector<1x2xf32> to vector<4x2xf32>
    %498 = arith.addf %496, %497 : vector<4x2xf32>
    %c4 = arith.constant 4 : index
    %c0_124 = arith.constant 0 : index
    %c0_125 = arith.constant 0 : index
    %499 = vector.load %arg12[%c4, %c0_124, %c0_125] : memref<8x4x2xf32, #tpu.memory_space<vmem>>, vector<1x4x2xf32>
    %500 = vector.shape_cast %499 : vector<1x4x2xf32> to vector<4x2xf32>
    %501 = vector.shape_cast %498 : vector<4x2xf32> to vector<1x4x2xf32>
    tpu.vector_store %arg12[%c4, %c0_124, %c0_125], %501 {strides = array<i32>} : memref<8x4x2xf32, #tpu.memory_space<vmem>>, vector<1x4x2xf32>,
    %502 = vector.extract_strided_slice %66 {offsets = [0, 64], sizes = [4, 64], strides = [1, 1]} : vector<4x128xf32> to vector<4x64xf32>
    %cst_126 = arith.constant dense<0.000000e+00> : vector<4x64xf32>
    %503 = tpu.matmul %493, %129, %cst_126 {dimension_numbers = #tpu.dot_dimension_numbers<[1], [0], [0], [1], [0, 0, 1, 1], [], []>} : vector<4x16xf32>, vector<16x64xf32>, vector<4x64xf32> -> vector<4x64xf32>
    %504 = arith.addf %502, %503 : vector<4x64xf32>
    %505 = vector.extract_strided_slice %504 {offsets = [0, 0], sizes = [4, 16], strides = [1, 1]} : vector<4x64xf32> to vector<4x16xf32>
    %506 = arith.negf %505 : vector<4x16xf32>
    %507 = math.exp %506 : vector<4x16xf32>
    %cst_127 = arith.constant 1.000000e+00 : f32
    %508 = vector.broadcast %cst_127 : f32 to vector<4x16xf32>
    %509 = arith.addf %508, %507 : vector<4x16xf32>
    %510 = arith.divf %508, %509 : vector<4x16xf32>
    %511 = vector.extract_strided_slice %504 {offsets = [0, 16], sizes = [4, 16], strides = [1, 1]} : vector<4x64xf32> to vector<4x16xf32>
    %512 = arith.negf %511 : vector<4x16xf32>
    %513 = math.exp %512 : vector<4x16xf32>
    %cst_128 = arith.constant 1.000000e+00 : f32
    %514 = vector.broadcast %cst_128 : f32 to vector<4x16xf32>
    %515 = arith.addf %514, %513 : vector<4x16xf32>
    %516 = arith.divf %514, %515 : vector<4x16xf32>
    %517 = vector.extract_strided_slice %504 {offsets = [0, 32], sizes = [4, 16], strides = [1, 1]} : vector<4x64xf32> to vector<4x16xf32>
    %518 = math.tanh %517 : vector<4x16xf32>
    %519 = vector.extract_strided_slice %504 {offsets = [0, 48], sizes = [4, 16], strides = [1, 1]} : vector<4x64xf32> to vector<4x16xf32>
    %520 = arith.negf %519 : vector<4x16xf32>
    %521 = math.exp %520 : vector<4x16xf32>
    %cst_129 = arith.constant 1.000000e+00 : f32
    %522 = vector.broadcast %cst_129 : f32 to vector<4x16xf32>
    %523 = arith.addf %522, %521 : vector<4x16xf32>
    %524 = arith.divf %522, %523 : vector<4x16xf32>
    %525 = arith.mulf %516, %491 : vector<4x16xf32>
    %526 = arith.mulf %510, %518 : vector<4x16xf32>
    %527 = arith.addf %525, %526 : vector<4x16xf32>
    %528 = math.tanh %527 : vector<4x16xf32>
    %529 = arith.mulf %524, %528 : vector<4x16xf32>
    %cst_130 = arith.constant dense<0.000000e+00> : vector<4x2xf32>
    %530 = tpu.matmul %241, %355, %cst_130 {dimension_numbers = #tpu.dot_dimension_numbers<[1], [0], [0], [1], [0, 0, 1, 1], [], []>} : vector<4x16xf32>, vector<16x2xf32>, vector<4x2xf32> -> vector<4x2xf32>
    %cst_131 = arith.constant dense<0.000000e+00> : vector<4x2xf32>
    %531 = tpu.matmul %529, %356, %cst_131 {dimension_numbers = #tpu.dot_dimension_numbers<[1], [0], [0], [1], [0, 0, 1, 1], [], []>} : vector<4x16xf32>, vector<16x2xf32>, vector<4x2xf32> -> vector<4x2xf32>
    %532 = arith.addf %530, %531 : vector<4x2xf32>
    %533 = vector.broadcast %357 : vector<1x2xf32> to vector<4x2xf32>
    %534 = arith.addf %532, %533 : vector<4x2xf32>
    %c3 = arith.constant 3 : index
    %c0_132 = arith.constant 0 : index
    %c0_133 = arith.constant 0 : index
    %535 = vector.load %arg12[%c3, %c0_132, %c0_133] : memref<8x4x2xf32, #tpu.memory_space<vmem>>, vector<1x4x2xf32>
    %536 = vector.shape_cast %535 : vector<1x4x2xf32> to vector<4x2xf32>
    %537 = vector.shape_cast %534 : vector<4x2xf32> to vector<1x4x2xf32>
    tpu.vector_store %arg12[%c3, %c0_132, %c0_133], %537 {strides = array<i32>} : memref<8x4x2xf32, #tpu.memory_space<vmem>>, vector<1x4x2xf32>,
    %538 = vector.extract_strided_slice %51 {offsets = [0, 64], sizes = [4, 64], strides = [1, 1]} : vector<4x128xf32> to vector<4x64xf32>
    %cst_134 = arith.constant dense<0.000000e+00> : vector<4x64xf32>
    %539 = tpu.matmul %529, %129, %cst_134 {dimension_numbers = #tpu.dot_dimension_numbers<[1], [0], [0], [1], [0, 0, 1, 1], [], []>} : vector<4x16xf32>, vector<16x64xf32>, vector<4x64xf32> -> vector<4x64xf32>
    %540 = arith.addf %538, %539 : vector<4x64xf32>
    %541 = vector.extract_strided_slice %540 {offsets = [0, 0], sizes = [4, 16], strides = [1, 1]} : vector<4x64xf32> to vector<4x16xf32>
    %542 = arith.negf %541 : vector<4x16xf32>
    %543 = math.exp %542 : vector<4x16xf32>
    %cst_135 = arith.constant 1.000000e+00 : f32
    %544 = vector.broadcast %cst_135 : f32 to vector<4x16xf32>
    %545 = arith.addf %544, %543 : vector<4x16xf32>
    %546 = arith.divf %544, %545 : vector<4x16xf32>
    %547 = vector.extract_strided_slice %540 {offsets = [0, 16], sizes = [4, 16], strides = [1, 1]} : vector<4x64xf32> to vector<4x16xf32>
    %548 = arith.negf %547 : vector<4x16xf32>
    %549 = math.exp %548 : vector<4x16xf32>
    %cst_136 = arith.constant 1.000000e+00 : f32
    %550 = vector.broadcast %cst_136 : f32 to vector<4x16xf32>
    %551 = arith.addf %550, %549 : vector<4x16xf32>
    %552 = arith.divf %550, %551 : vector<4x16xf32>
    %553 = vector.extract_strided_slice %540 {offsets = [0, 32], sizes = [4, 16], strides = [1, 1]} : vector<4x64xf32> to vector<4x16xf32>
    %554 = math.tanh %553 : vector<4x16xf32>
    %555 = vector.extract_strided_slice %540 {offsets = [0, 48], sizes = [4, 16], strides = [1, 1]} : vector<4x64xf32> to vector<4x16xf32>
    %556 = arith.negf %555 : vector<4x16xf32>
    %557 = math.exp %556 : vector<4x16xf32>
    %cst_137 = arith.constant 1.000000e+00 : f32
    %558 = vector.broadcast %cst_137 : f32 to vector<4x16xf32>
    %559 = arith.addf %558, %557 : vector<4x16xf32>
    %560 = arith.divf %558, %559 : vector<4x16xf32>
    %561 = arith.mulf %552, %527 : vector<4x16xf32>
    %562 = arith.mulf %546, %554 : vector<4x16xf32>
    %563 = arith.addf %561, %562 : vector<4x16xf32>
    %564 = math.tanh %563 : vector<4x16xf32>
    %565 = arith.mulf %560, %564 : vector<4x16xf32>
    %cst_138 = arith.constant dense<0.000000e+00> : vector<4x2xf32>
    %566 = tpu.matmul %213, %355, %cst_138 {dimension_numbers = #tpu.dot_dimension_numbers<[1], [0], [0], [1], [0, 0, 1, 1], [], []>} : vector<4x16xf32>, vector<16x2xf32>, vector<4x2xf32> -> vector<4x2xf32>
    %cst_139 = arith.constant dense<0.000000e+00> : vector<4x2xf32>
    %567 = tpu.matmul %565, %356, %cst_139 {dimension_numbers = #tpu.dot_dimension_numbers<[1], [0], [0], [1], [0, 0, 1, 1], [], []>} : vector<4x16xf32>, vector<16x2xf32>, vector<4x2xf32> -> vector<4x2xf32>
    %568 = arith.addf %566, %567 : vector<4x2xf32>
    %569 = vector.broadcast %357 : vector<1x2xf32> to vector<4x2xf32>
    %570 = arith.addf %568, %569 : vector<4x2xf32>
    %c2 = arith.constant 2 : index
    %c0_140 = arith.constant 0 : index
    %c0_141 = arith.constant 0 : index
    %571 = vector.load %arg12[%c2, %c0_140, %c0_141] : memref<8x4x2xf32, #tpu.memory_space<vmem>>, vector<1x4x2xf32>
    %572 = vector.shape_cast %571 : vector<1x4x2xf32> to vector<4x2xf32>
    %573 = vector.shape_cast %570 : vector<4x2xf32> to vector<1x4x2xf32>
    tpu.vector_store %arg12[%c2, %c0_140, %c0_141], %573 {strides = array<i32>} : memref<8x4x2xf32, #tpu.memory_space<vmem>>, vector<1x4x2xf32>,
    %574 = vector.extract_strided_slice %36 {offsets = [0, 64], sizes = [4, 64], strides = [1, 1]} : vector<4x128xf32> to vector<4x64xf32>
    %cst_142 = arith.constant dense<0.000000e+00> : vector<4x64xf32>
    %575 = tpu.matmul %565, %129, %cst_142 {dimension_numbers = #tpu.dot_dimension_numbers<[1], [0], [0], [1], [0, 0, 1, 1], [], []>} : vector<4x16xf32>, vector<16x64xf32>, vector<4x64xf32> -> vector<4x64xf32>
    %576 = arith.addf %574, %575 : vector<4x64xf32>
    %577 = vector.extract_strided_slice %576 {offsets = [0, 0], sizes = [4, 16], strides = [1, 1]} : vector<4x64xf32> to vector<4x16xf32>
    %578 = arith.negf %577 : vector<4x16xf32>
    %579 = math.exp %578 : vector<4x16xf32>
    %cst_143 = arith.constant 1.000000e+00 : f32
    %580 = vector.broadcast %cst_143 : f32 to vector<4x16xf32>
    %581 = arith.addf %580, %579 : vector<4x16xf32>
    %582 = arith.divf %580, %581 : vector<4x16xf32>
    %583 = vector.extract_strided_slice %576 {offsets = [0, 16], sizes = [4, 16], strides = [1, 1]} : vector<4x64xf32> to vector<4x16xf32>
    %584 = arith.negf %583 : vector<4x16xf32>
    %585 = math.exp %584 : vector<4x16xf32>
    %cst_144 = arith.constant 1.000000e+00 : f32
    %586 = vector.broadcast %cst_144 : f32 to vector<4x16xf32>
    %587 = arith.addf %586, %585 : vector<4x16xf32>
    %588 = arith.divf %586, %587 : vector<4x16xf32>
    %589 = vector.extract_strided_slice %576 {offsets = [0, 32], sizes = [4, 16], strides = [1, 1]} : vector<4x64xf32> to vector<4x16xf32>
    %590 = math.tanh %589 : vector<4x16xf32>
    %591 = vector.extract_strided_slice %576 {offsets = [0, 48], sizes = [4, 16], strides = [1, 1]} : vector<4x64xf32> to vector<4x16xf32>
    %592 = arith.negf %591 : vector<4x16xf32>
    %593 = math.exp %592 : vector<4x16xf32>
    %cst_145 = arith.constant 1.000000e+00 : f32
    %594 = vector.broadcast %cst_145 : f32 to vector<4x16xf32>
    %595 = arith.addf %594, %593 : vector<4x16xf32>
    %596 = arith.divf %594, %595 : vector<4x16xf32>
    %597 = arith.mulf %588, %563 : vector<4x16xf32>
    %598 = arith.mulf %582, %590 : vector<4x16xf32>
    %599 = arith.addf %597, %598 : vector<4x16xf32>
    %600 = math.tanh %599 : vector<4x16xf32>
    %601 = arith.mulf %596, %600 : vector<4x16xf32>
    %cst_146 = arith.constant dense<0.000000e+00> : vector<4x2xf32>
    %602 = tpu.matmul %185, %355, %cst_146 {dimension_numbers = #tpu.dot_dimension_numbers<[1], [0], [0], [1], [0, 0, 1, 1], [], []>} : vector<4x16xf32>, vector<16x2xf32>, vector<4x2xf32> -> vector<4x2xf32>
    %cst_147 = arith.constant dense<0.000000e+00> : vector<4x2xf32>
    %603 = tpu.matmul %601, %356, %cst_147 {dimension_numbers = #tpu.dot_dimension_numbers<[1], [0], [0], [1], [0, 0, 1, 1], [], []>} : vector<4x16xf32>, vector<16x2xf32>, vector<4x2xf32> -> vector<4x2xf32>
    %604 = arith.addf %602, %603 : vector<4x2xf32>
    %605 = vector.broadcast %357 : vector<1x2xf32> to vector<4x2xf32>
    %606 = arith.addf %604, %605 : vector<4x2xf32>
    %c1 = arith.constant 1 : index
    %c0_148 = arith.constant 0 : index
    %c0_149 = arith.constant 0 : index
    %607 = vector.load %arg12[%c1, %c0_148, %c0_149] : memref<8x4x2xf32, #tpu.memory_space<vmem>>, vector<1x4x2xf32>
    %608 = vector.shape_cast %607 : vector<1x4x2xf32> to vector<4x2xf32>
    %609 = vector.shape_cast %606 : vector<4x2xf32> to vector<1x4x2xf32>
    tpu.vector_store %arg12[%c1, %c0_148, %c0_149], %609 {strides = array<i32>} : memref<8x4x2xf32, #tpu.memory_space<vmem>>, vector<1x4x2xf32>,
    %610 = vector.extract_strided_slice %21 {offsets = [0, 64], sizes = [4, 64], strides = [1, 1]} : vector<4x128xf32> to vector<4x64xf32>
    %cst_150 = arith.constant dense<0.000000e+00> : vector<4x64xf32>
    %611 = tpu.matmul %601, %129, %cst_150 {dimension_numbers = #tpu.dot_dimension_numbers<[1], [0], [0], [1], [0, 0, 1, 1], [], []>} : vector<4x16xf32>, vector<16x64xf32>, vector<4x64xf32> -> vector<4x64xf32>
    %612 = arith.addf %610, %611 : vector<4x64xf32>
    %613 = vector.extract_strided_slice %612 {offsets = [0, 0], sizes = [4, 16], strides = [1, 1]} : vector<4x64xf32> to vector<4x16xf32>
    %614 = arith.negf %613 : vector<4x16xf32>
    %615 = math.exp %614 : vector<4x16xf32>
    %cst_151 = arith.constant 1.000000e+00 : f32
    %616 = vector.broadcast %cst_151 : f32 to vector<4x16xf32>
    %617 = arith.addf %616, %615 : vector<4x16xf32>
    %618 = arith.divf %616, %617 : vector<4x16xf32>
    %619 = vector.extract_strided_slice %612 {offsets = [0, 16], sizes = [4, 16], strides = [1, 1]} : vector<4x64xf32> to vector<4x16xf32>
    %620 = arith.negf %619 : vector<4x16xf32>
    %621 = math.exp %620 : vector<4x16xf32>
    %cst_152 = arith.constant 1.000000e+00 : f32
    %622 = vector.broadcast %cst_152 : f32 to vector<4x16xf32>
    %623 = arith.addf %622, %621 : vector<4x16xf32>
    %624 = arith.divf %622, %623 : vector<4x16xf32>
    %625 = vector.extract_strided_slice %612 {offsets = [0, 32], sizes = [4, 16], strides = [1, 1]} : vector<4x64xf32> to vector<4x16xf32>
    %626 = math.tanh %625 : vector<4x16xf32>
    %627 = vector.extract_strided_slice %612 {offsets = [0, 48], sizes = [4, 16], strides = [1, 1]} : vector<4x64xf32> to vector<4x16xf32>
    %628 = arith.negf %627 : vector<4x16xf32>
    %629 = math.exp %628 : vector<4x16xf32>
    %cst_153 = arith.constant 1.000000e+00 : f32
    %630 = vector.broadcast %cst_153 : f32 to vector<4x16xf32>
    %631 = arith.addf %630, %629 : vector<4x16xf32>
    %632 = arith.divf %630, %631 : vector<4x16xf32>
    %633 = arith.mulf %624, %599 : vector<4x16xf32>
    %634 = arith.mulf %618, %626 : vector<4x16xf32>
    %635 = arith.addf %633, %634 : vector<4x16xf32>
    %636 = math.tanh %635 : vector<4x16xf32>
    %637 = arith.mulf %632, %636 : vector<4x16xf32>
    %cst_154 = arith.constant dense<0.000000e+00> : vector<4x2xf32>
    %638 = tpu.matmul %157, %355, %cst_154 {dimension_numbers = #tpu.dot_dimension_numbers<[1], [0], [0], [1], [0, 0, 1, 1], [], []>} : vector<4x16xf32>, vector<16x2xf32>, vector<4x2xf32> -> vector<4x2xf32>
    %cst_155 = arith.constant dense<0.000000e+00> : vector<4x2xf32>
    %639 = tpu.matmul %637, %356, %cst_155 {dimension_numbers = #tpu.dot_dimension_numbers<[1], [0], [0], [1], [0, 0, 1, 1], [], []>} : vector<4x16xf32>, vector<16x2xf32>, vector<4x2xf32> -> vector<4x2xf32>
    %640 = arith.addf %638, %639 : vector<4x2xf32>
    %641 = vector.broadcast %357 : vector<1x2xf32> to vector<4x2xf32>
    %642 = arith.addf %640, %641 : vector<4x2xf32>
    %c0_156 = arith.constant 0 : index
    %c0_157 = arith.constant 0 : index
    %c0_158 = arith.constant 0 : index
    %643 = vector.load %arg12[%c0_156, %c0_157, %c0_158] : memref<8x4x2xf32, #tpu.memory_space<vmem>>, vector<1x4x2xf32>
    %644 = vector.shape_cast %643 : vector<1x4x2xf32> to vector<4x2xf32>
    %645 = vector.shape_cast %642 : vector<4x2xf32> to vector<1x4x2xf32>
    tpu.vector_store %arg12[%c0_156, %c0_157, %c0_158], %645 {strides = array<i32>} : memref<8x4x2xf32, #tpu.memory_space<vmem>>, vector<1x4x2xf32>,
    return
  }
  func.func @transform_0(%arg0: i32) -> (i32, i32, i32) {
    %c0_i32 = arith.constant 0 : i32
    %c0_i32_0 = arith.constant 0 : i32
    %c0_i32_1 = arith.constant 0 : i32
    %c0_i32_2 = arith.constant 0 : i32
    return %c0_i32, %c0_i32_0, %c0_i32_1 : i32, i32, i32
  }
  func.func @transform_1(%arg0: i32) -> (i32, i32) {
    %c0_i32 = arith.constant 0 : i32
    %c0_i32_0 = arith.constant 0 : i32
    %c0_i32_1 = arith.constant 0 : i32
    return %c0_i32, %c0_i32_0 : i32, i32
  }
  func.func @transform_2(%arg0: i32) -> (i32, i32) {
    %c0_i32 = arith.constant 0 : i32
    %c0_i32_0 = arith.constant 0 : i32
    %c0_i32_1 = arith.constant 0 : i32
    return %c0_i32, %c0_i32_0 : i32, i32
  }
  func.func @transform_3(%arg0: i32) -> (i32, i32) {
    %c0_i32 = arith.constant 0 : i32
    %c0_i32_0 = arith.constant 0 : i32
    %c0_i32_1 = arith.constant 0 : i32
    return %c0_i32, %c0_i32_0 : i32, i32
  }
  func.func @transform_4(%arg0: i32) -> (i32, i32) {
    %c0_i32 = arith.constant 0 : i32
    %c0_i32_0 = arith.constant 0 : i32
    %c0_i32_1 = arith.constant 0 : i32
    return %c0_i32, %c0_i32_0 : i32, i32
  }
  func.func @transform_5(%arg0: i32) -> (i32, i32) {
    %c0_i32 = arith.constant 0 : i32
    %c0_i32_0 = arith.constant 0 : i32
    %c0_i32_1 = arith.constant 0 : i32
    return %c0_i32, %c0_i32_0 : i32, i32
  }
  func.func @transform_6(%arg0: i32) -> (i32, i32) {
    %c0_i32 = arith.constant 0 : i32
    %c0_i32_0 = arith.constant 0 : i32
    %c0_i32_1 = arith.constant 0 : i32
    return %c0_i32, %c0_i32_0 : i32, i32
  }
  func.func @transform_7(%arg0: i32) -> (i32, i32) {
    %c0_i32 = arith.constant 0 : i32
    %c0_i32_0 = arith.constant 0 : i32
    %c0_i32_1 = arith.constant 0 : i32
    return %c0_i32, %c0_i32_0 : i32, i32
  }
  func.func @transform_8(%arg0: i32) -> (i32, i32) {
    %c0_i32 = arith.constant 0 : i32
    %c0_i32_0 = arith.constant 0 : i32
    %c0_i32_1 = arith.constant 0 : i32
    return %c0_i32, %c0_i32_0 : i32, i32
  }
  func.func @transform_9(%arg0: i32) -> (i32, i32) {
    %c0_i32 = arith.constant 0 : i32
    %c0_i32_0 = arith.constant 0 : i32
    %c0_i32_1 = arith.constant 0 : i32
    return %c0_i32, %c0_i32_0 : i32, i32
  }
  func.func @transform_10(%arg0: i32) -> (i32, i32) {
    %c0_i32 = arith.constant 0 : i32
    %c0_i32_0 = arith.constant 0 : i32
    %c0_i32_1 = arith.constant 0 : i32
    return %c0_i32, %c0_i32_0 : i32, i32
  }
  func.func @transform_11(%arg0: i32) -> (i32, i32, i32) {
    %c0_i32 = arith.constant 0 : i32
    %c0_i32_0 = arith.constant 0 : i32
    %c0_i32_1 = arith.constant 0 : i32
    %c0_i32_2 = arith.constant 0 : i32
    return %c0_i32, %c0_i32_0, %c0_i32_1 : i32, i32, i32
  }
}

</mosaic_0001>

<bundles_post_ra>
// kernel: mlp_lstm_forward.2
= control target key start
LH: loop header
LB: loop body
LE: loop exit
PB: predicated region body
PF: predicated region fallthrough
CT: control target
= control target key end

     0   :  { %v2276_v0 = vmov 0.0|0.0   ;;  %vm205_vm0 = vcmask 588800   ;;  %v2277_v38 = vmov 0.0   ;;  %vm1199_vm1 = vcmask 1043456   ;;  %s3577_s1 = inlined_call_operand.vmem [shape: f32[200,100], index: 1, kind: input, shape index: {}]   ;;  %s3578_s0 = inlined_call_operand.vmem [shape: f32[608,200], index: 0, kind: input, shape index: {}]   ;;  %s3579_s3 = inlined_call_operand.vmem [shape: f32[100,1], index: 3, kind: input, shape index: {}]   ;;  %s3580_s2 = inlined_call_operand.vmem [shape: f32[1,100], index: 2, kind: input, shape index: {}]   ;;  %s3581_s4 = inlined_call_operand.<no memory space> [shape: f32[1], index: 4, kind: input, shape index: {}]   ;;  %s3582_s5 = inlined_call_operand.vmem [shape: f32[608,1], index: 5, kind: output, shape index: {}]  }
   0x1   :  { %2188 = vmatprep.subr.bf16.mxu0 %v2276_v0  ;;  %v173_v1 = vld [vmem:[%s3577_s1] sm:$0xff]  ;;  %v174_v2 = vld [vmem:[%s3577_s1 + $0x8] sm:$0xff]  ;;  %v175_v3 = vld [vmem:[%s3577_s1 + $0x10] sm:$0xff]  ;;  %2248 = vmatprep.subr.bf16.mxu1 %v2276_v0  ;;  %vm970_vm2 = vcmask 818176   ;;  %vm1724_vm3 = vcmask 7168  }
   0x2   :  { %v2189_v4 = vpack.c.bf16 %v174_v2, %v173_v1  ;;  %v176_v5 = vld [vmem:[%s3577_s1 + $0x18] sm:$0xff]  ;;  %v177_v7 = vld [vmem:[%s3577_s1 + $0x20] sm:$0xff]  ;;  %v178_v8 = vld [vmem:[%s3577_s1 + $0x28] sm:$0xff] }
   0x3   :  { %v2192_v6 = vpack.c.bf16 %v176_v5, %v175_v3  ;;  %v2195_v9 = vpack.c.bf16 %v178_v8, %v177_v7  ;;  %v179_v10 = vld [vmem:[%s3577_s1 + $0x30] sm:$0xff]  ;;  %v180_v11 = vld [vmem:[%s3577_s1 + $0x38] sm:$0xff]  ;;  %v22_v12 = vld [vmem:[%s3578_s0 + $0x8] sm:$0xff] }
   0x4   :  { %2190 = vmatpush1.bf16.msra.mxu0 %v2189_v4  ;;  %2261 = vmatpush1.bf16.msra.mxu1 %v2189_v4  ;;  %v2198_v13 = vpack.c.bf16 %v180_v11, %v179_v10  ;;  %v181_v14 = vld [vmem:[%s3577_s1 + $0x40] sm:$0xff]  ;;  %v182_v15 = vld [vmem:[%s3577_s1 + $0x48] sm:$0xff]  ;;  %v183_v17 = vld [vmem:[%s3577_s1 + $0x50] sm:$0xff] }
   0x5   :  { %2191 = vmatprep.subr.bf16.mxu0 %v2276_v0  ;;  %2249 = vmatprep.subr.bf16.mxu1 %v2276_v0  ;;  %v2201_v16 = vpack.c.bf16 %v182_v15, %v181_v14  ;;  %v184_v18 = vld [vmem:[%s3577_s1 + $0x58] sm:$0xff]  ;;  %v185_v20 = vld [vmem:[%s3577_s1 + $0x60] sm:$0xff]  ;;  %v186_v21 = vld [vmem:[%s3577_s1 + $0x68] sm:$0xff] }
   0x6   :  { %1806 = vmatprep.mubr.msk.f32.mxu0 %vm205_vm0, %v22_v12  ;;  %v2204_v19 = vpack.c.bf16 %v184_v18, %v183_v17  ;;  %v2207_v22 = vpack.c.bf16 %v186_v21, %v185_v20  ;;  %v187_v23 = vld [vmem:[%s3577_s1 + $0x70] sm:$0xff]  ;;  %v188_v24 = vld [vmem:[%s3577_s1 + $0x78] sm:$0xff]  ;;  %v189_v26 = vld [vmem:[%s3577_s1 + $0x80] sm:$0xff] }
   0x7   :  { %v2210_v25 = vpack.c.bf16 %v188_v24, %v187_v23  ;;  %v190_v27 = vld [vmem:[%s3577_s1 + $0x88] sm:$0xff]  ;;  %v191_v29 = vld [vmem:[%s3577_s1 + $0x90] sm:$0xff]  ;;  %v192_v30 = vld [vmem:[%s3577_s1 + $0x98] sm:$0xff] }
   0x8   :  { %2193 = vmatpush1.bf16.msra.mxu0 %v2192_v6  ;;  %2262 = vmatpush1.bf16.msra.mxu1 %v2192_v6  ;;  %v2213_v28 = vpack.c.bf16 %v190_v27, %v189_v26  ;;  %v2216_v31 = vpack.c.bf16 %v192_v30, %v191_v29  ;;  %v193_v32 = vld [vmem:[%s3577_s1 + $0xa0] sm:$0xff]  ;;  %v194_v33 = vld [vmem:[%s3577_s1 + $0xa8] sm:$0xff]  ;;  %v195_v35 = vld [vmem:[%s3577_s1 + $0xb0] sm:$0xff] }
   0x9   :  { %2194 = vmatprep.subr.bf16.mxu0 %v2276_v0  ;;  %2250 = vmatprep.subr.bf16.mxu1 %v2276_v0  ;;  %v2219_v34 = vpack.c.bf16 %v194_v33, %v193_v32  ;;  %v196_v36 = vld [vmem:[%s3577_s1 + $0xb8] sm:$0xff]  ;;  %v197_v39 = vld [vmem:[%s3577_s1 + $0xc0] sm:$0xff]  ;;  %v23_v42 = vld [vmem:[%s3578_s0 + $0x10] sm:$0xff] }
   0xa   :  { %v2222_v37 = vpack.c.bf16 %v196_v36, %v195_v35  ;;  %v21_v40 = vld [vmem:[%s3578_s0] sm:$0xff]  ;;  %v24_v41 = vld [vmem:[%s3578_s0 + $0x18] sm:$0xff]  ;;  %v26_v43 = vld [vmem:[%s3578_s0 + $0x28] sm:$0xff] }
   0xb   :  { %v25_v44 = vld [vmem:[%s3578_s0 + $0x20] sm:$0xff]  ;;  %v28_v45 = vld [vmem:[%s3578_s0 + $0x38] sm:$0xff]  ;;  %v27_v46 = vld [vmem:[%s3578_s0 + $0x30] sm:$0xff] }
   0xc   :  { %2196 = vmatpush1.bf16.msra.mxu0 %v2195_v9  ;;  %2263 = vmatpush1.bf16.msra.mxu1 %v2195_v9  ;;  %v30_v47 = vld [vmem:[%s3578_s0 + $0x48] sm:$0xff]  ;;  %v136_v48 = vld [vmem:[%s3578_s0 + $0x398] sm:$0xff]  ;;  %v29_v49 = vld [vmem:[%s3578_s0 + $0x40] sm:$0xff] }
   0xd   :  { %2197 = vmatprep.subr.bf16.mxu0 %v2276_v0  ;;  %2251 = vmatprep.subr.bf16.mxu1 %v2276_v0  ;;  %v135_v50 = vld [vmem:[%s3578_s0 + $0x390] sm:$0xff]  ;;  %v32_v51 = vld [vmem:[%s3578_s0 + $0x58] sm:$0xff]  ;;  %v138_v52 = vld [vmem:[%s3578_s0 + $0x3a8] sm:$0xff] }
   0xe   :  { %1863 = vmatprep.mubr.msk.f32.mxu1 %vm205_vm0, %v136_v48  ;;  %v31_v53 = vld [vmem:[%s3578_s0 + $0x50] sm:$0xff]  ;;  %v137_v54 = vld [vmem:[%s3578_s0 + $0x3a0] sm:$0xff]  ;;  %v34_v55 = vld [vmem:[%s3578_s0 + $0x68] sm:$0xff] }
   0xf   :  { %v140_v56 = vld [vmem:[%s3578_s0 + $0x3b8] sm:$0xff]  ;;  %v33_v57 = vld [vmem:[%s3578_s0 + $0x60] sm:$0xff]  ;;  %v139_v58 = vld [vmem:[%s3578_s0 + $0x3b0] sm:$0xff] }
  0x10   :  { %2199 = vmatpush1.bf16.msra.mxu0 %v2198_v13  ;;  %2264 = vmatpush1.bf16.msra.mxu1 %v2198_v13  ;;  %v36_v59 = vld [vmem:[%s3578_s0 + $0x78] sm:$0xff]  ;;  %v142_v60 = vld [vmem:[%s3578_s0 + $0x3c8] sm:$0xff]  ;;  %v35_v61 = vld [vmem:[%s3578_s0 + $0x70] sm:$0xff] }
  0x11   :  { %2200 = vmatprep.subr.bf16.mxu0 %v2276_v0  ;;  %2252 = vmatprep.subr.bf16.mxu1 %v2276_v0  ;;  %v141_v62 = vld [vmem:[%s3578_s0 + $0x3c0] sm:$0xff]  ;;  %v38_v63 = vld [vmem:[%s3578_s0 + $0x88] sm:$0xff]  ;;  %v143_v2 = vld [vmem:[%s3578_s0 + $0x3d0] sm:$0xff] }
  0x12   :  { %v37_v1 = vld [vmem:[%s3578_s0 + $0x80] sm:$0xff]  ;;  %v40_v3 = vld [vmem:[%s3578_s0 + $0x98] sm:$0xff]  ;;  %v146_v4 = vld [vmem:[%s3578_s0 + $0x3e8] sm:$0xff] }
  0x13   :  { %v39_v5 = vld [vmem:[%s3578_s0 + $0x90] sm:$0xff]  ;;  %v145_v6 = vld [vmem:[%s3578_s0 + $0x3e0] sm:$0xff]  ;;  %v42_v7 = vld [vmem:[%s3578_s0 + $0xa8] sm:$0xff] }
  0x14   :  { %2202 = vmatpush1.bf16.msra.mxu0 %v2201_v16  ;;  %2265 = vmatpush1.bf16.msra.mxu1 %v2201_v16  ;;  %v148_v8 = vld [vmem:[%s3578_s0 + $0x3f8] sm:$0xff]  ;;  %v41_v9 = vld [vmem:[%s3578_s0 + $0xa0] sm:$0xff]  ;;  %v147_v10 = vld [vmem:[%s3578_s0 + $0x3f0] sm:$0xff] }
  0x15   :  { %2203 = vmatprep.subr.bf16.mxu0 %v2276_v0  ;;  %2253 = vmatprep.subr.bf16.mxu1 %v2276_v0  ;;  %v44_v11 = vld [vmem:[%s3578_s0 + $0xb8] sm:$0xff]  ;;  %v150_v12 = vld [vmem:[%s3578_s0 + $0x408] sm:$0xff]  ;;  %v43_v13 = vld [vmem:[%s3578_s0 + $0xb0] sm:$0xff] }
  0x16   :  { %v149_v14 = vld [vmem:[%s3578_s0 + $0x400] sm:$0xff]  ;;  %v46_v15 = vld [vmem:[%s3578_s0 + $0xc8] sm:$0xff]  ;;  %v152_v16 = vld [vmem:[%s3578_s0 + $0x418] sm:$0xff] }
  0x17   :  { %v45_v17 = vld [vmem:[%s3578_s0 + $0xc0] sm:$0xff]  ;;  %v151_v18 = vld [vmem:[%s3578_s0 + $0x410] sm:$0xff]  ;;  %v154_v20 = vld [vmem:[%s3578_s0 + $0x428] sm:$0xff] }
  0x18   :  { %2205 = vmatpush1.bf16.msra.mxu0 %v2204_v19  ;;  %2266 = vmatpush1.bf16.msra.mxu1 %v2204_v19  ;;  %v48_v19 = vld [vmem:[%s3578_s0 + $0xd8] sm:$0xff]  ;;  %v47_v21 = vld [vmem:[%s3578_s0 + $0xd0] sm:$0xff]  ;;  %v50_v23 = vld [vmem:[%s3578_s0 + $0xe8] sm:$0xff] }
  0x19   :  { %2206 = vmatprep.subr.bf16.mxu0 %v2276_v0  ;;  %2254 = vmatprep.subr.bf16.mxu1 %v2276_v0  ;;  %v156_v24 = vld [vmem:[%s3578_s0 + $0x438] sm:$0xff]  ;;  %v155_v26 = vld [vmem:[%s3578_s0 + $0x430] sm:$0xff]  ;;  %v157_v30 = vld [vmem:[%s3578_s0 + $0x440] sm:$0xff] }
  0x1a   :  { %v52_v27 = vld [vmem:[%s3578_s0 + $0xf8] sm:$0xff]  ;;  %v51_v29 = vld [vmem:[%s3578_s0 + $0xf0] sm:$0xff]  ;;  %v53_v33 = vld [vmem:[%s3578_s0 + $0x100] sm:$0xff] }
  0x1b   :  { %v160_v32 = vld [vmem:[%s3578_s0 + $0x458] sm:$0xff]  ;;  %v955_v36 = vld [vmem:[%s3579_s3] sm:$0xff]  ;;  %v163_v48 = vld [vmem:[%s3578_s0 + $0x470] sm:$0xff] }
  0x1c   :  { %2208 = vmatpush1.bf16.msra.mxu0 %v2207_v22  ;;  %2267 = vmatpush1.bf16.msra.mxu1 %v2207_v22  ;;  %v153_v22 = vld [vmem:[%s3578_s0 + $0x420] sm:$0xff]  ;;  %v56_v35 = vld [vmem:[%s3578_s0 + $0x118] sm:$0xff] }
  0x1d   :  { %2209 = vmatprep.subr.bf16.mxu0 %v2276_v0  ;;  %2255 = vmatprep.subr.bf16.mxu1 %v2276_v0 }
  0x20   :  { %2211 = vmatpush1.bf16.msra.mxu0 %v2210_v25  ;;  %2268 = vmatpush1.bf16.msra.mxu1 %v2210_v25  ;;  %v49_v25 = vld [vmem:[%s3578_s0 + $0xe0] sm:$0xff] }
  0x21   :  { %2212 = vmatprep.subr.bf16.mxu0 %v2276_v0  ;;  %2256 = vmatprep.subr.bf16.mxu1 %v2276_v0 }
  0x24   :  { %2214 = vmatpush1.bf16.msra.mxu0 %v2213_v28  ;;  %2269 = vmatpush1.bf16.msra.mxu1 %v2213_v28  ;;  %v158_v28 = vld [vmem:[%s3578_s0 + $0x448] sm:$0xff] }
  0x25   :  { %2215 = vmatprep.subr.bf16.mxu0 %v2276_v0  ;;  %2257 = vmatprep.subr.bf16.mxu1 %v2276_v0 }
  0x28   :  { %2217 = vmatpush1.bf16.msra.mxu0 %v2216_v31  ;;  %2270 = vmatpush1.bf16.msra.mxu1 %v2216_v31  ;;  %v54_v31 = vld [vmem:[%s3578_s0 + $0x108] sm:$0xff] }
  0x29   :  { %2218 = vmatprep.subr.bf16.mxu0 %v2276_v0  ;;  %2258 = vmatprep.subr.bf16.mxu1 %v2276_v0 }
  0x2c   :  { %2220 = vmatpush1.bf16.msra.mxu0 %v2219_v34  ;;  %2271 = vmatpush1.bf16.msra.mxu1 %v2219_v34  ;;  %v159_v34 = vld [vmem:[%s3578_s0 + $0x450] sm:$0xff] }
  0x2d   :  { %2221 = vmatprep.subr.bf16.mxu0 %v2276_v0  ;;  %2259 = vmatprep.subr.bf16.mxu1 %v2276_v0  ;;  %v144_v0 = vld [vmem:[%s3578_s0 + $0x3d8] sm:$0xff] }
  0x30   :  { %2223 = vmatpush1.bf16.msra.mxu0 %v2222_v37  ;;  %2272 = vmatpush1.bf16.msra.mxu1 %v2222_v37  ;;  %v956_v37 = vld [vmem:[%s3579_s3 + $0x8] sm:$0xff] }
  0x31   :  { %482 = vmatprep.subr.mxu0 %v2277_v38  ;;  %2260 = vmatprep.subr.mxu1 %v2277_v38  ;;  %v162_v38 = vld [vmem:[%s3578_s0 + $0x468] sm:$0xff] }
  0x34   :  { %483 = vmatpush1.msra.mxu0 %v197_v39  ;;  %2273 = vmatpush1.msra.mxu1 %v197_v39  ;;  %v2224_v39 = vpack.c.bf16 %v956_v37, %v955_v36  ;;  %v90_v36 = vld [vmem:[%s3578_s0 + $0x228] sm:$0xff]  ;;  %v89_v37 = vld [vmem:[%s3578_s0 + $0x220] sm:$0xff] }
  0x35   :  { %499 = vmatmul.mubr.f32.vlgmr.msra.gmra.mrb[0].mxu0 %v21_v40  ;;  %784 = vmatmul.mubr.f32.vlgmr.msra.gmra.mrb[0].mxu1 %v135_v50  ;;  %v55_v40 = vld [vmem:[%s3578_s0 + $0x110] sm:$0xff]  ;;  %v959_v50 = vld [vmem:[%s3579_s3 + $0x20] sm:$0xff] }
  0x36   :  { %1807 = vmatprep.mubr.msk.f32.mxu0 %vm205_vm0, %v24_v41  ;;  %1864 = vmatprep.mubr.msk.f32.mxu1 %vm205_vm0, %v138_v52  ;;  %v161_v41 = vld [vmem:[%s3578_s0 + $0x460] sm:$0xff]  ;;  %v166_v52 = vld [vmem:[%s3578_s0 + $0x488] sm:$0xff] }
  0x37   :  { %2225 = vmatprep.subr.bf16.mxu1 %v2224_v39 }
  0x38   :  { %2227 = vmatpush3.bf16.msra.mxu1 %v2224_v39  ;;  %v91_v39 = vld [vmem:[%s3578_s0 + $0x230] sm:$0xff] }
  0x39   :  { %504 = vmatmul.mubr.f32.gmra.mrb[2].mxu0 %v23_v42  ;;  %789 = vmatmul.mubr.f32.gmra.mrb[2].mxu1 %v137_v54  ;;  %v58_v42 = vld [vmem:[%s3578_s0 + $0x128] sm:$0xff]  ;;  %v59_v54 = vld [vmem:[%s3578_s0 + $0x130] sm:$0xff] }
  0x3a   :  { %1808 = vmatprep.mubr.msk.f32.mxu0 %vm205_vm0, %v26_v43  ;;  %1865 = vmatprep.mubr.msk.f32.mxu1 %vm205_vm0, %v140_v56  ;;  %v957_v43 = vld [vmem:[%s3579_s3 + $0x10] sm:$0xff]  ;;  %v62_v56 = vld [vmem:[%s3578_s0 + $0x148] sm:$0xff] }
  0x3d   :  { %509 = vmatmul.mubr.f32.gmra.mrb[4].mxu0 %v25_v44  ;;  %794 = vmatmul.mubr.f32.gmra.mrb[4].mxu1 %v139_v58  ;;  %v958_v44 = vld [vmem:[%s3579_s3 + $0x18] sm:$0xff] }
  0x3e   :  { %1809 = vmatprep.mubr.msk.f32.mxu0 %vm205_vm0, %v28_v45  ;;  %1866 = vmatprep.mubr.msk.f32.mxu1 %vm205_vm0, %v142_v60  ;;  %v164_v45 = vld [vmem:[%s3578_s0 + $0x478] sm:$0xff] }
  0x3f   :  { %v962_v58 = vld [vmem:[%s3579_s3 + $0x38] sm:$0xff] }
  0x41   :  { %514 = vmatmul.mubr.f32.gmra.mrb[6].mxu0 %v27_v46  ;;  %799 = vmatmul.mubr.f32.gmra.mrb[6].mxu1 %v141_v62  ;;  %v2228_v46 = vpack.c.bf16 %v958_v44, %v957_v43  ;;  %v167_v62 = vld [vmem:[%s3578_s0 + $0x490] sm:$0xff]  ;;  %v98_v44 = vld [vmem:[%s3578_s0 + $0x268] sm:$0xff] }
  0x42   :  { %1810 = vmatprep.mubr.msk.f32.mxu0 %vm205_vm0, %v30_v47  ;;  %1867 = vmatprep.mubr.msk.f32.mxu1 %vm205_vm0, %v144_v0  ;;  %v57_v47 = vld [vmem:[%s3578_s0 + $0x120] sm:$0xff]  ;;  %v95_v43 = vld [vmem:[%s3578_s0 + $0x250] sm:$0xff] }
  0x43   :  { %2229 = vmatprep.subr.bf16.mxu1 %v2228_v46  ;;  %v963_v0 = vld [vmem:[%s3579_s3 + $0x40] sm:$0xff] }
  0x44   :  { %2231 = vmatpush3.bf16.msra.mxu1 %v2228_v46  ;;  %v100_v46 = vld [vmem:[%s3578_s0 + $0x278] sm:$0xff] }
  0x45   :  { %519 = vmatmul.mubr.f32.gmra.mrb[8].mxu0 %v29_v49  ;;  %804 = vmatmul.mubr.f32.gmra.mrb[8].mxu1 %v143_v2  ;;  %v60_v49 = vld [vmem:[%s3578_s0 + $0x138] sm:$0xff]  ;;  %v170_v2 = vld [vmem:[%s3578_s0 + $0x4a8] sm:$0xff] }
  0x46   :  { %1811 = vmatprep.mubr.msk.f32.mxu0 %vm205_vm0, %v32_v51  ;;  %1868 = vmatprep.mubr.msk.f32.mxu1 %vm205_vm0, %v146_v4  ;;  %v960_v51 = vld [vmem:[%s3579_s3 + $0x28] sm:$0xff]  ;;  %v63_v4 = vld [vmem:[%s3578_s0 + $0x150] sm:$0xff] }
  0x49   :  { %524 = vmatmul.mubr.f32.gmra.mrb[10].mxu0 %v31_v53  ;;  %809 = vmatmul.mubr.f32.gmra.mrb[10].mxu1 %v145_v6  ;;  %v2232_v53 = vpack.c.bf16 %v960_v51, %v959_v50  ;;  %v169_v6 = vld [vmem:[%s3578_s0 + $0x4a0] sm:$0xff]  ;;  %v104_v50 = vld [vmem:[%s3578_s0 + $0x298] sm:$0xff]  ;;  %v103_v51 = vld [vmem:[%s3578_s0 + $0x290] sm:$0xff] }
  0x4a   :  { %1812 = vmatprep.mubr.msk.f32.mxu0 %vm205_vm0, %v34_v55  ;;  %1869 = vmatprep.mubr.msk.f32.mxu1 %vm205_vm0, %v148_v8  ;;  %v165_v55 = vld [vmem:[%s3578_s0 + $0x480] sm:$0xff]  ;;  %v966_v8 = vld [vmem:[%s3579_s3 + $0x58] sm:$0xff] }
  0x4b   :  { %2233 = vmatprep.subr.bf16.mxu1 %v2232_v53 }
  0x4c   :  { %2235 = vmatpush3.bf16.msra.mxu1 %v2232_v53  ;;  %v105_v53 = vld [vmem:[%s3578_s0 + $0x2a0] sm:$0xff] }
  0x4d   :  { %529 = vmatmul.mubr.f32.gmra.mrb[12].mxu0 %v33_v57  ;;  %814 = vmatmul.mubr.f32.gmra.mrb[12].mxu1 %v147_v10  ;;  %v961_v57 = vld [vmem:[%s3579_s3 + $0x30] sm:$0xff]  ;;  %v65_v10 = vld [vmem:[%s3578_s0 + $0x160] sm:$0xff] }
  0x4e   :  { %1813 = vmatprep.mubr.msk.f32.mxu0 %vm205_vm0, %v36_v59  ;;  %1870 = vmatprep.mubr.msk.f32.mxu1 %vm205_vm0, %v150_v12  ;;  %v168_v59 = vld [vmem:[%s3578_s0 + $0x498] sm:$0xff]  ;;  %v2236_v60 = vpack.c.bf16 %v962_v58, %v961_v57  ;;  %v109_v57 = vld [vmem:[%s3578_s0 + $0x2c0] sm:$0xff] }
  0x4f   :  { %v68_v12 = vld [vmem:[%s3578_s0 + $0x178] sm:$0xff] }
  0x50   :  { %2237 = vmatprep.subr.bf16.mxu1 %v2236_v60  ;;  %v112_v58 = vld [vmem:[%s3578_s0 + $0x2d8] sm:$0xff] }
  0x51   :  { %534 = vmatmul.mubr.f32.gmra.mrb[14].mxu0 %v35_v61  ;;  %819 = vmatmul.mubr.f32.gmra.mrb[14].mxu1 %v149_v14  ;;  %v61_v61 = vld [vmem:[%s3578_s0 + $0x140] sm:$0xff]  ;;  %v67_v14 = vld [vmem:[%s3578_s0 + $0x170] sm:$0xff] }
  0x52   :  { %1814 = vmatprep.mubr.msk.f32.mxu0 %vm205_vm0, %v38_v63  ;;  %1871 = vmatprep.mubr.msk.f32.mxu1 %vm205_vm0, %v152_v16  ;;  %v64_v63 = vld [vmem:[%s3578_s0 + $0x158] sm:$0xff]  ;;  %v70_v16 = vld [vmem:[%s3578_s0 + $0x188] sm:$0xff] }
  0x53   :  { %2239 = vmatpush3.bf16.msra.mxu1 %v2236_v60  ;;  %v114_v60 = vld [vmem:[%s3578_s0 + $0x2e8] sm:$0xff] }
  0x55   :  { %539 = vmatmul.mubr.f32.gmra.mrb[16].mxu0 %v37_v1  ;;  %824 = vmatmul.mubr.f32.gmra.mrb[16].mxu1 %v151_v18  ;;  %v964_v1 = vld [vmem:[%s3579_s3 + $0x48] sm:$0xff]  ;;  %v72_v18 = vld [vmem:[%s3578_s0 + $0x198] sm:$0xff] }
  0x56   :  { %1815 = vmatprep.mubr.msk.f32.mxu0 %vm205_vm0, %v40_v3  ;;  %1872 = vmatprep.mubr.msk.f32.mxu1 %vm205_vm0, %v154_v20  ;;  %v2240_v3 = vpack.c.bf16 %v964_v1, %v963_v0  ;;  %v74_v20 = vld [vmem:[%s3578_s0 + $0x1a8] sm:$0xff]  ;;  %v117_v1 = vld [vmem:[%s3578_s0 + $0x300] sm:$0xff] }
  0x57   :  { %v118_v0 = vld [vmem:[%s3578_s0 + $0x308] sm:$0xff] }
  0x58   :  { %2241 = vmatprep.subr.bf16.mxu1 %v2240_v3 }
  0x59   :  { %544 = vmatmul.mubr.f32.gmra.mrb[18].mxu0 %v39_v5  ;;  %829 = vmatmul.mubr.f32.gmra.mrb[18].mxu1 %v153_v22  ;;  %v66_v5 = vld [vmem:[%s3578_s0 + $0x168] sm:$0xff]  ;;  %v76_v22 = vld [vmem:[%s3578_s0 + $0x1b8] sm:$0xff] }
  0x5a   :  { %1816 = vmatprep.mubr.msk.f32.mxu0 %vm205_vm0, %v42_v7  ;;  %1873 = vmatprep.mubr.msk.f32.mxu1 %vm205_vm0, %v156_v24  ;;  %v965_v7 = vld [vmem:[%s3579_s3 + $0x50] sm:$0xff]  ;;  %v78_v24 = vld [vmem:[%s3578_s0 + $0x1c8] sm:$0xff] }
  0x5b   :  { %2243 = vmatpush3.bf16.msra.mxu1 %v2240_v3  ;;  %v119_v3 = vld [vmem:[%s3578_s0 + $0x310] sm:$0xff] }
  0x5d   :  { %549 = vmatmul.mubr.f32.gmra.mrb[20].mxu0 %v41_v9  ;;  %834 = vmatmul.mubr.f32.gmra.mrb[20].mxu1 %v155_v26  ;;  %v2244_v9 = vpack.c.bf16 %v966_v8, %v965_v7  ;;  %v80_v26 = vld [vmem:[%s3578_s0 + $0x1d8] sm:$0xff]  ;;  %v123_v7 = vld [vmem:[%s3578_s0 + $0x330] sm:$0xff]  ;;  %v126_v8 = vld [vmem:[%s3578_s0 + $0x348] sm:$0xff] }
  0x5e   :  { %1817 = vmatprep.mubr.msk.f32.mxu0 %vm205_vm0, %v44_v11  ;;  %1874 = vmatprep.mubr.msk.f32.mxu1 %vm205_vm0, %v158_v28  ;;  %v172_v11 = vld [vmem:[%s3578_s0 + $0x4b8] sm:$0xff]  ;;  %v82_v28 = vld [vmem:[%s3578_s0 + $0x1e8] sm:$0xff] }
  0x5f   :  { %2245 = vmatprep.subr.bf16.mxu1 %v2244_v9 }
  0x60   :  { %2247 = vmatpush3.bf16.msra.mxu1 %v2244_v9  ;;  %v125_v9 = vld [vmem:[%s3578_s0 + $0x340] sm:$0xff] }
  0x61   :  { %554 = vmatmul.mubr.f32.gmra.mrb[22].mxu0 %v43_v13  ;;  %839 = vmatmul.mubr.f32.gmra.mrb[22].mxu1 %v157_v30  ;;  %v171_v13 = vld [vmem:[%s3578_s0 + $0x4b0] sm:$0xff]  ;;  %v84_v30 = vld [vmem:[%s3578_s0 + $0x1f8] sm:$0xff] }
  0x62   :  { %1818 = vmatprep.mubr.msk.f32.mxu0 %vm205_vm0, %v46_v15  ;;  %1875 = vmatprep.mubr.msk.f32.mxu1 %vm205_vm0, %v160_v32  ;;  %v967_v15 = vld [vmem:[%s3579_s3 + $0x60] sm:$0xf]  ;;  %v86_v32 = vld [vmem:[%s3578_s0 + $0x208] sm:$0xff] }
  0x63   :  { %2072 = vmatprep.subr.msk.mxu1 %vm1199_vm1, %v967_v15 }
  0x64   :  { %2073 = vmatpush3.msk.msra.mxu1 %vm1199_vm1, %v967_v15 }
  0x65   :  { %559 = vmatmul.mubr.f32.gmra.mrb[24].mxu0 %v45_v17  ;;  %844 = vmatmul.mubr.f32.gmra.mrb[24].mxu1 %v159_v34  ;;  %v69_v17 = vld [vmem:[%s3578_s0 + $0x180] sm:$0xff]  ;;  %v88_v34 = vld [vmem:[%s3578_s0 + $0x218] sm:$0xff] }
  0x66   :  { %1819 = vmatprep.mubr.msk.f32.mxu0 %vm205_vm0, %v48_v19  ;;  %1876 = vmatprep.mubr.msk.f32.mxu1 %vm205_vm0, %v162_v38  ;;  %v71_v19 = vld [vmem:[%s3578_s0 + $0x190] sm:$0xff]  ;;  %v92_v38 = vld [vmem:[%s3578_s0 + $0x238] sm:$0xff] }
  0x69   :  { %564 = vmatmul.mubr.f32.gmra.mrb[26].mxu0 %v47_v21  ;;  %849 = vmatmul.mubr.f32.gmra.mrb[26].mxu1 %v161_v41  ;;  %v73_v21 = vld [vmem:[%s3578_s0 + $0x1a0] sm:$0xff] }
  0x6a   :  { %1820 = vmatprep.mubr.msk.f32.mxu0 %vm205_vm0, %v50_v23  ;;  %1877 = vmatprep.mubr.msk.f32.mxu1 %vm205_vm0, %v164_v45  ;;  %v75_v23 = vld [vmem:[%s3578_s0 + $0x1b0] sm:$0xff]  ;;  %v93_v41 = vld [vmem:[%s3578_s0 + $0x240] sm:$0xff] }
  0x6b   :  { %v97_v45 = vld [vmem:[%s3578_s0 + $0x260] sm:$0xff] }
  0x6d   :  { %569 = vmatmul.mubr.f32.gmra.mrb[28].mxu0 %v49_v25  ;;  %854 = vmatmul.mubr.f32.gmra.mrb[28].mxu1 %v163_v48  ;;  %v77_v25 = vld [vmem:[%s3578_s0 + $0x1c0] sm:$0xff]  ;;  %v102_v48 = vld [vmem:[%s3578_s0 + $0x288] sm:$0xff] }
  0x6e   :  { %1821 = vmatprep.mubr.msk.f32.mxu0 %vm205_vm0, %v52_v27  ;;  %1878 = vmatprep.mubr.msk.f32.mxu1 %vm205_vm0, %v166_v52  ;;  %v79_v27 = vld [vmem:[%s3578_s0 + $0x1d0] sm:$0xff]  ;;  %v106_v52 = vld [vmem:[%s3578_s0 + $0x2a8] sm:$0xff] }
  0x71   :  { %574 = vmatmul.mubr.f32.gmra.mrb[30].mxu0 %v51_v29  ;;  %859 = vmatmul.mubr.f32.gmra.mrb[30].mxu1 %v165_v55  ;;  %v81_v29 = vld [vmem:[%s3578_s0 + $0x1e0] sm:$0xff]  ;;  %v107_v55 = vld [vmem:[%s3578_s0 + $0x2b0] sm:$0xff] }
  0x72   :  { %1822 = vmatprep.mubr.msk.f32.mxu0 %vm205_vm0, %v54_v31  ;;  %1879 = vmatprep.mubr.msk.f32.mxu1 %vm205_vm0, %v168_v59  ;;  %v83_v31 = vld [vmem:[%s3578_s0 + $0x1f0] sm:$0xff] }
  0x73   :  { %v111_v59 = vld [vmem:[%s3578_s0 + $0x2d0] sm:$0xff] }
  0x75   :  { %579 = vmatmul.mubr.f32.gmra.mrb[32].mxu0 %v53_v33  ;;  %864 = vmatmul.mubr.f32.gmra.mrb[32].mxu1 %v167_v62  ;;  %v85_v33 = vld [vmem:[%s3578_s0 + $0x200] sm:$0xff]  ;;  %v116_v62 = vld [vmem:[%s3578_s0 + $0x2f8] sm:$0xff] }
  0x76   :  { %1823 = vmatprep.mubr.msk.f32.mxu0 %vm205_vm0, %v56_v35  ;;  %1880 = vmatprep.mubr.msk.f32.mxu1 %vm205_vm0, %v170_v2  ;;  %v87_v35 = vld [vmem:[%s3578_s0 + $0x210] sm:$0xff]  ;;  %v120_v2 = vld [vmem:[%s3578_s0 + $0x318] sm:$0xff] }
  0x79   :  { %584 = vmatmul.mubr.f32.gmra.mrb[34].mxu0 %v55_v40  ;;  %869 = vmatmul.mubr.f32.gmra.mrb[34].mxu1 %v169_v6  ;;  %v94_v40 = vld [vmem:[%s3578_s0 + $0x248] sm:$0xff]  ;;  %v124_v6 = vld [vmem:[%s3578_s0 + $0x338] sm:$0xff] }
  0x7a   :  { %1824 = vmatprep.mubr.msk.f32.mxu0 %vm205_vm0, %v58_v42  ;;  %1881 = vmatprep.mubr.msk.f32.mxu1 %vm205_vm0, %v172_v11  ;;  %v96_v42 = vld [vmem:[%s3578_s0 + $0x258] sm:$0xff]  ;;  %v2956_v11 = vld [vmem:[%s3580_s2] ss:$0 sm:$0xff] }
  0x7d   :  { %589 = vmatmul.mubr.f32.gmra.mrb[36].mxu0 %v57_v47  ;;  %874 = vmatmul.mubr.f32.gmra.mrb[36].mxu1 %v171_v13  ;;  %v99_v47 = vld [vmem:[%s3578_s0 + $0x270] sm:$0xff]  ;;  %v130_v13 = vld [vmem:[%s3578_s0 + $0x368] sm:$0xff] }
  0x7e   :  { %1825 = vmatprep.mubr.msk.f32.mxu0 %vm205_vm0, %v60_v49  ;;  %v101_v49 = vld [vmem:[%s3578_s0 + $0x280] sm:$0xff] }
  0x81   :  { %594 = vmatmul.mubr.f32.gmra.mrb[38].mxu0 %v59_v54  ;;  %v108_v54 = vld [vmem:[%s3578_s0 + $0x2b8] sm:$0xff] }
  0x82   :  { %1826 = vmatprep.mubr.msk.f32.mxu0 %vm205_vm0, %v62_v56  ;;  %v110_v56 = vld [vmem:[%s3578_s0 + $0x2c8] sm:$0xff] }
  0x85   :  { %599 = vmatmul.mubr.f32.gmra.mrb[40].mxu0 %v61_v61  ;;  %v113_v61 = vld [vmem:[%s3578_s0 + $0x2e0] sm:$0xff] }
  0x86   :  { %1827 = vmatprep.mubr.msk.f32.mxu0 %vm205_vm0, %v64_v63  ;;  %v115_v63 = vld [vmem:[%s3578_s0 + $0x2f0] sm:$0xff] }
  0x89   :  { %604 = vmatmul.mubr.f32.gmra.mrb[42].mxu0 %v63_v4  ;;  %v122_v4 = vld [vmem:[%s3578_s0 + $0x328] sm:$0xff] }
  0x8a   :  { %1828 = vmatprep.mubr.msk.f32.mxu0 %vm205_vm0, %v66_v5  ;;  %v121_v5 = vld [vmem:[%s3578_s0 + $0x320] sm:$0xff] }
  0x8d   :  { %609 = vmatmul.mubr.f32.gmra.mrb[44].mxu0 %v65_v10  ;;  %v128_v10 = vld [vmem:[%s3578_s0 + $0x358] sm:$0xff] }
  0x8e   :  { %1829 = vmatprep.mubr.msk.f32.mxu0 %vm205_vm0, %v68_v12  ;;  %v127_v12 = vld [vmem:[%s3578_s0 + $0x350] sm:$0xff] }
  0x91   :  { %614 = vmatmul.mubr.f32.gmra.mrb[46].mxu0 %v67_v14 }
  0x92   :  { %1830 = vmatprep.mubr.msk.f32.mxu0 %vm205_vm0, %v70_v16 }
  0x95   :  { %619 = vmatmul.mubr.f32.gmra.mrb[48].mxu0 %v69_v17  ;;  %v129_v17 = vld [vmem:[%s3578_s0 + $0x360] sm:$0xff] }
  0x96   :  { %1831 = vmatprep.mubr.msk.f32.mxu0 %vm205_vm0, %v72_v18 }
  0x99   :  { %624 = vmatmul.mubr.f32.gmra.mrb[50].mxu0 %v71_v19  ;;  %v132_v19 = vld [vmem:[%s3578_s0 + $0x378] sm:$0xff] }
  0x9a   :  { %1832 = vmatprep.mubr.msk.f32.mxu0 %vm205_vm0, %v74_v20 }
  0x9d   :  { %629 = vmatmul.mubr.f32.gmra.mrb[52].mxu0 %v73_v21 }
  0x9e   :  { %1833 = vmatprep.mubr.msk.f32.mxu0 %vm205_vm0, %v76_v22 }
  0xa1   :  { %634 = vmatmul.mubr.f32.gmra.mrb[54].mxu0 %v75_v23  ;;  %v131_v23 = vld [vmem:[%s3578_s0 + $0x370] sm:$0xff] }
  0xa2   :  { %1834 = vmatprep.mubr.msk.f32.mxu0 %vm205_vm0, %v78_v24 }
  0xa5   :  { %639 = vmatmul.mubr.f32.gmra.mrb[56].mxu0 %v77_v25  ;;  %v134_v25 = vld [vmem:[%s3578_s0 + $0x388] sm:$0xff] }
  0xa6   :  { %1835 = vmatprep.mubr.msk.f32.mxu0 %vm205_vm0, %v80_v26 }
  0xa9   :  { %644 = vmatmul.mubr.f32.gmra.mrb[58].mxu0 %v79_v27 }
  0xaa   :  { %1836 = vmatprep.mubr.msk.f32.mxu0 %vm205_vm0, %v82_v28 }
  0xad   :  { %649 = vmatmul.mubr.f32.gmra.mrb[60].mxu0 %v81_v29  ;;  %v133_v29 = vld [vmem:[%s3578_s0 + $0x380] sm:$0xff] }
  0xae   :  { %1837 = vmatprep.mubr.msk.f32.mxu0 %vm205_vm0, %v84_v30 }
  0xb1   :  { %654 = vmatmul.mubr.f32.gmra.mrb[62].mxu0 %v83_v31 }
  0xb2   :  { %1838 = vmatprep.mubr.msk.f32.mxu0 %vm205_vm0, %v86_v32 }
  0xb5   :  { %659 = vmatmul.mubr.f32.gmra.mrb[64].mxu0 %v85_v33 }
  0xb6   :  { %1839 = vmatprep.mubr.msk.f32.mxu0 %vm205_vm0, %v88_v34 }
  0xb9   :  { %664 = vmatmul.mubr.f32.gmra.mrb[66].mxu0 %v87_v35 }
  0xba   :  { %1840 = vmatprep.mubr.msk.f32.mxu0 %vm205_vm0, %v90_v36 }
  0xbd   :  { %669 = vmatmul.mubr.f32.gmra.mrb[68].mxu0 %v89_v37 }
  0xbe   :  { %1841 = vmatprep.mubr.msk.f32.mxu0 %vm205_vm0, %v92_v38 }
  0xc1   :  { %674 = vmatmul.mubr.f32.gmra.mrb[70].mxu0 %v91_v39 }
  0xc2   :  { %1842 = vmatprep.mubr.msk.f32.mxu0 %vm205_vm0, %v94_v40 }
  0xc5   :  { %679 = vmatmul.mubr.f32.gmra.mrb[72].mxu0 %v93_v41 }
  0xc6   :  { %1843 = vmatprep.mubr.msk.f32.mxu0 %vm205_vm0, %v96_v42 }
  0xc9   :  { %684 = vmatmul.mubr.f32.gmra.mrb[74].mxu0 %v95_v43 }
  0xca   :  { %1844 = vmatprep.mubr.msk.f32.mxu0 %vm205_vm0, %v98_v44 }
  0xcd   :  { %689 = vmatmul.mubr.f32.gmra.mrb[76].mxu0 %v97_v45 }
  0xce   :  { %1845 = vmatprep.mubr.msk.f32.mxu0 %vm205_vm0, %v100_v46 }
  0xd1   :  { %694 = vmatmul.mubr.f32.gmra.mrb[78].mxu0 %v99_v47 }
  0xd2   :  { %1846 = vmatprep.mubr.msk.f32.mxu0 %vm205_vm0, %v102_v48 }
  0xd5   :  { %699 = vmatmul.mubr.f32.gmra.mrb[80].mxu0 %v101_v49 }
  0xd6   :  { %1847 = vmatprep.mubr.msk.f32.mxu0 %vm205_vm0, %v104_v50 }
  0xd9   :  { %704 = vmatmul.mubr.f32.gmra.mrb[82].mxu0 %v103_v51 }
  0xda   :  { %1848 = vmatprep.mubr.msk.f32.mxu0 %vm205_vm0, %v106_v52 }
  0xdd   :  { %709 = vmatmul.mubr.f32.gmra.mrb[84].mxu0 %v105_v53 }
  0xde   :  { %1849 = vmatprep.mubr.msk.f32.mxu0 %vm205_vm0, %v108_v54 }
  0xe1   :  { %714 = vmatmul.mubr.f32.gmra.mrb[86].mxu0 %v107_v55 }
  0xe2   :  { %1850 = vmatprep.mubr.msk.f32.mxu0 %vm205_vm0, %v110_v56 }
  0xe5   :  { %719 = vmatmul.mubr.f32.gmra.mrb[88].mxu0 %v109_v57 }
  0xe6   :  { %1851 = vmatprep.mubr.msk.f32.mxu0 %vm205_vm0, %v112_v58 }
  0xe9   :  { %724 = vmatmul.mubr.f32.gmra.mrb[90].mxu0 %v111_v59 }
  0xea   :  { %1852 = vmatprep.mubr.msk.f32.mxu0 %vm205_vm0, %v114_v60 }
  0xed   :  { %729 = vmatmul.mubr.f32.gmra.mrb[92].mxu0 %v113_v61 }
  0xee   :  { %1853 = vmatprep.mubr.msk.f32.mxu0 %vm205_vm0, %v116_v62 }
  0xf1   :  { %734 = vmatmul.mubr.f32.gmra.mrb[94].mxu0 %v115_v63 }
  0xf2   :  { %1854 = vmatprep.mubr.msk.f32.mxu0 %vm205_vm0, %v118_v0 }
  0xf5   :  { %739 = vmatmul.mubr.f32.gmra.mrb[96].mxu0 %v117_v1 }
  0xf6   :  { %1855 = vmatprep.mubr.msk.f32.mxu0 %vm205_vm0, %v120_v2 }
  0xf9   :  { %744 = vmatmul.mubr.f32.gmra.mrb[98].mxu0 %v119_v3 }
  0xfa   :  { %1856 = vmatprep.mubr.msk.f32.mxu0 %vm205_vm0, %v122_v4 }
  0xfd   :  { %749 = vmatmul.mubr.f32.gmra.mrb[100].mxu0 %v121_v5 }
  0xfe   :  { %1857 = vmatprep.mubr.msk.f32.mxu0 %vm205_vm0, %v124_v6 }
 0x101   :  { %754 = vmatmul.mubr.f32.gmra.mrb[102].mxu0 %v123_v7 }
 0x102   :  { %1858 = vmatprep.mubr.msk.f32.mxu0 %vm205_vm0, %v126_v8 }
 0x105   :  { %759 = vmatmul.mubr.f32.gmra.mrb[104].mxu0 %v125_v9 }
 0x106   :  { %1859 = vmatprep.mubr.msk.f32.mxu0 %vm205_vm0, %v128_v10 }
 0x108   :  { %v500_v14 = vpop.f32.mrb[0].mxu0  ;;  %v3010_v10 = vpop.f32.mrb[0].mxu1 }
 0x109   :  { %v501_v15 = vadd.f32 %v2956_v11, %v500_v14  ;;  %v502_v16 = vpop.f32.mrb[1].mxu0  ;;  %764 = vmatmul.mubr.f32.gmra.mrb[106].mxu0 %v127_v12 }
 0x10a   :  { %1860 = vmatprep.mubr.msk.f32.mxu0 %vm205_vm0, %v130_v13  ;;  %v787_v13 = vpop.f32.mrb[1].mxu1 }
 0x10b   :  { %v879_v18 = vmax.f32 %v501_v15, 0.0 }
 0x10c   :  { %v505_v20 = vpop.f32.mrb[2].mxu0  ;;  %v3012_v15 = vpop.f32.mrb[2].mxu1 }
 0x10d   :  { %v506_v21 = vadd.f32 %v2956_v11, %v505_v20  ;;  %v507_v22 = vpop.f32.mrb[3].mxu0  ;;  %769 = vmatmul.mubr.f32.gmra.mrb[108].mxu0 %v129_v17  ;;  %2074 = vmatprep.mubr.msk.f32.mxu1 %vm970_vm2, %v879_v18  ;;  %v792_v18 = vpop.f32.mrb[3].mxu1 }
 0x10e   :  { %1861 = vmatprep.mubr.msk.f32.mxu0 %vm205_vm0, %v132_v19 }
 0x10f   :  { %v880_v24 = vmax.f32 %v506_v21, 0.0 }
 0x110   :  { %v510_v26 = vpop.f32.mrb[4].mxu0  ;;  %v3016_v19 = vpop.f32.mrb[4].mxu1 }
 0x111   :  { %v511_v27 = vadd.f32 %v2956_v11, %v510_v26  ;;  %v512_v28 = vpop.f32.mrb[5].mxu0  ;;  %774 = vmatmul.mubr.f32.gmra.mrb[110].mxu0 %v131_v23  ;;  %2075 = vmatmul.mubr.msk.f32.vlgmr.msra.gmra.mrb[38].mxu1 %vm970_vm2, %v880_v24  ;;  %v797_v21 = vpop.f32.mrb[5].mxu1 }
 0x112   :  { %1862 = vmatprep.mubr.msk.f32.mxu0 %vm205_vm0, %v134_v25 }
 0x113   :  { %v881_v30 = vmax.f32 %v511_v27, 0.0 }
 0x114   :  { %v515_v31 = vpop.f32.mrb[6].mxu0  ;;  %v3018_v23 = vpop.f32.mrb[6].mxu1 }
 0x115   :  { %v516_v32 = vadd.f32 %v2956_v11, %v515_v31  ;;  %v517_v33 = vpop.f32.mrb[7].mxu0  ;;  %779 = vmatmul.mubr.f32.gmra.mrb[112].mxu0 %v133_v29  ;;  %2077 = vmatprep.mubr.msk.f32.mxu1 %vm970_vm2, %v881_v30  ;;  %v802_v26 = vpop.f32.mrb[7].mxu1 }
 0x117   :  { %v882_v34 = vmax.f32 %v516_v32, 0.0 }
 0x118   :  { %v520_v35 = vpop.f32.mrb[8].mxu0  ;;  %v3022_v27 = vpop.f32.mrb[8].mxu1 }
 0x119   :  { %v521_v36 = vadd.f32 %v2956_v11, %v520_v35  ;;  %v522_v37 = vpop.f32.mrb[9].mxu0  ;;  %2078 = vmatmul.mubr.msk.f32.gmra.mrb[40].mxu1 %vm970_vm2, %v882_v34  ;;  %v807_v29 = vpop.f32.mrb[9].mxu1 }
 0x11b   :  { %v883_v38 = vmax.f32 %v521_v36, 0.0 }
 0x11c   :  { %v525_v39 = vpop.f32.mrb[10].mxu0  ;;  %v3024_v31 = vpop.f32.mrb[10].mxu1 }
 0x11d   :  { %v526_v40 = vadd.f32 %v2956_v11, %v525_v39  ;;  %v527_v41 = vpop.f32.mrb[11].mxu0  ;;  %2080 = vmatprep.mubr.msk.f32.mxu1 %vm970_vm2, %v883_v38  ;;  %v812_v34 = vpop.f32.mrb[11].mxu1 }
 0x11f   :  { %v884_v42 = vmax.f32 %v526_v40, 0.0 }
 0x120   :  { %v530_v43 = vpop.f32.mrb[12].mxu0  ;;  %v3028_v35 = vpop.f32.mrb[12].mxu1 }
 0x121   :  { %v531_v44 = vadd.f32 %v2956_v11, %v530_v43  ;;  %v532_v45 = vpop.f32.mrb[13].mxu0  ;;  %2081 = vmatmul.mubr.msk.f32.gmra.mrb[42].mxu1 %vm970_vm2, %v884_v42  ;;  %v817_v37 = vpop.f32.mrb[13].mxu1 }
 0x123   :  { %v885_v46 = vmax.f32 %v531_v44, 0.0 }
 0x124   :  { %v535_v47 = vpop.f32.mrb[14].mxu0  ;;  %v3030_v39 = vpop.f32.mrb[14].mxu1 }
 0x125   :  { %v536_v48 = vadd.f32 %v2956_v11, %v535_v47  ;;  %v537_v49 = vpop.f32.mrb[15].mxu0  ;;  %2083 = vmatprep.mubr.msk.f32.mxu1 %vm970_vm2, %v885_v46  ;;  %v822_v42 = vpop.f32.mrb[15].mxu1 }
 0x127   :  { %v886_v50 = vmax.f32 %v536_v48, 0.0 }
 0x128   :  { %v540_v51 = vpop.f32.mrb[16].mxu0  ;;  %v3034_v43 = vpop.f32.mrb[16].mxu1 }
 0x129   :  { %v541_v52 = vadd.f32 %v2956_v11, %v540_v51  ;;  %v542_v53 = vpop.f32.mrb[17].mxu0  ;;  %2084 = vmatmul.mubr.msk.f32.gmra.mrb[44].mxu1 %vm970_vm2, %v886_v50  ;;  %v827_v45 = vpop.f32.mrb[17].mxu1 }
 0x12b   :  { %v887_v54 = vmax.f32 %v541_v52, 0.0 }
 0x12c   :  { %v545_v55 = vpop.f32.mrb[18].mxu0  ;;  %v3036_v47 = vpop.f32.mrb[18].mxu1 }
 0x12d   :  { %v546_v56 = vadd.f32 %v2956_v11, %v545_v55  ;;  %v547_v57 = vpop.f32.mrb[19].mxu0  ;;  %2086 = vmatprep.mubr.msk.f32.mxu1 %vm970_vm2, %v887_v54  ;;  %v832_v50 = vpop.f32.mrb[19].mxu1 }
 0x12f   :  { %v888_v58 = vmax.f32 %v546_v56, 0.0 }
 0x130   :  { %v550_v59 = vpop.f32.mrb[20].mxu0  ;;  %v3040_v51 = vpop.f32.mrb[20].mxu1 }
 0x131   :  { %v551_v60 = vadd.f32 %v2956_v11, %v550_v59  ;;  %v552_v61 = vpop.f32.mrb[21].mxu0  ;;  %2087 = vmatmul.mubr.msk.f32.gmra.mrb[46].mxu1 %vm970_vm2, %v888_v58  ;;  %v837_v53 = vpop.f32.mrb[21].mxu1 }
 0x133   :  { %v889_v62 = vmax.f32 %v551_v60, 0.0 }
 0x134   :  { %v555_v63 = vpop.f32.mrb[22].mxu0  ;;  %v3042_v55 = vpop.f32.mrb[22].mxu1 }
 0x135   :  { %v556_v0 = vadd.f32 %v2956_v11, %v555_v63  ;;  %v557_v1 = vpop.f32.mrb[23].mxu0  ;;  %2089 = vmatprep.mubr.msk.f32.mxu1 %vm970_vm2, %v889_v62  ;;  %v842_v58 = vpop.f32.mrb[23].mxu1 }
 0x137   :  { %v890_v2 = vmax.f32 %v556_v0, 0.0 }
 0x138   :  { %v560_v3 = vpop.f32.mrb[24].mxu0  ;;  %v3046_v59 = vpop.f32.mrb[24].mxu1 }
 0x139   :  { %v561_v4 = vadd.f32 %v2956_v11, %v560_v3  ;;  %v562_v5 = vpop.f32.mrb[25].mxu0  ;;  %2090 = vmatmul.mubr.msk.f32.gmra.mrb[48].mxu1 %vm970_vm2, %v890_v2  ;;  %v847_v61 = vpop.f32.mrb[25].mxu1 }
 0x13b   :  { %v891_v6 = vmax.f32 %v561_v4, 0.0 }
 0x13c   :  { %v565_v7 = vpop.f32.mrb[26].mxu0  ;;  %v3048_v63 = vpop.f32.mrb[26].mxu1 }
 0x13d   :  { %v566_v8 = vadd.f32 %v2956_v11, %v565_v7  ;;  %v567_v9 = vpop.f32.mrb[27].mxu0  ;;  %2092 = vmatprep.mubr.msk.f32.mxu1 %vm970_vm2, %v891_v6  ;;  %v852_v2 = vpop.f32.mrb[27].mxu1 }
 0x13f   :  { %v892_v12 = vmax.f32 %v566_v8, 0.0 }
 0x140   :  { %v570_v14 = vpop.f32.mrb[28].mxu0  ;;  %v3052_v3 = vpop.f32.mrb[28].mxu1 }
 0x141   :  { %v571_v16 = vadd.f32 %v2956_v11, %v570_v14  ;;  %v572_v17 = vpop.f32.mrb[29].mxu0  ;;  %2093 = vmatmul.mubr.msk.f32.gmra.mrb[50].mxu1 %vm970_vm2, %v892_v12  ;;  %v857_v5 = vpop.f32.mrb[29].mxu1 }
 0x143   :  { %v893_v20 = vmax.f32 %v571_v16, 0.0 }
 0x144   :  { %v575_v22 = vpop.f32.mrb[30].mxu0  ;;  %v3054_v7 = vpop.f32.mrb[30].mxu1 }
 0x145   :  { %v576_v24 = vadd.f32 %v2956_v11, %v575_v22  ;;  %v577_v25 = vpop.f32.mrb[31].mxu0  ;;  %2095 = vmatprep.mubr.msk.f32.mxu1 %vm970_vm2, %v893_v20  ;;  %v862_v12 = vpop.f32.mrb[31].mxu1 }
 0x147   :  { %v894_v28 = vmax.f32 %v576_v24, 0.0 }
 0x148   :  { %v580_v30 = vpop.f32.mrb[32].mxu0  ;;  %v3058_v13 = vpop.f32.mrb[32].mxu1 }
 0x149   :  { %v581_v32 = vadd.f32 %v2956_v11, %v580_v30  ;;  %v582_v33 = vpop.f32.mrb[33].mxu0  ;;  %2096 = vmatmul.mubr.msk.f32.gmra.mrb[52].mxu1 %vm970_vm2, %v894_v28  ;;  %v867_v16 = vpop.f32.mrb[33].mxu1 }
 0x14b   :  { %v895_v36 = vmax.f32 %v581_v32, 0.0 }
 0x14c   :  { %v585_v38 = vpop.f32.mrb[34].mxu0  ;;  %v3060_v18 = vpop.f32.mrb[34].mxu1 }
 0x14d   :  { %v586_v40 = vadd.f32 %v2956_v11, %v585_v38  ;;  %v587_v41 = vpop.f32.mrb[35].mxu0  ;;  %2098 = vmatprep.mubr.msk.f32.mxu1 %vm970_vm2, %v895_v36  ;;  %v872_v22 = vpop.f32.mrb[35].mxu1 }
 0x14f   :  { %v896_v44 = vmax.f32 %v586_v40, 0.0 }
 0x150   :  { %v590_v46 = vpop.f32.mrb[36].mxu0  ;;  %v3064_v24 = vpop.f32.mrb[36].mxu1 }
 0x151   :  { %v591_v48 = vadd.f32 %v2956_v11, %v590_v46  ;;  %v592_v49 = vpop.f32.mrb[37].mxu0  ;;  %2099 = vmatmul.mubr.msk.f32.gmra.mrb[54].mxu1 %vm970_vm2, %v896_v44  ;;  %v877_v26 = vpop.f32.mrb[37].mxu1 }
 0x153   :  { %v897_v52 = vmax.f32 %v591_v48, 0.0 }
 0x154   :  { %v595_v54 = vpop.f32.mrb[38].mxu0 }
 0x155   :  { %v596_v56 = vadd.f32 %v2956_v11, %v595_v54  ;;  %v597_v57 = vpop.f32.mrb[39].mxu0  ;;  %2101 = vmatprep.mubr.msk.f32.mxu1 %vm970_vm2, %v897_v52 }
 0x157   :  { %v898_v60 = vmax.f32 %v596_v56, 0.0 }
 0x158   :  { %v600_v62 = vpop.f32.mrb[40].mxu0 }
 0x159   :  { %v601_v0 = vadd.f32 %v2956_v11, %v600_v62  ;;  %v602_v1 = vpop.f32.mrb[41].mxu0  ;;  %2102 = vmatmul.mubr.msk.f32.gmra.mrb[56].mxu1 %vm970_vm2, %v898_v60 }
 0x15b   :  { %v899_v4 = vmax.f32 %v601_v0, 0.0 }
 0x15c   :  { %v605_v6 = vpop.f32.mrb[42].mxu0 }
 0x15d   :  { %v606_v8 = vadd.f32 %v2956_v11, %v605_v6  ;;  %v607_v9 = vpop.f32.mrb[43].mxu0  ;;  %2104 = vmatprep.mubr.msk.f32.mxu1 %vm970_vm2, %v899_v4 }
 0x15f   :  { %v900_v14 = vmax.f32 %v606_v8, 0.0 }
 0x160   :  { %v610_v17 = vpop.f32.mrb[44].mxu0 }
 0x161   :  { %v611_v20 = vadd.f32 %v2956_v11, %v610_v17  ;;  %v612_v21 = vpop.f32.mrb[45].mxu0  ;;  %2105 = vmatmul.mubr.msk.f32.gmra.mrb[58].mxu1 %vm970_vm2, %v900_v14 }
 0x163   :  { %v901_v25 = vmax.f32 %v611_v20, 0.0 }
 0x164   :  { %v615_v28 = vpop.f32.mrb[46].mxu0 }
 0x165   :  { %v616_v29 = vadd.f32 %v2956_v11, %v615_v28  ;;  %v617_v30 = vpop.f32.mrb[47].mxu0  ;;  %2107 = vmatprep.mubr.msk.f32.mxu1 %vm970_vm2, %v901_v25 }
 0x167   :  { %v902_v32 = vmax.f32 %v616_v29, 0.0 }
 0x168   :  { %v620_v33 = vpop.f32.mrb[48].mxu0 }
 0x169   :  { %v621_v34 = vadd.f32 %v2956_v11, %v620_v33  ;;  %v622_v36 = vpop.f32.mrb[49].mxu0  ;;  %2108 = vmatmul.mubr.msk.f32.gmra.mrb[60].mxu1 %vm970_vm2, %v902_v32 }
 0x16b   :  { %v903_v37 = vmax.f32 %v621_v34, 0.0 }
 0x16c   :  { %v625_v38 = vpop.f32.mrb[50].mxu0 }
 0x16d   :  { %v626_v40 = vadd.f32 %v2956_v11, %v625_v38  ;;  %v627_v41 = vpop.f32.mrb[51].mxu0  ;;  %2110 = vmatprep.mubr.msk.f32.mxu1 %vm970_vm2, %v903_v37 }
 0x16f   :  { %v904_v42 = vmax.f32 %v626_v40, 0.0 }
 0x170   :  { %v630_v44 = vpop.f32.mrb[52].mxu0 }
 0x171   :  { %v631_v45 = vadd.f32 %v2956_v11, %v630_v44  ;;  %v632_v46 = vpop.f32.mrb[53].mxu0  ;;  %2111 = vmatmul.mubr.msk.f32.gmra.mrb[62].mxu1 %vm970_vm2, %v904_v42 }
 0x173   :  { %v905_v48 = vmax.f32 %v631_v45, 0.0 }
 0x174   :  { %v635_v49 = vpop.f32.mrb[54].mxu0 }
 0x175   :  { %v636_v50 = vadd.f32 %v2956_v11, %v635_v49  ;;  %v637_v52 = vpop.f32.mrb[55].mxu0  ;;  %2113 = vmatprep.mubr.msk.f32.mxu1 %vm970_vm2, %v905_v48 }
 0x177   :  { %v906_v53 = vmax.f32 %v636_v50, 0.0 }
 0x178   :  { %v640_v54 = vpop.f32.mrb[56].mxu0 }
 0x179   :  { %v641_v56 = vadd.f32 %v2956_v11, %v640_v54  ;;  %v642_v57 = vpop.f32.mrb[57].mxu0  ;;  %2114 = vmatmul.mubr.msk.f32.gmra.mrb[64].mxu1 %vm970_vm2, %v906_v53 }
 0x17b   :  { %v907_v58 = vmax.f32 %v641_v56, 0.0 }
 0x17c   :  { %v645_v60 = vpop.f32.mrb[58].mxu0 }
 0x17d   :  { %v646_v61 = vadd.f32 %v2956_v11, %v645_v60  ;;  %v647_v62 = vpop.f32.mrb[59].mxu0  ;;  %2116 = vmatprep.mubr.msk.f32.mxu1 %vm970_vm2, %v907_v58 }
 0x17f   :  { %v908_v0 = vmax.f32 %v646_v61, 0.0 }
 0x180   :  { %v650_v1 = vpop.f32.mrb[60].mxu0 }
 0x181   :  { %v651_v2 = vadd.f32 %v2956_v11, %v650_v1  ;;  %v652_v4 = vpop.f32.mrb[61].mxu0  ;;  %2117 = vmatmul.mubr.msk.f32.gmra.mrb[66].mxu1 %vm970_vm2, %v908_v0 }
 0x183   :  { %v909_v5 = vmax.f32 %v651_v2, 0.0 }
 0x184   :  { %v655_v6 = vpop.f32.mrb[62].mxu0 }
 0x185   :  { %v656_v8 = vadd.f32 %v2956_v11, %v655_v6  ;;  %v657_v9 = vpop.f32.mrb[63].mxu0  ;;  %2119 = vmatprep.mubr.msk.f32.mxu1 %vm970_vm2, %v909_v5 }
 0x187   :  { %v910_v12 = vmax.f32 %v656_v8, 0.0 }
 0x188   :  { %v660_v14 = vpop.f32.mrb[64].mxu0 }
 0x189   :  { %v661_v16 = vadd.f32 %v2956_v11, %v660_v14  ;;  %v662_v17 = vpop.f32.mrb[65].mxu0  ;;  %2120 = vmatmul.mubr.msk.f32.gmra.mrb[68].mxu1 %vm970_vm2, %v910_v12 }
 0x18b   :  { %v911_v20 = vmax.f32 %v661_v16, 0.0 }
 0x18c   :  { %v665_v21 = vpop.f32.mrb[66].mxu0 }
 0x18d   :  { %v666_v22 = vadd.f32 %v2956_v11, %v665_v21  ;;  %v667_v25 = vpop.f32.mrb[67].mxu0  ;;  %2122 = vmatprep.mubr.msk.f32.mxu1 %vm970_vm2, %v911_v20 }
 0x18f   :  { %v912_v26 = vmax.f32 %v666_v22, 0.0 }
 0x190   :  { %v670_v28 = vpop.f32.mrb[68].mxu0 }
 0x191   :  { %v671_v29 = vadd.f32 %v2956_v11, %v670_v28  ;;  %v672_v30 = vpop.f32.mrb[69].mxu0  ;;  %2123 = vmatmul.mubr.msk.f32.gmra.mrb[70].mxu1 %vm970_vm2, %v912_v26 }
 0x193   :  { %v913_v32 = vmax.f32 %v671_v29, 0.0 }
 0x194   :  { %v675_v33 = vpop.f32.mrb[70].mxu0 }
 0x195   :  { %v676_v34 = vadd.f32 %v2956_v11, %v675_v33  ;;  %v677_v36 = vpop.f32.mrb[71].mxu0  ;;  %2125 = vmatprep.mubr.msk.f32.mxu1 %vm970_vm2, %v913_v32 }
 0x197   :  { %v914_v37 = vmax.f32 %v676_v34, 0.0 }
 0x198   :  { %v680_v38 = vpop.f32.mrb[72].mxu0 }
 0x199   :  { %v681_v40 = vadd.f32 %v2956_v11, %v680_v38  ;;  %v682_v41 = vpop.f32.mrb[73].mxu0  ;;  %2126 = vmatmul.mubr.msk.f32.gmra.mrb[72].mxu1 %vm970_vm2, %v914_v37 }
 0x19b   :  { %v915_v42 = vmax.f32 %v681_v40, 0.0 }
 0x19c   :  { %v685_v44 = vpop.f32.mrb[74].mxu0 }
 0x19d   :  { %v686_v45 = vadd.f32 %v2956_v11, %v685_v44  ;;  %v687_v46 = vpop.f32.mrb[75].mxu0  ;;  %2128 = vmatprep.mubr.msk.f32.mxu1 %vm970_vm2, %v915_v42 }
 0x19f   :  { %v916_v48 = vmax.f32 %v686_v45, 0.0 }
 0x1a0   :  { %v690_v49 = vpop.f32.mrb[76].mxu0 }
 0x1a1   :  { %v691_v50 = vadd.f32 %v2956_v11, %v690_v49  ;;  %v692_v52 = vpop.f32.mrb[77].mxu0  ;;  %2129 = vmatmul.mubr.msk.f32.gmra.mrb[74].mxu1 %vm970_vm2, %v916_v48 }
 0x1a3   :  { %v917_v53 = vmax.f32 %v691_v50, 0.0 }
 0x1a4   :  { %v695_v54 = vpop.f32.mrb[78].mxu0 }
 0x1a5   :  { %v696_v56 = vadd.f32 %v2956_v11, %v695_v54  ;;  %v697_v57 = vpop.f32.mrb[79].mxu0  ;;  %2131 = vmatprep.mubr.msk.f32.mxu1 %vm970_vm2, %v917_v53 }
 0x1a7   :  { %v918_v58 = vmax.f32 %v696_v56, 0.0 }
 0x1a8   :  { %v700_v60 = vpop.f32.mrb[80].mxu0 }
 0x1a9   :  { %v701_v61 = vadd.f32 %v2956_v11, %v700_v60  ;;  %v702_v62 = vpop.f32.mrb[81].mxu0  ;;  %2132 = vmatmul.mubr.msk.f32.gmra.mrb[76].mxu1 %vm970_vm2, %v918_v58 }
 0x1ab   :  { %v919_v0 = vmax.f32 %v701_v61, 0.0 }
 0x1ac   :  { %v705_v1 = vpop.f32.mrb[82].mxu0 }
 0x1ad   :  { %v706_v2 = vadd.f32 %v2956_v11, %v705_v1  ;;  %v707_v4 = vpop.f32.mrb[83].mxu0  ;;  %2134 = vmatprep.mubr.msk.f32.mxu1 %vm970_vm2, %v919_v0 }
 0x1af   :  { %v920_v5 = vmax.f32 %v706_v2, 0.0 }
 0x1b0   :  { %v710_v6 = vpop.f32.mrb[84].mxu0 }
 0x1b1   :  { %v711_v8 = vadd.f32 %v2956_v11, %v710_v6  ;;  %v712_v9 = vpop.f32.mrb[85].mxu0  ;;  %2135 = vmatmul.mubr.msk.f32.gmra.mrb[78].mxu1 %vm970_vm2, %v920_v5 }
 0x1b3   :  { %v921_v12 = vmax.f32 %v711_v8, 0.0 }
 0x1b4   :  { %v715_v14 = vpop.f32.mrb[86].mxu0 }
 0x1b5   :  { %v716_v16 = vadd.f32 %v2956_v11, %v715_v14  ;;  %v717_v17 = vpop.f32.mrb[87].mxu0  ;;  %2137 = vmatprep.mubr.msk.f32.mxu1 %vm970_vm2, %v921_v12 }
 0x1b7   :  { %v922_v20 = vmax.f32 %v716_v16, 0.0 }
 0x1b8   :  { %v720_v21 = vpop.f32.mrb[88].mxu0 }
 0x1b9   :  { %v721_v22 = vadd.f32 %v2956_v11, %v720_v21  ;;  %v722_v25 = vpop.f32.mrb[89].mxu0  ;;  %2138 = vmatmul.mubr.msk.f32.gmra.mrb[80].mxu1 %vm970_vm2, %v922_v20  ;;  %v3133_v20 = vstv %s3581_s4 }
 0x1bb   :  { %v923_v26 = vmax.f32 %v721_v22, 0.0 }
 0x1bc   :  { %v725_v28 = vpop.f32.mrb[90].mxu0 }
 0x1bd   :  { %v726_v29 = vadd.f32 %v2956_v11, %v725_v28  ;;  %v727_v30 = vpop.f32.mrb[91].mxu0  ;;  %2140 = vmatprep.mubr.msk.f32.mxu1 %vm970_vm2, %v923_v26 }
 0x1bf   :  { %v924_v32 = vmax.f32 %v726_v29, 0.0 }
 0x1c0   :  { %v730_v33 = vpop.f32.mrb[92].mxu0 }
 0x1c1   :  { %v731_v34 = vadd.f32 %v2956_v11, %v730_v33  ;;  %v732_v36 = vpop.f32.mrb[93].mxu0  ;;  %2141 = vmatmul.mubr.msk.f32.gmra.mrb[82].mxu1 %vm970_vm2, %v924_v32 }
 0x1c2   :  { %v786_v36 = vadd.f32 %v2956_v11, %v3010_v10 }
 0x1c3   :  { %v925_v37 = vmax.f32 %v731_v34, 0.0 }
 0x1c4   :  { %v735_v38 = vpop.f32.mrb[94].mxu0 }
 0x1c5   :  { %v736_v40 = vadd.f32 %v2956_v11, %v735_v38  ;;  %v737_v41 = vpop.f32.mrb[95].mxu0  ;;  %2143 = vmatprep.mubr.msk.f32.mxu1 %vm970_vm2, %v925_v37 }
 0x1c7   :  { %v926_v42 = vmax.f32 %v736_v40, 0.0  ;;  %v791_v40 = vadd.f32 %v2956_v11, %v3012_v15  ;;  %v796_v15 = vadd.f32 %v2956_v11, %v3016_v19  ;;  %v806_v19 = vadd.f32 %v2956_v11, %v3022_v27 }
 0x1c8   :  { %v740_v44 = vpop.f32.mrb[96].mxu0 }
 0x1c9   :  { %v741_v45 = vadd.f32 %v2956_v11, %v740_v44  ;;  %v742_v46 = vpop.f32.mrb[97].mxu0  ;;  %2144 = vmatmul.mubr.msk.f32.gmra.mrb[84].mxu1 %vm970_vm2, %v926_v42  ;;  %v936_v44 = vmax.f32 %v786_v36, 0.0  ;;  %v940_v27 = vmax.f32 %v806_v19, 0.0  ;;  %v871_v36 = vadd.f32 %v2956_v11, %v3060_v18 }
 0x1ca   :  { %v937_v46 = vmax.f32 %v791_v40, 0.0 }
 0x1cb   :  { %v927_v48 = vmax.f32 %v741_v45, 0.0  ;;  %v953_v18 = vmax.f32 %v871_v36, 0.0 }
 0x1cc   :  { %v745_v49 = vpop.f32.mrb[98].mxu0 }
 0x1cd   :  { %v746_v50 = vadd.f32 %v2956_v11, %v745_v49  ;;  %v747_v52 = vpop.f32.mrb[99].mxu0  ;;  %2146 = vmatprep.mubr.msk.f32.mxu1 %vm970_vm2, %v927_v48  ;;  %v801_v48 = vadd.f32 %v2956_v11, %v3018_v23  ;;  %v811_v23 = vadd.f32 %v2956_v11, %v3024_v31 }
 0x1cf   :  { %v928_v53 = vmax.f32 %v746_v50, 0.0  ;;  %v941_v31 = vmax.f32 %v811_v23, 0.0 }
 0x1d0   :  { %v750_v54 = vpop.f32.mrb[100].mxu0 }
 0x1d1   :  { %v751_v56 = vadd.f32 %v2956_v11, %v750_v54  ;;  %v752_v57 = vpop.f32.mrb[101].mxu0  ;;  %2147 = vmatmul.mubr.msk.f32.gmra.mrb[86].mxu1 %vm970_vm2, %v928_v53  ;;  %v938_v54 = vmax.f32 %v796_v15, 0.0 }
 0x1d2   :  { %v939_v57 = vmax.f32 %v801_v48, 0.0 }
 0x1d3   :  { %v929_v58 = vmax.f32 %v751_v56, 0.0 }
 0x1d4   :  { %v755_v60 = vpop.f32.mrb[102].mxu0 }
 0x1d5   :  { %v756_v61 = vadd.f32 %v2956_v11, %v755_v60  ;;  %v757_v62 = vpop.f32.mrb[103].mxu0  ;;  %2149 = vmatprep.mubr.msk.f32.mxu1 %vm970_vm2, %v929_v58  ;;  %v816_v58 = vadd.f32 %v2956_v11, %v3028_v35 }
 0x1d7   :  { %v930_v0 = vmax.f32 %v756_v61, 0.0  ;;  %v821_v61 = vadd.f32 %v2956_v11, %v3030_v39 }
 0x1d8   :  { %v760_v1 = vpop.f32.mrb[104].mxu0 }
 0x1d9   :  { %v761_v2 = vadd.f32 %v2956_v11, %v760_v1  ;;  %v762_v4 = vpop.f32.mrb[105].mxu0  ;;  %2150 = vmatmul.mubr.msk.f32.gmra.mrb[88].mxu1 %vm970_vm2, %v930_v0 }
 0x1da   :  { %v942_v4 = vmax.f32 %v816_v58, 0.0 }
 0x1db   :  { %v931_v5 = vmax.f32 %v761_v2, 0.0 }
 0x1dc   :  { %v765_v6 = vpop.f32.mrb[106].mxu0 }
 0x1dd   :  { %v766_v8 = vadd.f32 %v2956_v11, %v765_v6  ;;  %v767_v9 = vpop.f32.mrb[107].mxu0  ;;  %2152 = vmatprep.mubr.msk.f32.mxu1 %vm970_vm2, %v931_v5  ;;  %v826_v5 = vadd.f32 %v2956_v11, %v3034_v43  ;;  %v943_v6 = vmax.f32 %v821_v61, 0.0  ;;  %v836_v43 = vadd.f32 %v2956_v11, %v3040_v51 }
 0x1df   :  { %v932_v12 = vmax.f32 %v766_v8, 0.0  ;;  %v831_v8 = vadd.f32 %v2956_v11, %v3036_v47  ;;  %v944_v39 = vmax.f32 %v826_v5, 0.0 }
 0x1e0   :  { %v770_v14 = vpop.f32.mrb[108].mxu0 }
 0x1e1   :  { %v771_v16 = vadd.f32 %v2956_v11, %v770_v14  ;;  %v772_v17 = vpop.f32.mrb[109].mxu0  ;;  %2153 = vmatmul.mubr.msk.f32.gmra.mrb[90].mxu1 %vm970_vm2, %v932_v12  ;;  %v945_v47 = vmax.f32 %v831_v8, 0.0  ;;  %v841_v12 = vadd.f32 %v2956_v11, %v3042_v55 }
 0x1e3   :  { %v933_v21 = vmax.f32 %v771_v16, 0.0 }
 0x1e4   :  { %v775_v22 = vpop.f32.mrb[110].mxu0  ;;  %v2076_v25 = vpop.f32.mrb[38].mxu1 }
 0x1e5   :  { %v776_v26 = vadd.f32 %v2956_v11, %v775_v22  ;;  %v1275_v28 = vadd.f32 %v2076_v25, %v3133_v20  ;;  %v777_v29 = vpop.f32.mrb[111].mxu0  ;;  %v1269_v30 = vpop.f32.mrb[39].mxu1  ;;  %2155 = vmatprep.mubr.msk.f32.mxu1 %vm970_vm2, %v933_v21  ;;  %v946_v22 = vmax.f32 %v836_v43, 0.0  ;;  %v846_v25 = vadd.f32 %v2956_v11, %v3046_v59 }
 0x1e6   :  { %v1270_v32 = vadd.f32 %v1269_v30, %v3133_v20  ;;  %v856_v59 = vadd.f32 %v2956_v11, %v3052_v3  ;;  %v861_v30 = vadd.f32 %v2956_v11, %v3054_v7  ;;  %v866_v3 = vadd.f32 %v2956_v11, %v3058_v13 }
 0x1e7   :  { %v934_v33 = vmax.f32 %v776_v26, 0.0  ;;  %v1649_v34 = vmax.f32 %v1275_v28, 0.0  ;;  %v947_v26 = vmax.f32 %v841_v12, 0.0  ;;  %v851_v28 = vadd.f32 %v2956_v11, %v3048_v63 }
 0x1e8   :  { %v1648_v37 = vmax.f32 %v1270_v32, 0.0  ;;  %v780_v38 = vpop.f32.mrb[112].mxu0  ;;  %v948_v55 = vmax.f32 %v846_v25, 0.0  ;;  %v876_v7 = vadd.f32 %v2956_v11, %v3064_v24  ;;  %v952_v13 = vmax.f32 %v866_v3, 0.0 }
 0x1e9   :  { %1726 = vst.msk [vmem:[%s3582_s5 + $0x8] sm:$0xff] %vm1724_vm3, %v1649_v34  ;;  %v781_v41 = vadd.f32 %v2956_v11, %v780_v38  ;;  %v782_v42 = vpop.f32.mrb[113].mxu0  ;;  %2156 = vmatmul.mubr.msk.f32.gmra.mrb[92].mxu1 %vm970_vm2, %v934_v33  ;;  %v949_v63 = vmax.f32 %v851_v28, 0.0  ;;  %v950_v38 = vmax.f32 %v856_v59, 0.0 }
 0x1ea   :  { %1725 = vst.msk [vmem:[%s3582_s5] sm:$0xff] %vm1724_vm3, %v1648_v37  ;;  %v954_v15 = vmax.f32 %v876_v7, 0.0 }
 0x1eb   :  { %v935_v10 = vmax.f32 %v781_v41, 0.0  ;;  %v951_v41 = vmax.f32 %v861_v30, 0.0 }
 0x1ec   :  { %v2079_v45 = vpop.f32.mrb[40].mxu1 }
 0x1ed   :  { %v1285_v49 = vadd.f32 %v2079_v45, %v3133_v20  ;;  %v1279_v50 = vpop.f32.mrb[41].mxu1  ;;  %2158 = vmatprep.mubr.msk.f32.mxu1 %vm970_vm2, %v935_v10 }
 0x1ee   :  { %v1280_v52 = vadd.f32 %v1279_v50, %v3133_v20  ;;  %2159 = vmatmul.mubr.msk.f32.gmra.mrb[94].mxu1 %vm970_vm2, %v936_v44 }
 0x1ef   :  { %v1651_v53 = vmax.f32 %v1285_v49, 0.0  ;;  %2161 = vmatprep.mubr.msk.f32.mxu1 %vm970_vm2, %v937_v46 }
 0x1f0   :  { %v1650_v56 = vmax.f32 %v1280_v52, 0.0 }
 0x1f1   :  { %1728 = vst.msk [vmem:[%s3582_s5 + $0x18] sm:$0xff] %vm1724_vm3, %v1651_v53 }
 0x1f2   :  { %1727 = vst.msk [vmem:[%s3582_s5 + $0x10] sm:$0xff] %vm1724_vm3, %v1650_v56  ;;  %2162 = vmatmul.mubr.msk.f32.gmra.mrb[96].mxu1 %vm970_vm2, %v938_v54 }
 0x1f3   :  { %2164 = vmatprep.mubr.msk.f32.mxu1 %vm970_vm2, %v939_v57 }
 0x1f4   :  { %v2082_v60 = vpop.f32.mrb[42].mxu1 }
 0x1f5   :  { %v1295_v62 = vadd.f32 %v2082_v60, %v3133_v20  ;;  %v1289_v0 = vpop.f32.mrb[43].mxu1 }
 0x1f6   :  { %v1290_v1 = vadd.f32 %v1289_v0, %v3133_v20  ;;  %2165 = vmatmul.mubr.msk.f32.gmra.mrb[98].mxu1 %vm970_vm2, %v940_v27 }
 0x1f7   :  { %v1653_v2 = vmax.f32 %v1295_v62, 0.0  ;;  %2167 = vmatprep.mubr.msk.f32.mxu1 %vm970_vm2, %v941_v31 }
 0x1f8   :  { %v1652_v35 = vmax.f32 %v1290_v1, 0.0 }
 0x1f9   :  { %1730 = vst.msk [vmem:[%s3582_s5 + $0x28] sm:$0xff] %vm1724_vm3, %v1653_v2 }
 0x1fa   :  { %1729 = vst.msk [vmem:[%s3582_s5 + $0x20] sm:$0xff] %vm1724_vm3, %v1652_v35  ;;  %2168 = vmatmul.mubr.msk.f32.gmra.mrb[100].mxu1 %vm970_vm2, %v942_v4 }
 0x1fb   :  { %2170 = vmatprep.mubr.msk.f32.mxu1 %vm970_vm2, %v943_v6 }
 0x1fc   :  { %v2085_v9 = vpop.f32.mrb[44].mxu1 }
 0x1fd   :  { %v1305_v14 = vadd.f32 %v2085_v9, %v3133_v20  ;;  %v1299_v16 = vpop.f32.mrb[45].mxu1 }
 0x1fe   :  { %v1300_v17 = vadd.f32 %v1299_v16, %v3133_v20  ;;  %2171 = vmatmul.mubr.msk.f32.gmra.mrb[102].mxu1 %vm970_vm2, %v944_v39 }
 0x1ff   :  { %v1655_v21 = vmax.f32 %v1305_v14, 0.0  ;;  %2173 = vmatprep.mubr.msk.f32.mxu1 %vm970_vm2, %v945_v47 }
 0x200   :  { %v1654_v51 = vmax.f32 %v1300_v17, 0.0 }
 0x201   :  { %1732 = vst.msk [vmem:[%s3582_s5 + $0x38] sm:$0xff] %vm1724_vm3, %v1655_v21 }
 0x202   :  { %1731 = vst.msk [vmem:[%s3582_s5 + $0x30] sm:$0xff] %vm1724_vm3, %v1654_v51  ;;  %2174 = vmatmul.mubr.msk.f32.gmra.mrb[104].mxu1 %vm970_vm2, %v946_v22 }
 0x203   :  { %2176 = vmatprep.mubr.msk.f32.mxu1 %vm970_vm2, %v947_v26 }
 0x204   :  { %v2088_v29 = vpop.f32.mrb[46].mxu1 }
 0x205   :  { %v1315_v32 = vadd.f32 %v2088_v29, %v3133_v20  ;;  %v1309_v33 = vpop.f32.mrb[47].mxu1 }
 0x206   :  { %v1310_v34 = vadd.f32 %v1309_v33, %v3133_v20  ;;  %2177 = vmatmul.mubr.msk.f32.gmra.mrb[106].mxu1 %vm970_vm2, %v948_v55 }
 0x207   :  { %v1657_v37 = vmax.f32 %v1315_v32, 0.0  ;;  %2179 = vmatprep.mubr.msk.f32.mxu1 %vm970_vm2, %v949_v63 }
 0x208   :  { %v1656_v40 = vmax.f32 %v1310_v34, 0.0 }
 0x209   :  { %1734 = vst.msk [vmem:[%s3582_s5 + $0x48] sm:$0xff] %vm1724_vm3, %v1657_v37 }
 0x20a   :  { %1733 = vst.msk [vmem:[%s3582_s5 + $0x40] sm:$0xff] %vm1724_vm3, %v1656_v40  ;;  %2180 = vmatmul.mubr.msk.f32.gmra.mrb[108].mxu1 %vm970_vm2, %v950_v38 }
 0x20b   :  { %2182 = vmatprep.mubr.msk.f32.mxu1 %vm970_vm2, %v951_v41 }
 0x20c   :  { %v2091_v42 = vpop.f32.mrb[48].mxu1 }
 0x20d   :  { %v1325_v10 = vadd.f32 %v2091_v42, %v3133_v20  ;;  %v1319_v44 = vpop.f32.mrb[49].mxu1 }
 0x20e   :  { %v1320_v45 = vadd.f32 %v1319_v44, %v3133_v20  ;;  %2183 = vmatmul.mubr.msk.f32.gmra.mrb[110].mxu1 %vm970_vm2, %v952_v13 }
 0x20f   :  { %v1659_v11 = vmax.f32 %v1325_v10, 0.0  ;;  %2185 = vmatprep.mubr.msk.f32.mxu1 %vm970_vm2, %v953_v18 }
 0x210   :  { %v1658_v24 = vmax.f32 %v1320_v45, 0.0 }
 0x211   :  { %1736 = vst.msk [vmem:[%s3582_s5 + $0x58] sm:$0xff] %vm1724_vm3, %v1659_v11 }
 0x212   :  { %1735 = vst.msk [vmem:[%s3582_s5 + $0x50] sm:$0xff] %vm1724_vm3, %v1658_v24  ;;  %2186 = vmatmul.mubr.msk.f32.gmra.mrb[112].mxu1 %vm970_vm2, %v954_v15 }
 0x214   :  { %v2094_v46 = vpop.f32.mrb[50].mxu1 }
 0x215   :  { %v1335_v48 = vadd.f32 %v2094_v46, %v3133_v20  ;;  %v1329_v49 = vpop.f32.mrb[51].mxu1 }
 0x216   :  { %v1330_v50 = vadd.f32 %v1329_v49, %v3133_v20 }
 0x217   :  { %v1661_v52 = vmax.f32 %v1335_v48, 0.0 }
 0x218   :  { %v1660_v53 = vmax.f32 %v1330_v50, 0.0 }
 0x219   :  { %1738 = vst.msk [vmem:[%s3582_s5 + $0x68] sm:$0xff] %vm1724_vm3, %v1661_v52 }
 0x21a   :  { %1737 = vst.msk [vmem:[%s3582_s5 + $0x60] sm:$0xff] %vm1724_vm3, %v1660_v53 }
 0x21c   :  { %v2097_v54 = vpop.f32.mrb[52].mxu1 }
 0x21d   :  { %v1345_v19 = vadd.f32 %v2097_v54, %v3133_v20  ;;  %v1339_v56 = vpop.f32.mrb[53].mxu1 }
 0x21e   :  { %v1340_v57 = vadd.f32 %v1339_v56, %v3133_v20 }
 0x21f   :  { %v1663_v23 = vmax.f32 %v1345_v19, 0.0 }
 0x220   :  { %v1662_v27 = vmax.f32 %v1340_v57, 0.0 }
 0x221   :  { %1740 = vst.msk [vmem:[%s3582_s5 + $0x78] sm:$0xff] %vm1724_vm3, %v1663_v23 }
 0x222   :  { %1739 = vst.msk [vmem:[%s3582_s5 + $0x70] sm:$0xff] %vm1724_vm3, %v1662_v27 }
 0x224   :  { %v2100_v58 = vpop.f32.mrb[54].mxu1 }
 0x225   :  { %v1355_v60 = vadd.f32 %v2100_v58, %v3133_v20  ;;  %v1349_v31 = vpop.f32.mrb[55].mxu1 }
 0x226   :  { %v1350_v61 = vadd.f32 %v1349_v31, %v3133_v20 }
 0x227   :  { %v1665_v62 = vmax.f32 %v1355_v60, 0.0 }
 0x228   :  { %v1664_v0 = vmax.f32 %v1350_v61, 0.0 }
 0x229   :  { %1742 = vst.msk [vmem:[%s3582_s5 + $0x88] sm:$0xff] %vm1724_vm3, %v1665_v62 }
 0x22a   :  { %1741 = vst.msk [vmem:[%s3582_s5 + $0x80] sm:$0xff] %vm1724_vm3, %v1664_v0 }
 0x22c   :  { %v2103_v1 = vpop.f32.mrb[56].mxu1 }
 0x22d   :  { %v1365_v2 = vadd.f32 %v2103_v1, %v3133_v20  ;;  %v1359_v4 = vpop.f32.mrb[57].mxu1 }
 0x22e   :  { %v1360_v5 = vadd.f32 %v1359_v4, %v3133_v20 }
 0x22f   :  { %v1667_v35 = vmax.f32 %v1365_v2, 0.0 }
 0x230   :  { %v1666_v6 = vmax.f32 %v1360_v5, 0.0 }
 0x231   :  { %1744 = vst.msk [vmem:[%s3582_s5 + $0x98] sm:$0xff] %vm1724_vm3, %v1667_v35 }
 0x232   :  { %1743 = vst.msk [vmem:[%s3582_s5 + $0x90] sm:$0xff] %vm1724_vm3, %v1666_v6 }
 0x234   :  { %v2106_v8 = vpop.f32.mrb[58].mxu1 }
 0x235   :  { %v1375_v39 = vadd.f32 %v2106_v8, %v3133_v20  ;;  %v1369_v43 = vpop.f32.mrb[59].mxu1 }
 0x236   :  { %v1370_v9 = vadd.f32 %v1369_v43, %v3133_v20 }
 0x237   :  { %v1669_v47 = vmax.f32 %v1375_v39, 0.0 }
 0x238   :  { %v1668_v12 = vmax.f32 %v1370_v9, 0.0 }
 0x239   :  { %1746 = vst.msk [vmem:[%s3582_s5 + $0xa8] sm:$0xff] %vm1724_vm3, %v1669_v47 }
 0x23a   :  { %1745 = vst.msk [vmem:[%s3582_s5 + $0xa0] sm:$0xff] %vm1724_vm3, %v1668_v12 }
 0x23c   :  { %v2109_v14 = vpop.f32.mrb[60].mxu1 }
 0x23d   :  { %v1385_v16 = vadd.f32 %v2109_v14, %v3133_v20  ;;  %v1379_v17 = vpop.f32.mrb[61].mxu1 }
 0x23e   :  { %v1380_v21 = vadd.f32 %v1379_v17, %v3133_v20 }
 0x23f   :  { %v1671_v22 = vmax.f32 %v1385_v16, 0.0 }
 0x240   :  { %v1670_v25 = vmax.f32 %v1380_v21, 0.0 }
 0x241   :  { %1748 = vst.msk [vmem:[%s3582_s5 + $0xb8] sm:$0xff] %vm1724_vm3, %v1671_v22 }
 0x242   :  { %1747 = vst.msk [vmem:[%s3582_s5 + $0xb0] sm:$0xff] %vm1724_vm3, %v1670_v25 }
 0x244   :  { %v2112_v51 = vpop.f32.mrb[62].mxu1 }
 0x245   :  { %v1395_v26 = vadd.f32 %v2112_v51, %v3133_v20  ;;  %v1389_v28 = vpop.f32.mrb[63].mxu1 }
 0x246   :  { %v1390_v55 = vadd.f32 %v1389_v28, %v3133_v20 }
 0x247   :  { %v1673_v59 = vmax.f32 %v1395_v26, 0.0 }
 0x248   :  { %v1672_v29 = vmax.f32 %v1390_v55, 0.0 }
 0x249   :  { %1750 = vst.msk [vmem:[%s3582_s5 + $0xc8] sm:$0xff] %vm1724_vm3, %v1673_v59 }
 0x24a   :  { %1749 = vst.msk [vmem:[%s3582_s5 + $0xc0] sm:$0xff] %vm1724_vm3, %v1672_v29 }
 0x24c   :  { %v2115_v63 = vpop.f32.mrb[64].mxu1 }
 0x24d   :  { %v1405_v30 = vadd.f32 %v2115_v63, %v3133_v20  ;;  %v1399_v32 = vpop.f32.mrb[65].mxu1 }
 0x24e   :  { %v1400_v33 = vadd.f32 %v1399_v32, %v3133_v20 }
 0x24f   :  { %v1675_v34 = vmax.f32 %v1405_v30, 0.0 }
 0x250   :  { %v1674_v36 = vmax.f32 %v1400_v33, 0.0 }
 0x251   :  { %1752 = vst.msk [vmem:[%s3582_s5 + $0xd8] sm:$0xff] %vm1724_vm3, %v1675_v34 }
 0x252   :  { %1751 = vst.msk [vmem:[%s3582_s5 + $0xd0] sm:$0xff] %vm1724_vm3, %v1674_v36 }
 0x254   :  { %v2118_v37 = vpop.f32.mrb[66].mxu1 }
 0x255   :  { %v1415_v38 = vadd.f32 %v2118_v37, %v3133_v20  ;;  %v1409_v3 = vpop.f32.mrb[67].mxu1 }
 0x256   :  { %v1410_v40 = vadd.f32 %v1409_v3, %v3133_v20 }
 0x257   :  { %v1677_v41 = vmax.f32 %v1415_v38, 0.0 }
 0x258   :  { %v1676_v7 = vmax.f32 %v1410_v40, 0.0 }
 0x259   :  { %1754 = vst.msk [vmem:[%s3582_s5 + $0xe8] sm:$0xff] %vm1724_vm3, %v1677_v41 }
 0x25a   :  { %1753 = vst.msk [vmem:[%s3582_s5 + $0xe0] sm:$0xff] %vm1724_vm3, %v1676_v7 }
 0x25c   :  { %v2121_v18 = vpop.f32.mrb[68].mxu1 }
 0x25d   :  { %v1425_v13 = vadd.f32 %v2121_v18, %v3133_v20  ;;  %v1419_v42 = vpop.f32.mrb[69].mxu1 }
 0x25e   :  { %v1420_v10 = vadd.f32 %v1419_v42, %v3133_v20 }
 0x25f   :  { %v1679_v44 = vmax.f32 %v1425_v13, 0.0 }
 0x260   :  { %v1678_v15 = vmax.f32 %v1420_v10, 0.0 }
 0x261   :  { %1756 = vst.msk [vmem:[%s3582_s5 + $0xf8] sm:$0xff] %vm1724_vm3, %v1679_v44 }
 0x262   :  { %1755 = vst.msk [vmem:[%s3582_s5 + $0xf0] sm:$0xff] %vm1724_vm3, %v1678_v15 }
 0x264   :  { %v2124_v45 = vpop.f32.mrb[70].mxu1 }
 0x265   :  { %v1435_v11 = vadd.f32 %v2124_v45, %v3133_v20  ;;  %v1429_v24 = vpop.f32.mrb[71].mxu1 }
 0x266   :  { %v1430_v46 = vadd.f32 %v1429_v24, %v3133_v20 }
 0x267   :  { %v1681_v48 = vmax.f32 %v1435_v11, 0.0 }
 0x268   :  { %v1680_v49 = vmax.f32 %v1430_v46, 0.0 }
 0x269   :  { %1758 = vst.msk [vmem:[%s3582_s5 + $0x108] sm:$0xff] %vm1724_vm3, %v1681_v48 }
 0x26a   :  { %1757 = vst.msk [vmem:[%s3582_s5 + $0x100] sm:$0xff] %vm1724_vm3, %v1680_v49 }
 0x26c   :  { %v2127_v50 = vpop.f32.mrb[72].mxu1 }
 0x26d   :  { %v1445_v52 = vadd.f32 %v2127_v50, %v3133_v20  ;;  %v1439_v53 = vpop.f32.mrb[73].mxu1 }
 0x26e   :  { %v1440_v54 = vadd.f32 %v1439_v53, %v3133_v20 }
 0x26f   :  { %v1683_v19 = vmax.f32 %v1445_v52, 0.0 }
 0x270   :  { %v1682_v56 = vmax.f32 %v1440_v54, 0.0 }
 0x271   :  { %1760 = vst.msk [vmem:[%s3582_s5 + $0x118] sm:$0xff] %vm1724_vm3, %v1683_v19 }
 0x272   :  { %1759 = vst.msk [vmem:[%s3582_s5 + $0x110] sm:$0xff] %vm1724_vm3, %v1682_v56 }
 0x274   :  { %v2130_v57 = vpop.f32.mrb[74].mxu1 }
 0x275   :  { %v1455_v23 = vadd.f32 %v2130_v57, %v3133_v20  ;;  %v1449_v27 = vpop.f32.mrb[75].mxu1 }
 0x276   :  { %v1450_v58 = vadd.f32 %v1449_v27, %v3133_v20 }
 0x277   :  { %v1685_v60 = vmax.f32 %v1455_v23, 0.0 }
 0x278   :  { %v1684_v31 = vmax.f32 %v1450_v58, 0.0 }
 0x279   :  { %1762 = vst.msk [vmem:[%s3582_s5 + $0x128] sm:$0xff] %vm1724_vm3, %v1685_v60 }
 0x27a   :  { %1761 = vst.msk [vmem:[%s3582_s5 + $0x120] sm:$0xff] %vm1724_vm3, %v1684_v31 }
 0x27c   :  { %v2133_v61 = vpop.f32.mrb[76].mxu1 }
 0x27d   :  { %v1465_v62 = vadd.f32 %v2133_v61, %v3133_v20  ;;  %v1459_v0 = vpop.f32.mrb[77].mxu1 }
 0x27e   :  { %v1460_v1 = vadd.f32 %v1459_v0, %v3133_v20 }
 0x27f   :  { %v1687_v2 = vmax.f32 %v1465_v62, 0.0 }
 0x280   :  { %v1686_v4 = vmax.f32 %v1460_v1, 0.0 }
 0x281   :  { %1764 = vst.msk [vmem:[%s3582_s5 + $0x138] sm:$0xff] %vm1724_vm3, %v1687_v2 }
 0x282   :  { %1763 = vst.msk [vmem:[%s3582_s5 + $0x130] sm:$0xff] %vm1724_vm3, %v1686_v4 }
 0x284   :  { %v2136_v5 = vpop.f32.mrb[78].mxu1 }
 0x285   :  { %v1475_v35 = vadd.f32 %v2136_v5, %v3133_v20  ;;  %v1469_v6 = vpop.f32.mrb[79].mxu1 }
 0x286   :  { %v1470_v8 = vadd.f32 %v1469_v6, %v3133_v20 }
 0x287   :  { %v1689_v39 = vmax.f32 %v1475_v35, 0.0 }
 0x288   :  { %v1688_v43 = vmax.f32 %v1470_v8, 0.0 }
 0x289   :  { %1766 = vst.msk [vmem:[%s3582_s5 + $0x148] sm:$0xff] %vm1724_vm3, %v1689_v39 }
 0x28a   :  { %1765 = vst.msk [vmem:[%s3582_s5 + $0x140] sm:$0xff] %vm1724_vm3, %v1688_v43 }
 0x28c   :  { %v2139_v9 = vpop.f32.mrb[80].mxu1 }
 0x28d   :  { %v1485_v47 = vadd.f32 %v2139_v9, %v3133_v20  ;;  %v1479_v12 = vpop.f32.mrb[81].mxu1 }
 0x28e   :  { %v1480_v14 = vadd.f32 %v1479_v12, %v3133_v20 }
 0x28f   :  { %v1691_v16 = vmax.f32 %v1485_v47, 0.0 }
 0x290   :  { %v1690_v17 = vmax.f32 %v1480_v14, 0.0 }
 0x291   :  { %1768 = vst.msk [vmem:[%s3582_s5 + $0x158] sm:$0xff] %vm1724_vm3, %v1691_v16 }
 0x292   :  { %1767 = vst.msk [vmem:[%s3582_s5 + $0x150] sm:$0xff] %vm1724_vm3, %v1690_v17 }
 0x294   :  { %v2142_v21 = vpop.f32.mrb[82].mxu1 }
 0x295   :  { %v1495_v22 = vadd.f32 %v2142_v21, %v3133_v20  ;;  %v1489_v25 = vpop.f32.mrb[83].mxu1 }
 0x296   :  { %v1490_v51 = vadd.f32 %v1489_v25, %v3133_v20 }
 0x297   :  { %v1693_v26 = vmax.f32 %v1495_v22, 0.0 }
 0x298   :  { %v1692_v28 = vmax.f32 %v1490_v51, 0.0 }
 0x299   :  { %1770 = vst.msk [vmem:[%s3582_s5 + $0x168] sm:$0xff] %vm1724_vm3, %v1693_v26 }
 0x29a   :  { %1769 = vst.msk [vmem:[%s3582_s5 + $0x160] sm:$0xff] %vm1724_vm3, %v1692_v28 }
 0x29c   :  { %v2145_v55 = vpop.f32.mrb[84].mxu1 }
 0x29d   :  { %v1505_v59 = vadd.f32 %v2145_v55, %v3133_v20  ;;  %v1499_v29 = vpop.f32.mrb[85].mxu1 }
 0x29e   :  { %v1500_v63 = vadd.f32 %v1499_v29, %v3133_v20 }
 0x29f   :  { %v1695_v30 = vmax.f32 %v1505_v59, 0.0 }
 0x2a0   :  { %v1694_v32 = vmax.f32 %v1500_v63, 0.0 }
 0x2a1   :  { %1772 = vst.msk [vmem:[%s3582_s5 + $0x178] sm:$0xff] %vm1724_vm3, %v1695_v30 }
 0x2a2   :  { %1771 = vst.msk [vmem:[%s3582_s5 + $0x170] sm:$0xff] %vm1724_vm3, %v1694_v32 }
 0x2a4   :  { %v2148_v33 = vpop.f32.mrb[86].mxu1 }
 0x2a5   :  { %v1515_v34 = vadd.f32 %v2148_v33, %v3133_v20  ;;  %v1509_v36 = vpop.f32.mrb[87].mxu1 }
 0x2a6   :  { %v1510_v37 = vadd.f32 %v1509_v36, %v3133_v20 }
 0x2a7   :  { %v1697_v38 = vmax.f32 %v1515_v34, 0.0 }
 0x2a8   :  { %v1696_v3 = vmax.f32 %v1510_v37, 0.0 }
 0x2a9   :  { %1774 = vst.msk [vmem:[%s3582_s5 + $0x188] sm:$0xff] %vm1724_vm3, %v1697_v38 }
 0x2aa   :  { %1773 = vst.msk [vmem:[%s3582_s5 + $0x180] sm:$0xff] %vm1724_vm3, %v1696_v3 }
 0x2ac   :  { %v2151_v40 = vpop.f32.mrb[88].mxu1 }
 0x2ad   :  { %v1525_v41 = vadd.f32 %v2151_v40, %v3133_v20  ;;  %v1519_v7 = vpop.f32.mrb[89].mxu1 }
 0x2ae   :  { %v1520_v18 = vadd.f32 %v1519_v7, %v3133_v20 }
 0x2af   :  { %v1699_v13 = vmax.f32 %v1525_v41, 0.0 }
 0x2b0   :  { %v1698_v42 = vmax.f32 %v1520_v18, 0.0 }
 0x2b1   :  { %1776 = vst.msk [vmem:[%s3582_s5 + $0x198] sm:$0xff] %vm1724_vm3, %v1699_v13 }
 0x2b2   :  { %1775 = vst.msk [vmem:[%s3582_s5 + $0x190] sm:$0xff] %vm1724_vm3, %v1698_v42 }
 0x2b4   :  { %v2154_v10 = vpop.f32.mrb[90].mxu1 }
 0x2b5   :  { %v1535_v44 = vadd.f32 %v2154_v10, %v3133_v20  ;;  %v1529_v15 = vpop.f32.mrb[91].mxu1 }
 0x2b6   :  { %v1530_v45 = vadd.f32 %v1529_v15, %v3133_v20 }
 0x2b7   :  { %v1701_v11 = vmax.f32 %v1535_v44, 0.0 }
 0x2b8   :  { %v1700_v24 = vmax.f32 %v1530_v45, 0.0 }
 0x2b9   :  { %1778 = vst.msk [vmem:[%s3582_s5 + $0x1a8] sm:$0xff] %vm1724_vm3, %v1701_v11 }
 0x2ba   :  { %1777 = vst.msk [vmem:[%s3582_s5 + $0x1a0] sm:$0xff] %vm1724_vm3, %v1700_v24 }
 0x2bc   :  { %v2157_v46 = vpop.f32.mrb[92].mxu1 }
 0x2bd   :  { %v1545_v48 = vadd.f32 %v2157_v46, %v3133_v20  ;;  %v1539_v49 = vpop.f32.mrb[93].mxu1 }
 0x2be   :  { %v1540_v50 = vadd.f32 %v1539_v49, %v3133_v20 }
 0x2bf   :  { %v1703_v52 = vmax.f32 %v1545_v48, 0.0 }
 0x2c0   :  { %v1702_v53 = vmax.f32 %v1540_v50, 0.0 }
 0x2c1   :  { %1780 = vst.msk [vmem:[%s3582_s5 + $0x1b8] sm:$0xff] %vm1724_vm3, %v1703_v52  ;;  %v2160_v54 = vpop.f32.mrb[94].mxu1 }
 0x2c2   :  { %1779 = vst.msk [vmem:[%s3582_s5 + $0x1b0] sm:$0xff] %vm1724_vm3, %v1702_v53  ;;  %v1555_v19 = vadd.f32 %v2160_v54, %v3133_v20  ;;  %v1549_v56 = vpop.f32.mrb[95].mxu1 }
 0x2c3   :  { %v1550_v57 = vadd.f32 %v1549_v56, %v3133_v20 }
 0x2c4   :  { %v1705_v23 = vmax.f32 %v1555_v19, 0.0 }
 0x2c5   :  { %v1704_v27 = vmax.f32 %v1550_v57, 0.0  ;;  %v2163_v58 = vpop.f32.mrb[96].mxu1 }
 0x2c6   :  { %1782 = vst.msk [vmem:[%s3582_s5 + $0x1c8] sm:$0xff] %vm1724_vm3, %v1705_v23  ;;  %v1565_v60 = vadd.f32 %v2163_v58, %v3133_v20  ;;  %v1559_v31 = vpop.f32.mrb[97].mxu1 }
 0x2c7   :  { %1781 = vst.msk [vmem:[%s3582_s5 + $0x1c0] sm:$0xff] %vm1724_vm3, %v1704_v27  ;;  %v1560_v61 = vadd.f32 %v1559_v31, %v3133_v20 }
 0x2c8   :  { %v1707_v62 = vmax.f32 %v1565_v60, 0.0 }
 0x2c9   :  { %v1706_v0 = vmax.f32 %v1560_v61, 0.0  ;;  %v2166_v1 = vpop.f32.mrb[98].mxu1 }
 0x2ca   :  { %1784 = vst.msk [vmem:[%s3582_s5 + $0x1d8] sm:$0xff] %vm1724_vm3, %v1707_v62  ;;  %v1575_v2 = vadd.f32 %v2166_v1, %v3133_v20  ;;  %v1569_v4 = vpop.f32.mrb[99].mxu1 }
 0x2cb   :  { %1783 = vst.msk [vmem:[%s3582_s5 + $0x1d0] sm:$0xff] %vm1724_vm3, %v1706_v0  ;;  %v1570_v5 = vadd.f32 %v1569_v4, %v3133_v20 }
 0x2cc   :  { %v1709_v35 = vmax.f32 %v1575_v2, 0.0 }
 0x2cd   :  { %v1708_v6 = vmax.f32 %v1570_v5, 0.0  ;;  %v2169_v8 = vpop.f32.mrb[100].mxu1 }
 0x2ce   :  { %1786 = vst.msk [vmem:[%s3582_s5 + $0x1e8] sm:$0xff] %vm1724_vm3, %v1709_v35  ;;  %v1585_v39 = vadd.f32 %v2169_v8, %v3133_v20  ;;  %v1579_v43 = vpop.f32.mrb[101].mxu1 }
 0x2cf   :  { %1785 = vst.msk [vmem:[%s3582_s5 + $0x1e0] sm:$0xff] %vm1724_vm3, %v1708_v6  ;;  %v1580_v9 = vadd.f32 %v1579_v43, %v3133_v20 }
 0x2d0   :  { %v1711_v47 = vmax.f32 %v1585_v39, 0.0 }
 0x2d1   :  { %v1710_v12 = vmax.f32 %v1580_v9, 0.0  ;;  %v2172_v14 = vpop.f32.mrb[102].mxu1 }
 0x2d2   :  { %1788 = vst.msk [vmem:[%s3582_s5 + $0x1f8] sm:$0xff] %vm1724_vm3, %v1711_v47  ;;  %v1595_v16 = vadd.f32 %v2172_v14, %v3133_v20  ;;  %v1589_v17 = vpop.f32.mrb[103].mxu1 }
 0x2d3   :  { %1787 = vst.msk [vmem:[%s3582_s5 + $0x1f0] sm:$0xff] %vm1724_vm3, %v1710_v12  ;;  %v1590_v21 = vadd.f32 %v1589_v17, %v3133_v20 }
 0x2d4   :  { %v1713_v22 = vmax.f32 %v1595_v16, 0.0 }
 0x2d5   :  { %v1712_v25 = vmax.f32 %v1590_v21, 0.0  ;;  %v2175_v51 = vpop.f32.mrb[104].mxu1 }
 0x2d6   :  { %1790 = vst.msk [vmem:[%s3582_s5 + $0x208] sm:$0xff] %vm1724_vm3, %v1713_v22  ;;  %v1605_v26 = vadd.f32 %v2175_v51, %v3133_v20  ;;  %v1599_v28 = vpop.f32.mrb[105].mxu1 }
 0x2d7   :  { %1789 = vst.msk [vmem:[%s3582_s5 + $0x200] sm:$0xff] %vm1724_vm3, %v1712_v25  ;;  %v1600_v55 = vadd.f32 %v1599_v28, %v3133_v20 }
 0x2d8   :  { %v1715_v59 = vmax.f32 %v1605_v26, 0.0 }
 0x2d9   :  { %v1714_v29 = vmax.f32 %v1600_v55, 0.0  ;;  %v2178_v63 = vpop.f32.mrb[106].mxu1 }
 0x2da   :  { %1792 = vst.msk [vmem:[%s3582_s5 + $0x218] sm:$0xff] %vm1724_vm3, %v1715_v59  ;;  %v1615_v30 = vadd.f32 %v2178_v63, %v3133_v20  ;;  %v1609_v32 = vpop.f32.mrb[107].mxu1 }
 0x2db   :  { %1791 = vst.msk [vmem:[%s3582_s5 + $0x210] sm:$0xff] %vm1724_vm3, %v1714_v29  ;;  %v1610_v33 = vadd.f32 %v1609_v32, %v3133_v20 }
 0x2dc   :  { %v1717_v34 = vmax.f32 %v1615_v30, 0.0 }
 0x2dd   :  { %v1716_v36 = vmax.f32 %v1610_v33, 0.0  ;;  %v2181_v37 = vpop.f32.mrb[108].mxu1 }
 0x2de   :  { %1794 = vst.msk [vmem:[%s3582_s5 + $0x228] sm:$0xff] %vm1724_vm3, %v1717_v34  ;;  %v1625_v38 = vadd.f32 %v2181_v37, %v3133_v20  ;;  %v1619_v3 = vpop.f32.mrb[109].mxu1 }
 0x2df   :  { %1793 = vst.msk [vmem:[%s3582_s5 + $0x220] sm:$0xff] %vm1724_vm3, %v1716_v36  ;;  %v1620_v40 = vadd.f32 %v1619_v3, %v3133_v20 }
 0x2e0   :  { %v1719_v41 = vmax.f32 %v1625_v38, 0.0 }
 0x2e1   :  { %v1718_v7 = vmax.f32 %v1620_v40, 0.0  ;;  %v2184_v18 = vpop.f32.mrb[110].mxu1 }
 0x2e2   :  { %1796 = vst.msk [vmem:[%s3582_s5 + $0x238] sm:$0xff] %vm1724_vm3, %v1719_v41  ;;  %v1635_v13 = vadd.f32 %v2184_v18, %v3133_v20  ;;  %v1629_v42 = vpop.f32.mrb[111].mxu1 }
 0x2e3   :  { %1795 = vst.msk [vmem:[%s3582_s5 + $0x230] sm:$0xff] %vm1724_vm3, %v1718_v7  ;;  %v1630_v10 = vadd.f32 %v1629_v42, %v3133_v20 }
 0x2e4   :  { %v1721_v44 = vmax.f32 %v1635_v13, 0.0 }
 0x2e5   :  { %v1720_v15 = vmax.f32 %v1630_v10, 0.0  ;;  %v2187_v45 = vpop.f32.mrb[112].mxu1 }
 0x2e6   :  { %1798 = vst.msk [vmem:[%s3582_s5 + $0x248] sm:$0xff] %vm1724_vm3, %v1721_v44  ;;  %v1645_v11 = vadd.f32 %v2187_v45, %v3133_v20  ;;  %v1639_v24 = vpop.f32.mrb[113].mxu1 }
 0x2e7   :  { %1797 = vst.msk [vmem:[%s3582_s5 + $0x240] sm:$0xff] %vm1724_vm3, %v1720_v15  ;;  %v1640_v46 = vadd.f32 %v1639_v24, %v3133_v20 }
 0x2e8   :  { %v1723_v48 = vmax.f32 %v1645_v11, 0.0 }
 0x2e9   :  { %v1722_v49 = vmax.f32 %v1640_v46, 0.0 }
 0x2ea   :  { %1800 = vst.msk [vmem:[%s3582_s5 + $0x258] sm:$0xff] %vm1724_vm3, %v1723_v48 }
 0x2eb   :  { %1799 = vst.msk [vmem:[%s3582_s5 + $0x250] sm:$0xff] %vm1724_vm3, %v1722_v49 }

// kernel: mlp_lstm_forward.3
= control target key start
LH: loop header
LB: loop body
LE: loop exit
PB: predicated region body
PF: predicated region fallthrough
CT: control target
= control target key end

     0   :  { %v5745_v0 = vmov 0.0|0.0   ;;  %vm5746_vm0 = vmmov 0   ;;  %v5747_v3 = vmov 0.0   ;;  %vm65_vm1 = vcmask 1041409   ;;  %s5749_s27 = smov 16   ;;  %s5750_s28 = smov 32   ;;  %s6525_s1 = inlined_call_operand.vmem [shape: f32[19,16], index: 1, kind: input, shape index: {}]   ;;  %s6526_s0 = inlined_call_operand.vmem [shape: f32[4,8,19], index: 0, kind: input, shape index: {}]   ;;  %s6527_s3 = inlined_call_operand.vmem [shape: f32[16,32], index: 3, kind: input, shape index: {}]   ;;  %s6528_s2 = inlined_call_operand.vmem [shape: f32[1,16], index: 2, kind: input, shape index: {}]   ;;  %s6529_s5 = inlined_call_operand.vmem [shape: f32[32,128], index: 5, kind: input, shape index: {}]   ;;  %s6530_s4 = inlined_call_operand.vmem [shape: f32[1,32], index: 4, kind: input, shape index: {}]   ;;  %s6531_s7 = inlined_call_operand.vmem [shape: f32[16,64], index: 7, kind: input, shape index: {}]   ;;  %s6532_s6 = inlined_call_operand.vmem [shape: f32[1,128], index: 6, kind: input, shape index: {}]   ;;  %s6533_s8 = inlined_call_operand.vmem [shape: f32[16,64], index: 8, kind: input, shape index: {}]   ;;  %s6534_s9 = inlined_call_operand.vmem [shape: f32[32,2], index: 9, kind: input, shape index: {}]   ;;  %s6535_s10 = inlined_call_operand.vmem [shape: f32[1,2], index: 10, kind: input, shape index: {}]   ;;  %s6536_s11 = inlined_call_operand.vmem [shape: f32[8,4,2], index: 11, kind: output, shape index: {}]  }
   0x1   :  { %5417 = vmatprep.subr.bf16.mxu0 %v5745_v0  ;;  %v42_v1 = vld [vmem:[%s6525_s1] sm:$0xff]  ;;  %v43_v2 = vld [vmem:[%s6525_s1 + $0x8] sm:$0xff]  ;;  %4983 = vmatprep.mubr.msk.f32.mxu0 %vm5746_vm0, %v5747_v3  ;;  %v5837_v7 = vld [vmem:[%s6526_s0 + $0x10] sm:$0xff]  ;;  %vm68_vm2 = vcmask 1042434   ;;  %vm71_vm3 = vcmask 1043459   ;;  %vm76_vm4 = vcmask 1042432  }
   0x2   :  { %v5822_v4 = vpack.c.bf16 %v43_v2, %v42_v1  ;;  %v5827_v5 = vld [vmem:[%s6526_s0] sm:$0xff]  ;;  %v5832_v6 = vld [vmem:[%s6526_s0 + $0x8] sm:$0xff]  ;;  %5420 = vmatprep.subr.bf16.mxu1 %v5745_v0  ;;  %4990 = vmatprep.mubr.msk.f32.mxu1 %vm5746_vm0, %v5747_v3  ;;  %v5845_v8 = vld [vmem:[%s6526_s0 + $0x18] sm:$0xff]  ;;  %v67_v10 = vrot.slane %v5837_v7, 6  ;;  %v314_v15 = vrot.slane %v5837_v7, 7  ;;  %vm73_vm5 = vcmask 154624  }
   0x3   :  { %v64_v9 = vrot.slane %v5832_v6, 7  ;;  %v312_v11 = vrot.slane %v5827_v5, 1  ;;  %v70_v12 = vrot.slane %v5845_v8, 5  ;;  %v5856_v13 = vld [vmem:[%s6525_s1 + $0x10] sm:$0x7]  ;;  %v316_v19 = vrot.slane %v5845_v8, 6 }
   0x4   :  { %5419 = vmatpush3.bf16.msra.mxu0 %v5822_v4  ;;  %v46_v22 = vld [vmem:[%s6527_s3] sm:$0xff]  ;;  %v47_v23 = vld [vmem:[%s6527_s3 + $0x8] sm:$0xff]  ;;  %vm157_vm6 = vcmask 130048   ;;  %v538_v33 = vrot.slane %v5827_v5, 2  ;;  %v539_v34 = vrot.slane %v5832_v6, 1  ;;  %v542_v40 = vrot.slane %v5845_v8, 7 }
   0x5   :  { %4981 = vmatprep.subr.mxu0 %v5747_v3  ;;  %v66_v14 = vsel %vm65_vm1, %v64_v9, %v5827_v5  ;;  %v313_v17 = vsel %vm65_vm1, %v5832_v6, %v312_v11  ;;  %v5888_v24 = vpack.c.bf16 %v47_v23, %v46_v22  ;;  %v5897_v25 = vld [vmem:[%s6528_s2] ss:$0 sm:$0xff]  ;;  %v50_v27 = vld [vmem:[%s6529_s5 + $0x8] sm:$0xff]  ;;  %v51_v43 = vld [vmem:[%s6529_s5 + $0x10] sm:$0xff]  ;;  %vm238_vm7 = vcmask 261120   ;;  %s5751_s29 = smov 80  }
   0x6   :  { %v69_v16 = vsel %vm68_vm2, %v67_v10, %v66_v14  ;;  %v315_v20 = vsel %vm68_vm2, %v314_v15, %v313_v17  ;;  %v49_v26 = vld [vmem:[%s6529_s5] sm:$0xff]  ;;  %v540_v38 = vsel %vm65_vm1, %v539_v34, %v538_v33  ;;  %v52_v44 = vld [vmem:[%s6529_s5 + $0x18] sm:$0xff]  ;;  %v764_v55 = vrot.slane %v5827_v5, 3 }
   0x7   :  { %v72_v18 = vsel %vm71_vm3, %v70_v12, %v69_v16  ;;  %v317_v21 = vsel %vm71_vm3, %v316_v19, %v315_v20  ;;  %5422 = vmatpush3.bf16.msra.mxu1 %v5888_v24  ;;  %v5906_v31 = vpack.c.bf16 %v50_v27, %v49_v26  ;;  %v541_v41 = vsel %vm68_vm2, %v5837_v7, %v540_v38  ;;  %v5949_v46 = vld [vmem:[%s6530_s4] ss:$0 sm:$0xff] }
   0x8   :  { %4982 = vmatpush3.msk.msra.mxu0 %vm76_vm4, %v5856_v13  ;;  %5423 = vmatprep.subr.bf16.mxu1 %v5745_v0  ;;  %v543_v42 = vsel %vm71_vm3, %v542_v40, %v541_v41  ;;  %v5940_v45 = vpack.c.bf16 %v52_v44, %v51_v43  ;;  %v765_v56 = vrot.slane %v5832_v6, 2  ;;  %v767_v60 = vrot.slane %v5837_v7, 1 }
   0x9   :  { %4984 = vmatmul.mubr.msk.f32.vlgmr.msra.gmra.mrb[0].mxu0 %vm73_vm5, %v72_v18  ;;  %5429 = vmatprep.subr.bf16.mxu0 %v5745_v0  ;;  %v990_v17 = vrot.slane %v5827_v5, 4  ;;  %v991_v18 = vrot.slane %v5832_v6, 3  ;;  %v993_v22 = vrot.slane %v5837_v7, 2  ;;  %v995_v27 = vrot.slane %v5845_v8, 1 }
   0xa   :  { %5431 = vmatpush3.bf16.msra.mxu0 %v5822_v4  ;;  %5010 = vmatprep.mubr.msk.f32.mxu0 %vm5746_vm0, %v5747_v3  ;;  %v766_v61 = vsel %vm65_vm1, %v765_v56, %v764_v55  ;;  %v1218_v38 = vrot.slane %v5832_v6, 4  ;;  %v1444_v56 = vrot.slane %v5827_v5, 6  ;;  %vm2962_vm8 = vcmask 11264  }
   0xb   :  { %5008 = vmatprep.subr.mxu0 %v5747_v3  ;;  %v768_v63 = vsel %vm68_vm2, %v767_v60, %v766_v61  ;;  %v992_v23 = vsel %vm65_vm1, %v991_v18, %v990_v17  ;;  %v1447_v61 = vrot.slane %v5837_v7, 4 }
   0xc   :  { %v769_v1 = vsel %vm71_vm3, %v5845_v8, %v768_v63 }
   0xe   :  { %5009 = vmatpush3.msk.msra.mxu0 %vm76_vm4, %v5856_v13 }
   0xf   :  { %5011 = vmatmul.mubr.msk.f32.vlgmr.msra.gmra.mrb[2].mxu0 %vm73_vm5, %v317_v21  ;;  %5432 = vmatprep.subr.bf16.mxu0 %v5745_v0 }
  0x10   :  { %5017 = vmatprep.mubr.msk.f32.mxu0 %vm5746_vm0, %v5747_v3  ;;  %5434 = vmatpush3.bf16.msra.mxu0 %v5888_v24 }
  0x11   :  { %5441 = vmatprep.subr.bf16.mxu0 %v5745_v0 }
  0xdc   :  { %v146_v28 = vpop.f32.mrb[0].mxu0 }
  0xdd   :  { %v147_v29 = vadd.f32 %v5897_v25, %v146_v28  ;;  %v4985_v30 = vpop.f32.mrb[1].mxu0  ;;  %v994_v28 = vsel %vm68_vm2, %v993_v22, %v992_v23 }
  0xdf   :  { %v150_v32 = vmax.f32 %v147_v29, 0.0  ;;  %v996_v29 = vsel %vm71_vm3, %v995_v27, %v994_v28 }
  0xe1   :  { %4991 = vmatmul.mubr.msk.f32.vlgmr.msra.gmra.mrb[0].mxu1 %vm157_vm6, %v150_v32 }
  0xe2   :  { %v386_v35 = vpop.f32.mrb[2].mxu0  ;;  %5425 = vmatpush3.bf16.msra.mxu1 %v5906_v31  ;;  %5001 = vmatprep.mubr.msk.f32.mxu1 %vm5746_vm0, %v5747_v3 }
  0xe3   :  { %v387_v36 = vadd.f32 %v5897_v25, %v386_v35  ;;  %v5012_v37 = vpop.f32.mrb[3].mxu0  ;;  %5426 = vmatprep.subr.bf16.mxu1 %v5745_v0 }
  0xe4   :  { %v1217_v37 = vrot.slane %v5827_v5, 5 }
  0xe5   :  { %v390_v39 = vmax.f32 %v387_v36, 0.0 }
  0xe6   :  { %5428 = vmatpush3.bf16.msra.mxu1 %v5940_v45  ;;  %v1219_v43 = vsel %vm65_vm1, %v1218_v38, %v1217_v37 }
  0xe7   :  { %5018 = vmatmul.mubr.msk.f32.vlgmr.msra.gmra.mrb[4].mxu0 %vm157_vm6, %v390_v39  ;;  %5435 = vmatprep.subr.bf16.mxu1 %v5745_v0 }
  0xe8   :  { %5443 = vmatpush3.bf16.msra.mxu0 %v5822_v4  ;;  %5037 = vmatprep.mubr.msk.f32.mxu0 %vm5746_vm0, %v5747_v3 }
  0xe9   :  { %5035 = vmatprep.subr.mxu0 %v5747_v3 }
  0xec   :  { %5036 = vmatpush3.msk.msra.mxu0 %vm76_vm4, %v5856_v13 }
  0xed   :  { %5038 = vmatmul.mubr.msk.f32.vlgmr.msra.gmra.mrb[6].mxu0 %vm73_vm5, %v543_v42  ;;  %5447 = vmatprep.subr.bf16.mxu0 %v5745_v0  ;;  %v1220_v42 = vrot.slane %v5837_v7, 3 }
  0xee   :  { %5449 = vmatpush3.bf16.msra.mxu0 %v5906_v31  ;;  %5055 = vmatprep.mubr.msk.f32.mxu0 %vm5746_vm0, %v5747_v3 }
  0xef   :  { %5450 = vmatprep.subr.bf16.mxu0 %v5745_v0 }
  0xf2   :  { %5452 = vmatpush3.bf16.msra.mxu0 %v5940_v45 }
  0xf3   :  { %5456 = vmatprep.subr.bf16.mxu0 %v5745_v0 }
 0x1b4   :  { %v227_v47 = vpop.f32.mrb[0].mxu1 }
 0x1b5   :  { %v228_v48 = vadd.f32 %v5949_v46, %v227_v47  ;;  %v4992_v49 = vpop.f32.mrb[1].mxu1  ;;  %v1222_v47 = vrot.slane %v5845_v8, 2 }
 0x1b7   :  { %v231_v50 = vmax.f32 %v228_v48, 0.0  ;;  %v1221_v48 = vsel %vm68_vm2, %v1220_v42, %v1219_v43 }
 0x1b8   :  { %v1223_v49 = vsel %vm71_vm3, %v1222_v47, %v1221_v48 }
 0x1b9   :  { %5002 = vmatmul.mubr.msk.f32.vlgmr.msra.gmra.mrb[2].mxu1 %vm238_vm7, %v231_v50 }
 0x1ba   :  { %5437 = vmatpush3.bf16.msra.mxu1 %v5906_v31  ;;  %v460_v51 = vpop.f32.mrb[4].mxu0  ;;  %5028 = vmatprep.mubr.msk.f32.mxu1 %vm5746_vm0, %v5747_v3 }
 0x1bb   :  { %v461_v52 = vadd.f32 %v5949_v46, %v460_v51  ;;  %v5019_v53 = vpop.f32.mrb[5].mxu0  ;;  %5438 = vmatprep.subr.bf16.mxu1 %v5745_v0 }
 0x1bd   :  { %v464_v54 = vmax.f32 %v461_v52, 0.0 }
 0x1be   :  { %5440 = vmatpush3.bf16.msra.mxu1 %v5940_v45 }
 0x1bf   :  { %5444 = vmatprep.subr.bf16.mxu1 %v5745_v0 }
 0x1c0   :  { %v612_v57 = vpop.f32.mrb[6].mxu0 }
 0x1c1   :  { %v613_v58 = vadd.f32 %v5897_v25, %v612_v57  ;;  %5029 = vmatmul.mubr.msk.f32.vlgmr.msra.gmra.mrb[4].mxu1 %vm238_vm7, %v464_v54  ;;  %v5039_v59 = vpop.f32.mrb[7].mxu0  ;;  %v1445_v57 = vrot.slane %v5832_v6, 5 }
 0x1c2   :  { %5446 = vmatpush3.bf16.msra.mxu1 %v5888_v24  ;;  %5044 = vmatprep.mubr.msk.f32.mxu1 %vm5746_vm0, %v5747_v3 }
 0x1c3   :  { %v616_v62 = vmax.f32 %v613_v58, 0.0  ;;  %5453 = vmatprep.subr.bf16.mxu1 %v5745_v0 }
 0x1c5   :  { %5045 = vmatmul.mubr.msk.f32.vlgmr.msra.gmra.mrb[6].mxu1 %vm157_vm6, %v616_v62  ;;  %v1446_v62 = vsel %vm65_vm1, %v1445_v57, %v1444_v56 }
 0x1c6   :  { %5455 = vmatpush3.bf16.msra.mxu1 %v5822_v4  ;;  %5064 = vmatprep.mubr.msk.f32.mxu1 %vm5746_vm0, %v5747_v3 }
 0x1c7   :  { %5062 = vmatprep.subr.mxu1 %v5747_v3 }
 0x1ca   :  { %5063 = vmatpush3.msk.msra.mxu1 %vm76_vm4, %v5856_v13 }
 0x1cb   :  { %5065 = vmatmul.mubr.msk.f32.vlgmr.msra.gmra.mrb[8].mxu1 %vm73_vm5, %v769_v1  ;;  %5459 = vmatprep.subr.bf16.mxu1 %v5745_v0  ;;  %v1449_v1 = vrot.slane %v5845_v8, 3 }
 0x1cc   :  { %5461 = vmatpush3.bf16.msra.mxu1 %v5906_v31  ;;  %5082 = vmatprep.mubr.msk.f32.mxu1 %vm5746_vm0, %v5747_v3 }
 0x1cd   :  { %5462 = vmatprep.subr.bf16.mxu1 %v5745_v0 }
 0x1d0   :  { %5464 = vmatpush3.bf16.msra.mxu1 %v5940_v45 }
 0x1d1   :  { %5468 = vmatprep.subr.bf16.mxu1 %v5745_v0 }
 0x28c   :  { %v5988_v2 = vpop.f32.mrb[2].mxu1 }
 0x28d   :  { %v5003_v9 = vpop.f32.mrb[3].mxu1 }
 0x28e   :  { %v1448_v9 = vsel %vm68_vm2, %v1447_v61, %v1446_v62 }
 0x294   :  { %v5990_v10 = vpop.f32.mrb[4].mxu1 }
 0x295   :  { %v5030_v11 = vpop.f32.mrb[5].mxu1 }
 0x296   :  { %v1450_v11 = vsel %vm71_vm3, %v1449_v1, %v1448_v9 }
 0x298   :  { %v686_v12 = vpop.f32.mrb[6].mxu1 }
 0x299   :  { %v687_v14 = vadd.f32 %v5949_v46, %v686_v12  ;;  %v5046_v15 = vpop.f32.mrb[7].mxu1 }
 0x29b   :  { %v690_v16 = vmax.f32 %v687_v14, 0.0 }
 0x29d   :  { %5056 = vmatmul.mubr.msk.f32.vlgmr.msra.gmra.mrb[8].mxu0 %vm238_vm7, %v690_v16 }
 0x29e   :  { %v838_v19 = vpop.f32.mrb[8].mxu1  ;;  %5458 = vmatpush3.bf16.msra.mxu0 %v5888_v24  ;;  %5071 = vmatprep.mubr.msk.f32.mxu0 %vm5746_vm0, %v5747_v3 }
 0x29f   :  { %v839_v20 = vadd.f32 %v5897_v25, %v838_v19  ;;  %v5066_v21 = vpop.f32.mrb[9].mxu1  ;;  %5465 = vmatprep.subr.bf16.mxu0 %v5745_v0  ;;  %v1671_v19 = vrot.slane %v5827_v5, 7 }
 0x2a1   :  { %v842_v26 = vmax.f32 %v839_v20, 0.0  ;;  %v1672_v20 = vrot.slane %v5832_v6, 6  ;;  %v1676_v6 = vrot.slane %v5845_v8, 4 }
 0x2a3   :  { %5072 = vmatmul.mubr.msk.f32.vlgmr.msra.gmra.mrb[10].mxu0 %vm157_vm6, %v842_v26  ;;  %v1674_v26 = vrot.slane %v5837_v7, 5  ;;  %v1673_v27 = vsel %vm65_vm1, %v1672_v20, %v1671_v19 }
 0x2a4   :  { %5467 = vmatpush3.bf16.msra.mxu0 %v5822_v4  ;;  %5091 = vmatprep.mubr.msk.f32.mxu0 %vm5746_vm0, %v5747_v3 }
 0x2a5   :  { %5089 = vmatprep.subr.mxu0 %v5747_v3  ;;  %v1675_v28 = vsel %vm68_vm2, %v1674_v26, %v1673_v27 }
 0x2a8   :  { %5090 = vmatpush3.msk.msra.mxu0 %vm76_vm4, %v5856_v13 }
 0x2a9   :  { %5092 = vmatmul.mubr.msk.f32.vlgmr.msra.gmra.mrb[12].mxu0 %vm73_vm5, %v996_v29  ;;  %5471 = vmatprep.subr.bf16.mxu0 %v5745_v0  ;;  %v1677_v29 = vsel %vm71_vm3, %v1676_v6, %v1675_v28 }
 0x2aa   :  { %5473 = vmatpush3.bf16.msra.mxu0 %v5906_v31  ;;  %5109 = vmatprep.mubr.msk.f32.mxu0 %vm5746_vm0, %v5747_v3 }
 0x2ab   :  { %5474 = vmatprep.subr.bf16.mxu0 %v5745_v0 }
 0x2ae   :  { %5476 = vmatpush3.bf16.msra.mxu0 %v5940_v45 }
 0x2af   :  { %5480 = vmatprep.subr.bf16.mxu0 %v5745_v0 }
 0x370   :  { %v6021_v30 = vpop.f32.mrb[8].mxu0 }
 0x371   :  { %v5057_v32 = vpop.f32.mrb[9].mxu0 }
 0x376   :  { %v912_v33 = vpop.f32.mrb[10].mxu0 }
 0x377   :  { %v913_v34 = vadd.f32 %v5949_v46, %v912_v33  ;;  %v5073_v35 = vpop.f32.mrb[11].mxu0 }
 0x379   :  { %v916_v36 = vmax.f32 %v913_v34, 0.0 }
 0x37b   :  { %5083 = vmatmul.mubr.msk.f32.vlgmr.msra.gmra.mrb[10].mxu1 %vm238_vm7, %v916_v36 }
 0x37c   :  { %v1065_v39 = vpop.f32.mrb[12].mxu0  ;;  %5470 = vmatpush3.bf16.msra.mxu1 %v5888_v24  ;;  %5098 = vmatprep.mubr.msk.f32.mxu1 %vm5746_vm0, %v5747_v3 }
 0x37d   :  { %v1066_v40 = vadd.f32 %v5897_v25, %v1065_v39  ;;  %v5093_v41 = vpop.f32.mrb[13].mxu0  ;;  %5477 = vmatprep.subr.bf16.mxu1 %v5745_v0  ;;  %v6146_v39 = vld [vmem:[%s6532_s6] ss:$0 sm:$0xff]  ;;  %s5748_s6 = smov 96  }
 0x37e   :  { %v6151_v43 = vadd.f32 %v6146_v39, %v5988_v2  ;;  %v6175_v9 = vadd.f32 %v6146_v39, %v5990_v10 }
 0x37f   :  { %v1069_v44 = vmax.f32 %v1066_v40, 0.0 }
 0x381   :  { %5099 = vmatmul.mubr.msk.f32.vlgmr.msra.gmra.mrb[12].mxu1 %vm157_vm6, %v1069_v44 }
 0x382   :  { %5479 = vmatpush3.bf16.msra.mxu1 %v5822_v4  ;;  %5118 = vmatprep.mubr.msk.f32.mxu1 %vm5746_vm0, %v5747_v3 }
 0x383   :  { %5116 = vmatprep.subr.mxu1 %v5747_v3 }
 0x386   :  { %5117 = vmatpush3.msk.msra.mxu1 %vm76_vm4, %v5856_v13 }
 0x387   :  { %5119 = vmatmul.mubr.msk.f32.vlgmr.msra.gmra.mrb[14].mxu1 %vm73_vm5, %v1223_v49  ;;  %5483 = vmatprep.subr.bf16.mxu1 %v5745_v0 }
 0x388   :  { %5485 = vmatpush3.bf16.msra.mxu1 %v5906_v31  ;;  %5136 = vmatprep.mubr.msk.f32.mxu1 %vm5746_vm0, %v5747_v3 }
 0x389   :  { %5486 = vmatprep.subr.bf16.mxu1 %v5745_v0 }
 0x38c   :  { %5488 = vmatpush3.bf16.msra.mxu1 %v5940_v45 }
 0x38d   :  { %5492 = vmatprep.subr.bf16.mxu1 %v5745_v0 }
 0x44e   :  { %v6052_v50 = vpop.f32.mrb[10].mxu1 }
 0x44f   :  { %v5084_v51 = vpop.f32.mrb[11].mxu1 }
 0x454   :  { %v1139_v52 = vpop.f32.mrb[12].mxu1 }
 0x455   :  { %v1140_v53 = vadd.f32 %v5949_v46, %v1139_v52  ;;  %v5100_v54 = vpop.f32.mrb[13].mxu1 }
 0x457   :  { %v1143_v55 = vmax.f32 %v1140_v53, 0.0 }
 0x459   :  { %5110 = vmatmul.mubr.msk.f32.vlgmr.msra.gmra.mrb[14].mxu0 %vm238_vm7, %v1143_v55 }
 0x45a   :  { %v1292_v58 = vpop.f32.mrb[14].mxu1  ;;  %5482 = vmatpush3.bf16.msra.mxu0 %v5888_v24  ;;  %5125 = vmatprep.mubr.msk.f32.mxu0 %vm5746_vm0, %v5747_v3 }
 0x45b   :  { %v1293_v59 = vadd.f32 %v5897_v25, %v1292_v58  ;;  %v5120_v60 = vpop.f32.mrb[15].mxu1  ;;  %5489 = vmatprep.subr.bf16.mxu0 %v5745_v0 }
 0x45d   :  { %v1296_v63 = vmax.f32 %v1293_v59, 0.0 }
 0x45f   :  { %5126 = vmatmul.mubr.msk.f32.vlgmr.msra.gmra.mrb[16].mxu0 %vm157_vm6, %v1296_v63 }
 0x460   :  { %5491 = vmatpush3.bf16.msra.mxu0 %v5822_v4  ;;  %5145 = vmatprep.mubr.msk.f32.mxu0 %vm5746_vm0, %v5747_v3 }
 0x461   :  { %5143 = vmatprep.subr.mxu0 %v5747_v3 }
 0x464   :  { %5144 = vmatpush3.msk.msra.mxu0 %vm76_vm4, %v5856_v13 }
 0x465   :  { %5146 = vmatmul.mubr.msk.f32.vlgmr.msra.gmra.mrb[18].mxu0 %vm73_vm5, %v1450_v11  ;;  %5495 = vmatprep.subr.bf16.mxu0 %v5745_v0 }
 0x466   :  { %5497 = vmatpush3.bf16.msra.mxu0 %v5906_v31  ;;  %5163 = vmatprep.mubr.msk.f32.mxu0 %vm5746_vm0, %v5747_v3 }
 0x467   :  { %5498 = vmatprep.subr.bf16.mxu0 %v5745_v0 }
 0x46a   :  { %5500 = vmatpush3.bf16.msra.mxu0 %v5940_v45 }
 0x46b   :  { %5504 = vmatprep.subr.bf16.mxu0 %v5745_v0 }
 0x52c   :  { %v6083_v12 = vpop.f32.mrb[14].mxu0 }
 0x52d   :  { %v5111_v14 = vpop.f32.mrb[15].mxu0 }
 0x532   :  { %v1366_v15 = vpop.f32.mrb[16].mxu0 }
 0x533   :  { %v1367_v16 = vadd.f32 %v5949_v46, %v1366_v15  ;;  %v5127_v17 = vpop.f32.mrb[17].mxu0 }
 0x535   :  { %v1370_v18 = vmax.f32 %v1367_v16, 0.0 }
 0x537   :  { %5137 = vmatmul.mubr.msk.f32.vlgmr.msra.gmra.mrb[16].mxu1 %vm238_vm7, %v1370_v18 }
 0x538   :  { %v1519_v21 = vpop.f32.mrb[18].mxu0  ;;  %5494 = vmatpush3.bf16.msra.mxu1 %v5888_v24  ;;  %5152 = vmatprep.mubr.msk.f32.mxu1 %vm5746_vm0, %v5747_v3 }
 0x539   :  { %v1520_v22 = vadd.f32 %v5897_v25, %v1519_v21  ;;  %v5147_v23 = vpop.f32.mrb[19].mxu0  ;;  %5501 = vmatprep.subr.bf16.mxu1 %v5745_v0 }
 0x53b   :  { %v1523_v5 = vmax.f32 %v1520_v22, 0.0 }
 0x53d   :  { %5153 = vmatmul.mubr.msk.f32.vlgmr.msra.gmra.mrb[18].mxu1 %vm157_vm6, %v1523_v5 }
 0x53e   :  { %5503 = vmatpush3.bf16.msra.mxu1 %v5822_v4  ;;  %5172 = vmatprep.mubr.msk.f32.mxu1 %vm5746_vm0, %v5747_v3 }
 0x53f   :  { %5170 = vmatprep.subr.mxu1 %v5747_v3 }
 0x542   :  { %5171 = vmatpush3.msk.msra.mxu1 %vm76_vm4, %v5856_v13 }
 0x543   :  { %5173 = vmatmul.mubr.msk.f32.vlgmr.msra.gmra.mrb[20].mxu1 %vm73_vm5, %v1677_v29  ;;  %5507 = vmatprep.subr.bf16.mxu1 %v5745_v0  ;;  %v6192_v29 = vadd.f32 %v6146_v39, %v6021_v30 }
 0x544   :  { %5509 = vmatpush3.bf16.msra.mxu1 %v5906_v31  ;;  %5190 = vmatprep.mubr.msk.f32.mxu1 %vm5746_vm0, %v5747_v3  ;;  %v1898_v31 = vld [vmem:[%s6531_s7] sm:$0xff] }
 0x545   :  { %5510 = vmatprep.subr.bf16.mxu1 %v5745_v0 }
 0x548   :  { %5512 = vmatpush3.bf16.msra.mxu1 %v5940_v45  ;;  %v1899_v45 = vld [vmem:[%s6531_s7 + $0x8] sm:$0xff] }
 0x549   :  { %5519 = vmatprep.subr.bf16.mxu1 %v5745_v0  ;;  %v6129_v37 = vpack.c.bf16 %v1899_v45, %v1898_v31 }
 0x60a   :  { %v6114_v4 = vpop.f32.mrb[16].mxu1 }
 0x60b   :  { %v5138_v7 = vpop.f32.mrb[17].mxu1 }
 0x610   :  { %v1593_v8 = vpop.f32.mrb[18].mxu1 }
 0x611   :  { %v1594_v13 = vadd.f32 %v5949_v46, %v1593_v8  ;;  %v5154_v32 = vpop.f32.mrb[19].mxu1 }
 0x613   :  { %v1597_v33 = vmax.f32 %v1594_v13, 0.0 }
 0x615   :  { %5164 = vmatmul.mubr.msk.f32.vlgmr.msra.gmra.mrb[20].mxu0 %vm238_vm7, %v1597_v33 }
 0x616   :  { %v1746_v34 = vpop.f32.mrb[20].mxu1  ;;  %5506 = vmatpush3.bf16.msra.mxu0 %v5888_v24  ;;  %5179 = vmatprep.mubr.msk.f32.mxu0 %vm5746_vm0, %v5747_v3 }
 0x617   :  { %v1747_v35 = vadd.f32 %v5897_v25, %v1746_v34  ;;  %v5174_v36 = vpop.f32.mrb[21].mxu1  ;;  %5513 = vmatprep.subr.bf16.mxu0 %v5745_v0 }
 0x619   :  { %v1750_v38 = vmax.f32 %v1747_v35, 0.0 }
 0x61b   :  { %5180 = vmatmul.mubr.msk.f32.vlgmr.msra.gmra.mrb[22].mxu0 %vm157_vm6, %v1750_v38 }
 0x61c   :  { %5515 = vmatpush3.bf16.msra.mxu0 %v6129_v37  ;;  %5197 = vmatprep.mubr.msk.f32.mxu0 %vm5746_vm0, %v5747_v3 }
 0x61d   :  { %5516 = vmatprep.subr.bf16.mxu0 %v5745_v0 }
 0x61f   :  { %5198 = vmatmul.mubr.f32.vlgmr.msra.gmra.mrb[24].mxu0 %v5747_v3 }
 0x620   :  { %5518 = vmatpush3.bf16.msra.mxu0 %v6129_v37  ;;  %5204 = vmatprep.mubr.msk.f32.mxu0 %vm5746_vm0, %v5747_v3 }
 0x621   :  { %5522 = vmatprep.subr.bf16.mxu0 %v5745_v0 }
 0x6e8   :  { %v6141_v24 = vpop.f32.mrb[20].mxu0 }
 0x6e9   :  { %v5165_v25 = vpop.f32.mrb[21].mxu0 }
 0x6ee   :  { %v1820_v40 = vpop.f32.mrb[22].mxu0 }
 0x6ef   :  { %v1821_v41 = vadd.f32 %v5949_v46, %v1820_v40  ;;  %v5181_v42 = vpop.f32.mrb[23].mxu0 }
 0x6f1   :  { %v1824_v44 = vmax.f32 %v1821_v41, 0.0 }
 0x6f2   :  { %v1971_v47 = vpop.f32.mrb[24].mxu0 }
 0x6f3   :  { %v1975_v48 = vadd.f32 %v1971_v47, %v6151_v43  ;;  %5191 = vmatmul.mubr.msk.f32.vlgmr.msra.gmra.mrb[22].mxu1 %vm238_vm7, %v1824_v44  ;;  %v5199_v49 = vpop.f32.mrb[25].mxu0  ;;  %v6209_v47 = vadd.f32 %v6146_v39, %v6052_v50 }
 0x6f4   :  { %5521 = vmatpush3.bf16.msra.mxu1 %v6129_v37  ;;  %5211 = vmatprep.mubr.msk.f32.mxu1 %vm5746_vm0, %v5747_v3 }
 0x6f5   :  { %5617 = vtanh.f32 %v1975_v48  ;;  %5525 = vmatprep.subr.bf16.mxu1 %v5745_v0  ;;  %v4731_v2 = vmul.f32 -1.442695, %v1975_v48 }
 0x6f7   :  { %5619 = vpow2.f32 %v4731_v2 }
 0x6ff   :  { %v5618_v46 = vpop.eup %5617 }
 0x700   :  { %1985 = vrot.lane.b32.xlu0 %v5618_v46, %s5748_s6 }
 0x701   :  { %v5620_v51 = vpop.eup %5619 }
 0x702   :  { %v1979_v52 = vadd.f32 1.0, %v5620_v51 }
 0x704   :  { %5621 = vrcp.f32 %v1979_v52 }
 0x70e   :  { %v5622_v53 = vpop.eup %5621 }
 0x70f   :  { %v1983_v58 = vmul.f32 0.0, %v5622_v53 }
 0x772   :  { %v1986_v54 = vpop.permute.xlu0 %1985 }
 0x773   :  { %v1988_v55 = vmul.f32 %v5622_v53, %v1986_v54 }
 0x775   :  { %1990 = vrot.lane.b32.xlu0 %v1988_v55, %s5749_s27 }
 0x7c6   :  { %v6161_v56 = vpop.f32.mrb[22].mxu1 }
 0x7c7   :  { %v5192_v57 = vpop.f32.mrb[23].mxu1 }
 0x7e7   :  { %v1991_v59 = vpop.permute.xlu0 %1990 }
 0x7e8   :  { %v1993_v60 = vadd.f32 %v1991_v59, %v1983_v58 }
 0x7ea   :  { %5623 = vtanh.f32 %v1993_v60 }
 0x7f4   :  { %v5624_v61 = vpop.eup %5623 }
 0x7f5   :  { %1996 = vrot.lane.b32.xlu1 %v5624_v61, %s5750_s28 }
 0x867   :  { %v1997_v62 = vpop.permute.xlu1 %1996 }
 0x868   :  { %v1999_v63 = vmul.f32 %v5622_v53, %v1997_v62 }
 0x86a   :  { %2001 = vrot.lane.b32.xlu1 %v1999_v63, %s5751_s29 }
 0x8dc   :  { %v6165_v1 = vpop.permute.xlu1 %2001 }
 0x8dd   :  { %5205 = vmatmul.mubr.msk.f32.vlgmr.msra.gmra.mrb[26].mxu0 %vm157_vm6, %v6165_v1 }
 0x8de   :  { %5524 = vmatpush3.bf16.msra.mxu0 %v6129_v37  ;;  %5218 = vmatprep.mubr.msk.f32.mxu0 %vm5746_vm0, %v5747_v3 }
 0x8df   :  { %5528 = vmatprep.subr.bf16.mxu0 %v5745_v0 }
 0x9b0   :  { %v2071_v11 = vpop.f32.mrb[26].mxu0 }
 0x9b1   :  { %v2075_v14 = vadd.f32 %v2071_v11, %v6175_v9  ;;  %v5206_v15 = vpop.f32.mrb[27].mxu0  ;;  %v6226_v11 = vadd.f32 %v6146_v39, %v6083_v12 }
 0x9b3   :  { %5625 = vtanh.f32 %v2075_v14  ;;  %v4733_v17 = vmul.f32 -1.442695, %v2075_v14 }
 0x9b5   :  { %5627 = vpow2.f32 %v4733_v17 }
 0x9bd   :  { %v5626_v16 = vpop.eup %5625 }
 0x9be   :  { %2085 = vrot.lane.b32.xlu0 %v5626_v16, %s5748_s6 }
 0x9bf   :  { %v5628_v18 = vpop.eup %5627 }
 0x9c0   :  { %v2079_v19 = vadd.f32 1.0, %v5628_v18 }
 0x9c2   :  { %5629 = vrcp.f32 %v2079_v19 }
 0x9cc   :  { %v5630_v20 = vpop.eup %5629 }
 0x9cd   :  { %v2083_v10 = vmul.f32 %v5630_v20, %v1993_v60 }
 0xa30   :  { %v2086_v21 = vpop.permute.xlu0 %2085 }
 0xa31   :  { %v2088_v22 = vmul.f32 %v5630_v20, %v2086_v21 }
 0xa33   :  { %2090 = vrot.lane.b32.xlu1 %v2088_v22, %s5749_s27 }
 0xaa5   :  { %v2091_v23 = vpop.permute.xlu1 %2090 }
 0xaa6   :  { %v2093_v26 = vadd.f32 %v2091_v23, %v2083_v10 }
 0xaa8   :  { %5631 = vtanh.f32 %v2093_v26 }
 0xab2   :  { %v5632_v27 = vpop.eup %5631 }
 0xab3   :  { %2096 = vrot.lane.b32.xlu0 %v5632_v27, %s5750_s28 }
 0xb25   :  { %v2097_v5 = vpop.permute.xlu0 %2096 }
 0xb26   :  { %v2099_v6 = vmul.f32 %v5630_v20, %v2097_v5 }
 0xb28   :  { %2101 = vrot.lane.b32.xlu1 %v2099_v6, %s5751_s29 }
 0xb9a   :  { %v6182_v28 = vpop.permute.xlu1 %2101 }
 0xb9b   :  { %5212 = vmatmul.mubr.msk.f32.vlgmr.msra.gmra.mrb[24].mxu1 %vm157_vm6, %v6182_v28 }
 0xb9c   :  { %5527 = vmatpush3.bf16.msra.mxu1 %v6129_v37  ;;  %5225 = vmatprep.mubr.msk.f32.mxu1 %vm5746_vm0, %v5747_v3 }
 0xb9d   :  { %5531 = vmatprep.subr.bf16.mxu1 %v5745_v0 }
 0xc6e   :  { %v2171_v7 = vpop.f32.mrb[24].mxu1 }
 0xc6f   :  { %v2175_v8 = vadd.f32 %v2171_v7, %v6192_v29  ;;  %v5213_v13 = vpop.f32.mrb[25].mxu1 }
 0xc71   :  { %5633 = vtanh.f32 %v2175_v8  ;;  %v4735_v33 = vmul.f32 -1.442695, %v2175_v8  ;;  %v6243_v8 = vadd.f32 %v6146_v39, %v6114_v4 }
 0xc73   :  { %5635 = vpow2.f32 %v4735_v33 }
 0xc7b   :  { %v5634_v32 = vpop.eup %5633 }
 0xc7c   :  { %2185 = vrot.lane.b32.xlu0 %v5634_v32, %s5748_s6 }
 0xc7d   :  { %v5636_v31 = vpop.eup %5635 }
 0xc7e   :  { %v2179_v45 = vadd.f32 1.0, %v5636_v31 }
 0xc80   :  { %5637 = vrcp.f32 %v2179_v45 }
 0xc8a   :  { %v5638_v34 = vpop.eup %5637 }
 0xc8b   :  { %v2183_v30 = vmul.f32 %v5638_v34, %v2093_v26 }
 0xcee   :  { %v2186_v35 = vpop.permute.xlu0 %2185 }
 0xcef   :  { %v2188_v36 = vmul.f32 %v5638_v34, %v2186_v35 }
 0xcf1   :  { %2190 = vrot.lane.b32.xlu1 %v2188_v36, %s5749_s27 }
 0xd63   :  { %v2191_v38 = vpop.permute.xlu1 %2190 }
 0xd64   :  { %v2193_v25 = vadd.f32 %v2191_v38, %v2183_v30 }
 0xd66   :  { %5639 = vtanh.f32 %v2193_v25 }
 0xd70   :  { %v5640_v40 = vpop.eup %5639 }
 0xd71   :  { %2196 = vrot.lane.b32.xlu0 %v5640_v40, %s5750_s28 }
 0xde3   :  { %v2197_v41 = vpop.permute.xlu0 %2196 }
 0xde4   :  { %v2199_v42 = vmul.f32 %v5638_v34, %v2197_v41 }
 0xde6   :  { %2201 = vrot.lane.b32.xlu1 %v2199_v42, %s5751_s29 }
 0xe58   :  { %v6199_v44 = vpop.permute.xlu1 %2201 }
 0xe59   :  { %5219 = vmatmul.mubr.msk.f32.vlgmr.msra.gmra.mrb[28].mxu0 %vm157_vm6, %v6199_v44 }
 0xe5a   :  { %5530 = vmatpush3.bf16.msra.mxu0 %v6129_v37  ;;  %5232 = vmatprep.mubr.msk.f32.mxu0 %vm5746_vm0, %v5747_v3 }
 0xe5b   :  { %5534 = vmatprep.subr.bf16.mxu0 %v5745_v0 }
 0xf2c   :  { %v2271_v48 = vpop.f32.mrb[28].mxu0 }
 0xf2d   :  { %v2275_v49 = vadd.f32 %v2271_v48, %v6209_v47  ;;  %v5220_v46 = vpop.f32.mrb[29].mxu0  ;;  %v1900_v48 = vld [vmem:[%s6533_s8] sm:$0xff] }
 0xf2f   :  { %5641 = vtanh.f32 %v2275_v49  ;;  %v4737_v51 = vmul.f32 -1.442695, %v2275_v49  ;;  %v1901_v49 = vld [vmem:[%s6533_s8 + $0x8] sm:$0xff]  ;;  %s5752_s8 = smov 64  }
 0xf30   :  { %v6256_v46 = vpack.c.bf16 %v1901_v49, %v1900_v48 }
 0xf31   :  { %5643 = vpow2.f32 %v4737_v51  ;;  %v6271_v51 = vadd.f32 %v6146_v39, %v6141_v24  ;;  %v6278_v24 = vadd.f32 %v6146_v39, %v6161_v56 }
 0xf39   :  { %v5642_v2 = vpop.eup %5641 }
 0xf3a   :  { %2285 = vrot.lane.b32.xlu0 %v5642_v2, %s5748_s6 }
 0xf3b   :  { %v5644_v52 = vpop.eup %5643 }
 0xf3c   :  { %v2279_v53 = vadd.f32 1.0, %v5644_v52 }
 0xf3e   :  { %5645 = vrcp.f32 %v2279_v53 }
 0xf48   :  { %v5646_v54 = vpop.eup %5645 }
 0xf49   :  { %v2283_v50 = vmul.f32 %v5646_v54, %v2193_v25 }
 0xfac   :  { %v2286_v55 = vpop.permute.xlu0 %2285 }
 0xfad   :  { %v2288_v57 = vmul.f32 %v5646_v54, %v2286_v55 }
 0xfaf   :  { %2290 = vrot.lane.b32.xlu1 %v2288_v57, %s5749_s27 }
0x1021   :  { %v2291_v58 = vpop.permute.xlu1 %2290 }
0x1022   :  { %v2293_v59 = vadd.f32 %v2291_v58, %v2283_v50 }
0x1024   :  { %5647 = vtanh.f32 %v2293_v59 }
0x102e   :  { %v5648_v60 = vpop.eup %5647 }
0x102f   :  { %2296 = vrot.lane.b32.xlu0 %v5648_v60, %s5750_s28 }
0x10a1   :  { %v2297_v61 = vpop.permute.xlu0 %2296 }
0x10a2   :  { %v2299_v62 = vmul.f32 %v5646_v54, %v2297_v61 }
0x10a4   :  { %2301 = vrot.lane.b32.xlu1 %v2299_v62, %s5751_s29 }
0x1116   :  { %v6216_v63 = vpop.permute.xlu1 %2301 }
0x1117   :  { %5226 = vmatmul.mubr.msk.f32.vlgmr.msra.gmra.mrb[26].mxu1 %vm157_vm6, %v6216_v63 }
0x1118   :  { %5533 = vmatpush3.bf16.msra.mxu1 %v6129_v37  ;;  %5239 = vmatprep.mubr.msk.f32.mxu1 %vm5746_vm0, %v5747_v3 }
0x1119   :  { %5537 = vmatprep.subr.bf16.mxu1 %v5745_v0 }
0x11ea   :  { %v2371_v14 = vpop.f32.mrb[26].mxu1 }
0x11eb   :  { %v2375_v15 = vadd.f32 %v2371_v14, %v6226_v11  ;;  %v5227_v16 = vpop.f32.mrb[27].mxu1 }
0x11ed   :  { %5649 = vtanh.f32 %v2375_v15  ;;  %v4739_v18 = vmul.f32 -1.442695, %v2375_v15 }
0x11ef   :  { %5651 = vpow2.f32 %v4739_v18 }
0x11f7   :  { %v5650_v17 = vpop.eup %5649 }
0x11f8   :  { %2385 = vrot.lane.b32.xlu0 %v5650_v17, %s5748_s6 }
0x11f9   :  { %v5652_v19 = vpop.eup %5651 }
0x11fa   :  { %v2379_v20 = vadd.f32 1.0, %v5652_v19 }
0x11fc   :  { %5653 = vrcp.f32 %v2379_v20 }
0x1206   :  { %v5654_v21 = vpop.eup %5653 }
0x1207   :  { %v2383_v12 = vmul.f32 %v5654_v21, %v2293_v59 }
0x126a   :  { %v2386_v22 = vpop.permute.xlu0 %2385 }
0x126b   :  { %v2388_v10 = vmul.f32 %v5654_v21, %v2386_v22 }
0x126d   :  { %2390 = vrot.lane.b32.xlu1 %v2388_v10, %s5749_s27 }
0x12df   :  { %v2391_v23 = vpop.permute.xlu1 %2390 }
0x12e0   :  { %v2393_v26 = vadd.f32 %v2391_v23, %v2383_v12 }
0x12e2   :  { %5655 = vtanh.f32 %v2393_v26 }
0x12ec   :  { %v5656_v27 = vpop.eup %5655 }
0x12ed   :  { %2396 = vrot.lane.b32.xlu0 %v5656_v27, %s5750_s28 }
0x135f   :  { %v2397_v5 = vpop.permute.xlu0 %2396 }
0x1360   :  { %v2399_v6 = vmul.f32 %v5654_v21, %v2397_v5 }
0x1362   :  { %2401 = vrot.lane.b32.xlu1 %v2399_v6, %s5751_s29 }
0x13d4   :  { %v6233_v7 = vpop.permute.xlu1 %2401 }
0x13d5   :  { %5233 = vmatmul.mubr.msk.f32.vlgmr.msra.gmra.mrb[30].mxu0 %vm157_vm6, %v6233_v7 }
0x13d6   :  { %5536 = vmatpush3.bf16.msra.mxu0 %v6129_v37  ;;  %5246 = vmatprep.mubr.msk.f32.mxu0 %vm5746_vm0, %v5747_v3 }
0x13d7   :  { %5540 = vmatprep.subr.bf16.mxu0 %v5745_v0 }
0x14a8   :  { %v2471_v13 = vpop.f32.mrb[30].mxu0 }
0x14a9   :  { %v2475_v32 = vadd.f32 %v2471_v13, %v6243_v8  ;;  %v5234_v33 = vpop.f32.mrb[31].mxu0 }
0x14aa   :  { %v2700_v33 = vld [vmem:[%s6534_s9] sm:$0xff] }
0x14ab   :  { %5657 = vtanh.f32 %v2475_v32  ;;  %v4741_v45 = vmul.f32 -1.442695, %v2475_v32 }
0x14ad   :  { %5659 = vpow2.f32 %v4741_v45  ;;  %v2702_v45 = vld [vmem:[%s6534_s9 + $0x10] sm:$0xff] }
0x14b5   :  { %v5658_v31 = vpop.eup %5657 }
0x14b6   :  { %2485 = vrot.lane.b32.xlu0 %v5658_v31, %s5748_s6  ;;  %v2701_v31 = vld [vmem:[%s6534_s9 + $0x8] sm:$0xff] }
0x14b7   :  { %v5660_v37 = vpop.eup %5659 }
0x14b8   :  { %v2479_v34 = vadd.f32 1.0, %v5660_v37  ;;  %v2703_v37 = vld [vmem:[%s6534_s9 + $0x18] sm:$0xff] }
0x14ba   :  { %5661 = vrcp.f32 %v2479_v34  ;;  %v6305_v34 = vpack.c.bf16 %v2701_v31, %v2700_v33 }
0x14c4   :  { %v5662_v35 = vpop.eup %5661 }
0x14c5   :  { %v2483_v4 = vmul.f32 %v5662_v35, %v2393_v26 }
0x1528   :  { %v2486_v36 = vpop.permute.xlu0 %2485 }
0x1529   :  { %v2488_v30 = vmul.f32 %v5662_v35, %v2486_v36 }
0x152b   :  { %2490 = vrot.lane.b32.xlu1 %v2488_v30, %s5749_s27 }
0x159d   :  { %v2491_v38 = vpop.permute.xlu1 %2490 }
0x159e   :  { %v2493_v25 = vadd.f32 %v2491_v38, %v2483_v4 }
0x15a0   :  { %5663 = vtanh.f32 %v2493_v25 }
0x15aa   :  { %v5664_v40 = vpop.eup %5663 }
0x15ab   :  { %2496 = vrot.lane.b32.xlu0 %v5664_v40, %s5750_s28 }
0x161d   :  { %v2497_v41 = vpop.permute.xlu0 %2496 }
0x161e   :  { %v2499_v42 = vmul.f32 %v5662_v35, %v2497_v41  ;;  %v6308_v35 = vpack.c.bf16 %v2703_v37, %v2702_v45 }
0x1620   :  { %2501 = vrot.lane.b32.xlu1 %v2499_v42, %s5751_s29 }
0x1692   :  { %v6258_v2 = vpop.permute.xlu1 %2501 }
0x1693   :  { %5240 = vmatmul.mubr.msk.f32.vlgmr.msra.gmra.mrb[28].mxu1 %vm157_vm6, %v6258_v2 }
0x1694   :  { %5539 = vmatpush3.bf16.msra.mxu1 %v6256_v46  ;;  %5253 = vmatprep.mubr.msk.f32.mxu1 %vm5746_vm0, %v5747_v3 }
0x1695   :  { %5543 = vmatprep.subr.bf16.mxu1 %v5745_v0 }
0x1697   :  { %5254 = vmatmul.mubr.f32.vlgmr.msra.gmra.mrb[30].mxu1 %v5747_v3 }
0x1698   :  { %5267 = vmatprep.mubr.msk.f32.mxu1 %vm5746_vm0, %v5747_v3  ;;  %5545 = vmatpush3.bf16.msra.mxu1 %v6305_v34 }
0x1699   :  { %5549 = vmatprep.subr.bf16.mxu1 %v5745_v0 }
0x1766   :  { %v2571_v52 = vpop.f32.mrb[28].mxu1 }
0x1767   :  { %v2575_v53 = vadd.f32 %v2571_v52, %v6271_v51  ;;  %v5241_v54 = vpop.f32.mrb[29].mxu1 }
0x1769   :  { %5665 = vtanh.f32 %v2575_v53  ;;  %v4743_v58 = vmul.f32 -1.442695, %v2575_v53 }
0x176a   :  { %v2771_v55 = vpop.f32.mrb[30].mxu1 }
0x176b   :  { %2776 = vrot.lane.b32.xlu0 %v2771_v55, %s5752_s8  ;;  %v5255_v57 = vpop.f32.mrb[31].mxu1  ;;  %5667 = vpow2.f32 %v4743_v58 }
0x1773   :  { %v5666_v50 = vpop.eup %5665 }
0x1774   :  { %2585 = vrot.lane.b32.xlu1 %v5666_v50, %s5748_s6 }
0x1775   :  { %v5668_v59 = vpop.eup %5667 }
0x1776   :  { %v2579_v60 = vadd.f32 1.0, %v5668_v59 }
0x1778   :  { %5669 = vrcp.f32 %v2579_v60 }
0x1782   :  { %v5670_v14 = vpop.eup %5669 }
0x1783   :  { %v2583_v39 = vmul.f32 %v5670_v14, %v2493_v25 }
0x17dd   :  { %v2777_v61 = vpop.permute.xlu0 %2776 }
0x17de   :  { %v2779_v62 = vadd.f32 %v2777_v61, %v6278_v24 }
0x17e0   :  { %5671 = vtanh.f32 %v2779_v62  ;;  %v4746_v18 = vmul.f32 -1.442695, %v2779_v62 }
0x17e2   :  { %5673 = vpow2.f32 %v4746_v18 }
0x17e6   :  { %v2586_v15 = vpop.permute.xlu1 %2585 }
0x17e7   :  { %v2588_v16 = vmul.f32 %v5670_v14, %v2586_v15 }
0x17e9   :  { %2590 = vrot.lane.b32.xlu1 %v2588_v16, %s5749_s27 }
0x17ea   :  { %v5672_v17 = vpop.eup %5671 }
0x17eb   :  { %2789 = vrot.lane.b32.xlu0 %v5672_v17, %s5748_s6 }
0x17ec   :  { %v5674_v19 = vpop.eup %5673 }
0x17ed   :  { %v2783_v20 = vadd.f32 1.0, %v5674_v19 }
0x17ef   :  { %5675 = vrcp.f32 %v2783_v20 }
0x17f9   :  { %v5676_v22 = vpop.eup %5675 }
0x17fa   :  { %v2787_v26 = vmul.f32 0.0, %v5676_v22 }
0x185b   :  { %v2591_v56 = vpop.permute.xlu1 %2590 }
0x185c   :  { %v6283_v21 = vadd.f32 %v2591_v56, %v2583_v39 }
0x185d   :  { %v2790_v10 = vpop.permute.xlu0 %2789 }
0x185e   :  { %5677 = vtanh.f32 %v6283_v21  ;;  %v2792_v12 = vmul.f32 %v5676_v22, %v2790_v10 }
0x1860   :  { %2794 = vrot.lane.b32.xlu0 %v2792_v12, %s5749_s27 }
0x1868   :  { %v5678_v23 = vpop.eup %5677 }
0x1869   :  { %2596 = vrot.lane.b32.xlu1 %v5678_v23, %s5750_s28 }
0x18d2   :  { %v2795_v27 = vpop.permute.xlu0 %2794 }
0x18d3   :  { %v6288_v5 = vadd.f32 %v2795_v27, %v2787_v26 }
0x18d5   :  { %5679 = vtanh.f32 %v6288_v5 }
0x18db   :  { %v2597_v6 = vpop.permute.xlu1 %2596 }
0x18dc   :  { %v2599_v13 = vmul.f32 %v5670_v14, %v2597_v6 }
0x18de   :  { %2601 = vrot.lane.b32.xlu1 %v2599_v13, %s5751_s29 }
0x18df   :  { %v5680_v32 = vpop.eup %5679 }
0x18e0   :  { %2800 = vrot.lane.b32.xlu0 %v5680_v32, %s5750_s28 }
0x1950   :  { %v2602_v36 = vpop.permute.xlu1 %2601 }
0x1951   :  { %5247 = vmatmul.mubr.msk.f32.vlgmr.msra.gmra.mrb[32].mxu0 %vm157_vm6, %v2602_v36 }
0x1952   :  { %v2801_v30 = vpop.permute.xlu0 %2800  ;;  %5542 = vmatpush3.bf16.msra.mxu0 %v6308_v35  ;;  %5260 = vmatprep.mubr.msk.f32.mxu0 %vm5746_vm0, %v5747_v3 }
0x1953   :  { %v2803_v4 = vmul.f32 %v5676_v22, %v2801_v30  ;;  %5546 = vmatprep.subr.bf16.mxu0 %v5745_v0 }
0x1955   :  { %2805 = vrot.lane.b32.xlu0 %v2803_v4, %s5749_s27 }
0x19c7   :  { %v2806_v38 = vpop.permute.xlu0 %2805 }
0x19c8   :  { %5261 = vmatmul.mubr.msk.f32.vlgmr.msra.gmra.mrb[34].mxu0 %vm157_vm6, %v2806_v38 }
0x19c9   :  { %5548 = vmatpush3.bf16.msra.mxu0 %v6256_v46  ;;  %5274 = vmatprep.mubr.msk.f32.mxu0 %vm5746_vm0, %v5747_v3 }
0x19ca   :  { %5552 = vmatprep.subr.bf16.mxu0 %v5745_v0 }
0x19cc   :  { %5275 = vmatmul.mubr.msk.f32.vlgmr.msra.gmra.mrb[36].mxu0 %vm157_vm6, %v2806_v38 }
0x19cd   :  { %5554 = vmatpush3.bf16.msra.mxu0 %v6305_v34  ;;  %5288 = vmatprep.mubr.msk.f32.mxu0 %vm5746_vm0, %v5747_v3 }
0x19ce   :  { %5558 = vmatprep.subr.bf16.mxu0 %v5745_v0 }
0x19d0   :  { %5289 = vmatmul.mubr.msk.f32.vlgmr.msra.gmra.mrb[38].mxu0 %vm157_vm6, %v2602_v36 }
0x19d1   :  { %5560 = vmatpush3.bf16.msra.mxu0 %v6308_v35  ;;  %5302 = vmatprep.mubr.msk.f32.mxu0 %vm5746_vm0, %v5747_v3 }
0x19d2   :  { %5564 = vmatprep.subr.bf16.mxu0 %v5745_v0 }
0x1a24   :  { %v2671_v25 = vpop.f32.mrb[32].mxu0 }
0x1a25   :  { %v2675_v40 = vadd.f32 %v2671_v25, %v6278_v24  ;;  %v5248_v41 = vpop.f32.mrb[33].mxu0 }
0x1a27   :  { %5681 = vtanh.f32 %v2675_v40  ;;  %v4745_v48 = vmul.f32 -1.442695, %v2675_v40 }
0x1a29   :  { %5683 = vpow2.f32 %v4745_v48 }
0x1a31   :  { %v5682_v42 = vpop.eup %5681 }
0x1a32   :  { %2685 = vrot.lane.b32.xlu0 %v5682_v42, %s5748_s6 }
0x1a33   :  { %v5684_v49 = vpop.eup %5683 }
0x1a34   :  { %v2679_v52 = vadd.f32 1.0, %v5684_v49 }
0x1a36   :  { %5685 = vrcp.f32 %v2679_v52 }
0x1a40   :  { %v5686_v58 = vpop.eup %5685 }
0x1a41   :  { %v2683_v14 = vmul.f32 %v5686_v58, %v6283_v21 }
0x1a9b   :  { %v2875_v53 = vpop.f32.mrb[34].mxu0 }
0x1a9c   :  { %v5262_v54 = vpop.f32.mrb[35].mxu0 }
0x1a9f   :  { %v3030_v55 = vpop.f32.mrb[36].mxu0 }
0x1aa0   :  { %3035 = vrot.lane.b32.xlu1 %v3030_v55, %s5752_s8  ;;  %v5276_v57 = vpop.f32.mrb[37].mxu0 }
0x1aa3   :  { %v6335_v50 = vpop.f32.mrb[38].mxu0 }
0x1aa4   :  { %v2686_v59 = vpop.permute.xlu0 %2685  ;;  %v5290_v60 = vpop.f32.mrb[39].mxu0 }
0x1aa5   :  { %v2688_v24 = vmul.f32 %v5686_v58, %v2686_v59 }
0x1aa7   :  { %2690 = vrot.lane.b32.xlu0 %v2688_v24, %s5749_s27 }
0x1b12   :  { %v3036_v61 = vpop.permute.xlu1 %3035 }
0x1b13   :  { %v3038_v62 = vadd.f32 %v3036_v61, %v6271_v51 }
0x1b15   :  { %5687 = vtanh.f32 %v3038_v62  ;;  %v4752_v19 = vmul.f32 -1.442695, %v3038_v62 }
0x1b19   :  { %v2691_v15 = vpop.permute.xlu0 %2690 }
0x1b1a   :  { %v2693_v16 = vadd.f32 %v2691_v15, %v2683_v14 }
0x1b1c   :  { %5689 = vtanh.f32 %v2693_v16 }
0x1b1d   :  { %5691 = vpow2.f32 %v4752_v19 }
0x1b1f   :  { %v5688_v17 = vpop.eup %5687 }
0x1b20   :  { %3048 = vrot.lane.b32.xlu1 %v5688_v17, %s5748_s6 }
0x1b26   :  { %v5690_v18 = vpop.eup %5689 }
0x1b27   :  { %2696 = vrot.lane.b32.xlu0 %v5690_v18, %s5750_s28  ;;  %v5692_v20 = vpop.eup %5691 }
0x1b28   :  { %v3042_v39 = vadd.f32 1.0, %v5692_v20 }
0x1b2a   :  { %5693 = vrcp.f32 %v3042_v39 }
0x1b34   :  { %v5694_v56 = vpop.eup %5693 }
0x1b35   :  { %v3046_v12 = vmul.f32 %v5694_v56, %v6288_v5  ;;  %v6355_v5 = vld [vmem:[%s6535_s10] ss:$0 sm:$0xff] }
0x1b92   :  { %v3049_v22 = vpop.permute.xlu1 %3048 }
0x1b93   :  { %v3051_v51 = vmul.f32 %v5694_v56, %v3049_v22 }
0x1b95   :  { %3053 = vrot.lane.b32.xlu1 %v3051_v51, %s5749_s27 }
0x1b99   :  { %v2697_v21 = vpop.permute.xlu0 %2696 }
0x1b9a   :  { %v2699_v10 = vmul.f32 %v5686_v58, %v2697_v21 }
0x1b9c   :  { %2880 = vrot.lane.b32.xlu0 %v2699_v10, %s5751_s29 }
0x1c07   :  { %v3054_v23 = vpop.permute.xlu1 %3053 }
0x1c08   :  { %v3056_v26 = vadd.f32 %v3054_v23, %v3046_v12 }
0x1c0a   :  { %5695 = vtanh.f32 %v3056_v26 }
0x1c0e   :  { %v2881_v27 = vpop.permute.xlu0 %2880 }
0x1c0f   :  { %5268 = vmatmul.mubr.msk.f32.vlgmr.msra.gmra.mrb[32].mxu1 %vm157_vm6, %v2881_v27 }
0x1c10   :  { %5551 = vmatpush3.bf16.msra.mxu1 %v6308_v35  ;;  %5281 = vmatprep.mubr.msk.f32.mxu1 %vm5746_vm0, %v5747_v3 }
0x1c11   :  { %5555 = vmatprep.subr.bf16.mxu1 %v5745_v0 }
0x1c14   :  { %v5696_v6 = vpop.eup %5695 }
0x1c15   :  { %3059 = vrot.lane.b32.xlu1 %v5696_v6, %s5750_s28 }
0x1c87   :  { %v3060_v13 = vpop.permute.xlu1 %3059 }
0x1c88   :  { %v3062_v32 = vmul.f32 %v5694_v56, %v3060_v13 }
0x1c8a   :  { %3064 = vrot.lane.b32.xlu1 %v3062_v32, %s5749_s27 }
0x1ce2   :  { %v2950_v33 = vpop.f32.mrb[32].mxu1 }
0x1ce3   :  { %v2951_v31 = vadd.f32 %v2950_v33, %v2875_v53  ;;  %v5269_v45 = vpop.f32.mrb[33].mxu1 }
0x1ce5   :  { %v2960_v37 = vadd.f32 %v6355_v5, %v2951_v31 }
0x1ce7   :  { %4750 = vst.msk [vmem:[%s6536_s11 + $0x1c] sm:$0xf] %vm2962_vm8, %v2960_v37 }
0x1cfc   :  { %v3065_v36 = vpop.permute.xlu1 %3064 }
0x1cfd   :  { %5282 = vmatmul.mubr.msk.f32.vlgmr.msra.gmra.mrb[34].mxu1 %vm157_vm6, %v3065_v36 }
0x1cfe   :  { %5557 = vmatpush3.bf16.msra.mxu1 %v6256_v46  ;;  %5295 = vmatprep.mubr.msk.f32.mxu1 %vm5746_vm0, %v5747_v3 }
0x1cff   :  { %5561 = vmatprep.subr.bf16.mxu1 %v5745_v0 }
0x1d01   :  { %5296 = vmatmul.mubr.msk.f32.vlgmr.msra.gmra.mrb[36].mxu1 %vm157_vm6, %v3065_v36 }
0x1d02   :  { %5563 = vmatpush3.bf16.msra.mxu1 %v6305_v34  ;;  %5309 = vmatprep.mubr.msk.f32.mxu1 %vm5746_vm0, %v5747_v3 }
0x1d03   :  { %5567 = vmatprep.subr.bf16.mxu1 %v5745_v0 }
0x1d05   :  { %5310 = vmatmul.mubr.msk.f32.vlgmr.msra.gmra.mrb[38].mxu1 %vm157_vm6, %v6258_v2 }
0x1d06   :  { %5569 = vmatpush3.bf16.msra.mxu1 %v6308_v35  ;;  %5323 = vmatprep.mubr.msk.f32.mxu1 %vm5746_vm0, %v5747_v3 }
0x1d07   :  { %5573 = vmatprep.subr.bf16.mxu1 %v5745_v0 }
0x1dd0   :  { %v3134_v30 = vpop.f32.mrb[34].mxu1 }
0x1dd1   :  { %v3205_v4 = vadd.f32 %v6335_v50, %v3134_v30  ;;  %v5283_v38 = vpop.f32.mrb[35].mxu1 }
0x1dd3   :  { %v3208_v25 = vadd.f32 %v6355_v5, %v3205_v4 }
0x1dd4   :  { %v3277_v40 = vpop.f32.mrb[36].mxu1 }
0x1dd5   :  { %4755 = vst.msk [vmem:[%s6536_s11 + $0x18] sm:$0xf] %vm2962_vm8, %v3208_v25  ;;  %3282 = vrot.lane.b32.xlu0 %v3277_v40, %s5752_s8  ;;  %v5297_v2 = vpop.f32.mrb[37].mxu1 }
0x1dd8   :  { %v3451_v41 = vpop.f32.mrb[38].mxu1 }
0x1dd9   :  { %v5311_v42 = vpop.f32.mrb[39].mxu1 }
0x1e47   :  { %v3283_v48 = vpop.permute.xlu0 %3282 }
0x1e48   :  { %v3285_v49 = vadd.f32 %v3283_v48, %v6243_v8 }
0x1e4a   :  { %5697 = vtanh.f32 %v3285_v49  ;;  %v4757_v53 = vmul.f32 -1.442695, %v3285_v49 }
0x1e4c   :  { %5699 = vpow2.f32 %v4757_v53 }
0x1e54   :  { %v5698_v52 = vpop.eup %5697 }
0x1e55   :  { %3295 = vrot.lane.b32.xlu1 %v5698_v52, %s5748_s6 }
0x1e56   :  { %v5700_v54 = vpop.eup %5699 }
0x1e57   :  { %v3289_v55 = vadd.f32 1.0, %v5700_v54 }
0x1e59   :  { %5701 = vrcp.f32 %v3289_v55 }
0x1e63   :  { %v5702_v57 = vpop.eup %5701 }
0x1e64   :  { %v3293_v59 = vmul.f32 %v5702_v57, %v3056_v26 }
0x1ec7   :  { %v3296_v50 = vpop.permute.xlu1 %3295 }
0x1ec8   :  { %v3298_v58 = vmul.f32 %v5702_v57, %v3296_v50 }
0x1eca   :  { %3300 = vrot.lane.b32.xlu0 %v3298_v58, %s5749_s27 }
0x1f3c   :  { %v3301_v60 = vpop.permute.xlu0 %3300 }
0x1f3d   :  { %v3303_v24 = vadd.f32 %v3301_v60, %v3293_v59 }
0x1f3f   :  { %5703 = vtanh.f32 %v3303_v24 }
0x1f49   :  { %v5704_v61 = vpop.eup %5703 }
0x1f4a   :  { %3306 = vrot.lane.b32.xlu1 %v5704_v61, %s5750_s28 }
0x1fbc   :  { %v3307_v8 = vpop.permute.xlu1 %3306 }
0x1fbd   :  { %v3309_v62 = vmul.f32 %v5702_v57, %v3307_v8 }
0x1fbf   :  { %3311 = vrot.lane.b32.xlu0 %v3309_v62, %s5749_s27 }
0x2031   :  { %v3312_v14 = vpop.permute.xlu0 %3311 }
0x2032   :  { %5303 = vmatmul.mubr.msk.f32.vlgmr.msra.gmra.mrb[40].mxu0 %vm157_vm6, %v3312_v14 }
0x2033   :  { %5566 = vmatpush3.bf16.msra.mxu0 %v6256_v46  ;;  %5316 = vmatprep.mubr.msk.f32.mxu0 %vm5746_vm0, %v5747_v3 }
0x2034   :  { %5570 = vmatprep.subr.bf16.mxu0 %v5745_v0 }
0x2036   :  { %5317 = vmatmul.mubr.msk.f32.vlgmr.msra.gmra.mrb[42].mxu0 %vm157_vm6, %v3312_v14 }
0x2037   :  { %5572 = vmatpush3.bf16.msra.mxu0 %v6305_v34  ;;  %5330 = vmatprep.mubr.msk.f32.mxu0 %vm5746_vm0, %v5747_v3 }
0x2038   :  { %5576 = vmatprep.subr.bf16.mxu0 %v5745_v0 }
0x203a   :  { %5331 = vmatmul.mubr.msk.f32.vlgmr.msra.gmra.mrb[44].mxu0 %vm157_vm6, %v6233_v7 }
0x203b   :  { %5578 = vmatpush3.bf16.msra.mxu0 %v6308_v35  ;;  %5344 = vmatprep.mubr.msk.f32.mxu0 %vm5746_vm0, %v5747_v3 }
0x203c   :  { %5582 = vmatprep.subr.bf16.mxu0 %v5745_v0 }
0x2105   :  { %v3381_v15 = vpop.f32.mrb[40].mxu0 }
0x2106   :  { %v3452_v16 = vadd.f32 %v3451_v41, %v3381_v15  ;;  %v5304_v17 = vpop.f32.mrb[41].mxu0 }
0x2108   :  { %v3455_v18 = vadd.f32 %v6355_v5, %v3452_v16 }
0x2109   :  { %v3524_v19 = vpop.f32.mrb[42].mxu0 }
0x210a   :  { %4760 = vst.msk [vmem:[%s6536_s11 + $0x14] sm:$0xf] %vm2962_vm8, %v3455_v18  ;;  %3529 = vrot.lane.b32.xlu1 %v3524_v19, %s5752_s8  ;;  %v5318_v7 = vpop.f32.mrb[43].mxu0 }
0x210d   :  { %v3698_v20 = vpop.f32.mrb[44].mxu0 }
0x210e   :  { %v5332_v39 = vpop.f32.mrb[45].mxu0 }
0x217c   :  { %v3530_v56 = vpop.permute.xlu1 %3529 }
0x217d   :  { %v3532_v22 = vadd.f32 %v3530_v56, %v6226_v11 }
0x217f   :  { %5705 = vtanh.f32 %v3532_v22  ;;  %v4762_v21 = vmul.f32 -1.442695, %v3532_v22 }
0x2181   :  { %5707 = vpow2.f32 %v4762_v21 }
0x2189   :  { %v5706_v51 = vpop.eup %5705 }
0x218a   :  { %3542 = vrot.lane.b32.xlu0 %v5706_v51, %s5748_s6 }
0x218b   :  { %v5708_v10 = vpop.eup %5707 }
0x218c   :  { %v3536_v12 = vadd.f32 1.0, %v5708_v10 }
0x218e   :  { %5709 = vrcp.f32 %v3536_v12 }
0x2198   :  { %v5710_v23 = vpop.eup %5709 }
0x2199   :  { %v3540_v6 = vmul.f32 %v5710_v23, %v3303_v24 }
0x21fc   :  { %v3543_v26 = vpop.permute.xlu0 %3542 }
0x21fd   :  { %v3545_v27 = vmul.f32 %v5710_v23, %v3543_v26 }
0x21ff   :  { %3547 = vrot.lane.b32.xlu1 %v3545_v27, %s5749_s27 }
0x2271   :  { %v3548_v13 = vpop.permute.xlu1 %3547 }
0x2272   :  { %v3550_v32 = vadd.f32 %v3548_v13, %v3540_v6 }
0x2274   :  { %5711 = vtanh.f32 %v3550_v32 }
0x227e   :  { %v5712_v33 = vpop.eup %5711 }
0x227f   :  { %3553 = vrot.lane.b32.xlu0 %v5712_v33, %s5750_s28 }
0x22f1   :  { %v3554_v11 = vpop.permute.xlu0 %3553 }
0x22f2   :  { %v3556_v31 = vmul.f32 %v5710_v23, %v3554_v11 }
0x22f4   :  { %3558 = vrot.lane.b32.xlu1 %v3556_v31, %s5749_s27 }
0x2366   :  { %v3559_v45 = vpop.permute.xlu1 %3558 }
0x2367   :  { %5324 = vmatmul.mubr.msk.f32.vlgmr.msra.gmra.mrb[40].mxu1 %vm157_vm6, %v3559_v45 }
0x2368   :  { %5575 = vmatpush3.bf16.msra.mxu1 %v6256_v46  ;;  %5337 = vmatprep.mubr.msk.f32.mxu1 %vm5746_vm0, %v5747_v3 }
0x2369   :  { %5579 = vmatprep.subr.bf16.mxu1 %v5745_v0 }
0x236b   :  { %5338 = vmatmul.mubr.msk.f32.vlgmr.msra.gmra.mrb[42].mxu1 %vm157_vm6, %v3559_v45 }
0x236c   :  { %5581 = vmatpush3.bf16.msra.mxu1 %v6305_v34  ;;  %5351 = vmatprep.mubr.msk.f32.mxu1 %vm5746_vm0, %v5747_v3 }
0x236d   :  { %5585 = vmatprep.subr.bf16.mxu1 %v5745_v0 }
0x236f   :  { %5352 = vmatmul.mubr.msk.f32.vlgmr.msra.gmra.mrb[44].mxu1 %vm157_vm6, %v6216_v63 }
0x2370   :  { %5587 = vmatpush3.bf16.msra.mxu1 %v6308_v35  ;;  %5365 = vmatprep.mubr.msk.f32.mxu1 %vm5746_vm0, %v5747_v3 }
0x2371   :  { %5591 = vmatprep.subr.bf16.mxu1 %v5745_v0 }
0x243a   :  { %v3628_v37 = vpop.f32.mrb[40].mxu1 }
0x243b   :  { %v3699_v36 = vadd.f32 %v3698_v20, %v3628_v37  ;;  %v5325_v30 = vpop.f32.mrb[41].mxu1 }
0x243d   :  { %v3702_v4 = vadd.f32 %v6355_v5, %v3699_v36 }
0x243e   :  { %v3771_v38 = vpop.f32.mrb[42].mxu1 }
0x243f   :  { %4765 = vst.msk [vmem:[%s6536_s11 + $0x10] sm:$0xf] %vm2962_vm8, %v3702_v4  ;;  %3776 = vrot.lane.b32.xlu0 %v3771_v38, %s5752_s8  ;;  %v5339_v63 = vpop.f32.mrb[43].mxu1 }
0x2442   :  { %v3945_v25 = vpop.f32.mrb[44].mxu1 }
0x2443   :  { %v5353_v40 = vpop.f32.mrb[45].mxu1 }
0x24b1   :  { %v3777_v2 = vpop.permute.xlu0 %3776 }
0x24b2   :  { %v3779_v41 = vadd.f32 %v3777_v2, %v6209_v47 }
0x24b4   :  { %5713 = vtanh.f32 %v3779_v41  ;;  %v4767_v48 = vmul.f32 -1.442695, %v3779_v41 }
0x24b6   :  { %5715 = vpow2.f32 %v4767_v48 }
0x24be   :  { %v5714_v42 = vpop.eup %5713 }
0x24bf   :  { %3789 = vrot.lane.b32.xlu1 %v5714_v42, %s5748_s6 }
0x24c0   :  { %v5716_v49 = vpop.eup %5715 }
0x24c1   :  { %v3783_v52 = vadd.f32 1.0, %v5716_v49 }
0x24c3   :  { %5717 = vrcp.f32 %v3783_v52 }
0x24cd   :  { %v5718_v53 = vpop.eup %5717 }
0x24ce   :  { %v3787_v57 = vmul.f32 %v5718_v53, %v3550_v32 }
0x2531   :  { %v3790_v54 = vpop.permute.xlu1 %3789 }
0x2532   :  { %v3792_v55 = vmul.f32 %v5718_v53, %v3790_v54 }
0x2534   :  { %3794 = vrot.lane.b32.xlu0 %v3792_v55, %s5749_s27 }
0x25a6   :  { %v3795_v50 = vpop.permute.xlu0 %3794 }
0x25a7   :  { %v3797_v58 = vadd.f32 %v3795_v50, %v3787_v57 }
0x25a9   :  { %5719 = vtanh.f32 %v3797_v58 }
0x25b3   :  { %v5720_v59 = vpop.eup %5719 }
0x25b4   :  { %3800 = vrot.lane.b32.xlu1 %v5720_v59, %s5750_s28 }
0x2626   :  { %v3801_v47 = vpop.permute.xlu1 %3800 }
0x2627   :  { %v3803_v60 = vmul.f32 %v5718_v53, %v3801_v47 }
0x2629   :  { %3805 = vrot.lane.b32.xlu0 %v3803_v60, %s5749_s27 }
0x269b   :  { %v3806_v24 = vpop.permute.xlu0 %3805 }
0x269c   :  { %5345 = vmatmul.mubr.msk.f32.vlgmr.msra.gmra.mrb[46].mxu0 %vm157_vm6, %v3806_v24 }
0x269d   :  { %5584 = vmatpush3.bf16.msra.mxu0 %v6256_v46  ;;  %5358 = vmatprep.mubr.msk.f32.mxu0 %vm5746_vm0, %v5747_v3 }
0x269e   :  { %5588 = vmatprep.subr.bf16.mxu0 %v5745_v0 }
0x26a0   :  { %5359 = vmatmul.mubr.msk.f32.vlgmr.msra.gmra.mrb[48].mxu0 %vm157_vm6, %v3806_v24 }
0x26a1   :  { %5590 = vmatpush3.bf16.msra.mxu0 %v6305_v34  ;;  %5372 = vmatprep.mubr.msk.f32.mxu0 %vm5746_vm0, %v5747_v3 }
0x26a2   :  { %5594 = vmatprep.subr.bf16.mxu0 %v5745_v0 }
0x26a4   :  { %5373 = vmatmul.mubr.msk.f32.vlgmr.msra.gmra.mrb[50].mxu0 %vm157_vm6, %v6199_v44 }
0x26a5   :  { %5596 = vmatpush3.bf16.msra.mxu0 %v6308_v35  ;;  %5386 = vmatprep.mubr.msk.f32.mxu0 %vm5746_vm0, %v5747_v3 }
0x26a6   :  { %5600 = vmatprep.subr.bf16.mxu0 %v5745_v0 }
0x276f   :  { %v3875_v61 = vpop.f32.mrb[46].mxu0 }
0x2770   :  { %v3946_v8 = vadd.f32 %v3945_v25, %v3875_v61  ;;  %v5346_v62 = vpop.f32.mrb[47].mxu0 }
0x2772   :  { %v3949_v14 = vadd.f32 %v6355_v5, %v3946_v8 }
0x2773   :  { %v4018_v15 = vpop.f32.mrb[48].mxu0 }
0x2774   :  { %4770 = vst.msk [vmem:[%s6536_s11 + $0xc] sm:$0xf] %vm2962_vm8, %v3949_v14  ;;  %4023 = vrot.lane.b32.xlu1 %v4018_v15, %s5752_s8  ;;  %v5360_v44 = vpop.f32.mrb[49].mxu0 }
0x2777   :  { %v4192_v16 = vpop.f32.mrb[50].mxu0 }
0x2778   :  { %v5374_v17 = vpop.f32.mrb[51].mxu0 }
0x27e6   :  { %v4024_v18 = vpop.permute.xlu1 %4023 }
0x27e7   :  { %v4026_v19 = vadd.f32 %v4024_v18, %v6192_v29 }
0x27e9   :  { %5721 = vtanh.f32 %v4026_v19  ;;  %v4772_v20 = vmul.f32 -1.442695, %v4026_v19 }
0x27eb   :  { %5723 = vpow2.f32 %v4772_v20 }
0x27f3   :  { %v5722_v7 = vpop.eup %5721 }
0x27f4   :  { %4036 = vrot.lane.b32.xlu0 %v5722_v7, %s5748_s6 }
0x27f5   :  { %v5724_v39 = vpop.eup %5723 }
0x27f6   :  { %v4030_v56 = vadd.f32 1.0, %v5724_v39 }
0x27f8   :  { %5725 = vrcp.f32 %v4030_v56 }
0x2802   :  { %v5726_v22 = vpop.eup %5725 }
0x2803   :  { %v4034_v10 = vmul.f32 %v5726_v22, %v3797_v58 }
0x2866   :  { %v4037_v51 = vpop.permute.xlu0 %4036 }
0x2867   :  { %v4039_v21 = vmul.f32 %v5726_v22, %v4037_v51 }
0x2869   :  { %4041 = vrot.lane.b32.xlu1 %v4039_v21, %s5749_s27 }
0x28db   :  { %v4042_v12 = vpop.permute.xlu1 %4041 }
0x28dc   :  { %v4044_v23 = vadd.f32 %v4042_v12, %v4034_v10 }
0x28de   :  { %5727 = vtanh.f32 %v4044_v23 }
0x28e8   :  { %v5728_v26 = vpop.eup %5727 }
0x28e9   :  { %4047 = vrot.lane.b32.xlu0 %v5728_v26, %s5750_s28 }
0x295b   :  { %v4048_v29 = vpop.permute.xlu0 %4047 }
0x295c   :  { %v4050_v27 = vmul.f32 %v5726_v22, %v4048_v29 }
0x295e   :  { %4052 = vrot.lane.b32.xlu1 %v4050_v27, %s5749_s27 }
0x29d0   :  { %v4053_v6 = vpop.permute.xlu1 %4052 }
0x29d1   :  { %5366 = vmatmul.mubr.msk.f32.vlgmr.msra.gmra.mrb[46].mxu1 %vm157_vm6, %v4053_v6 }
0x29d2   :  { %5593 = vmatpush3.bf16.msra.mxu1 %v6256_v46  ;;  %5379 = vmatprep.mubr.msk.f32.mxu1 %vm5746_vm0, %v5747_v3 }
0x29d3   :  { %5597 = vmatprep.subr.bf16.mxu1 %v5745_v0 }
0x29d5   :  { %5380 = vmatmul.mubr.msk.f32.vlgmr.msra.gmra.mrb[48].mxu1 %vm157_vm6, %v4053_v6 }
0x29d6   :  { %5599 = vmatpush3.bf16.msra.mxu1 %v6305_v34  ;;  %5393 = vmatprep.mubr.msk.f32.mxu1 %vm5746_vm0, %v5747_v3 }
0x29d7   :  { %5603 = vmatprep.subr.bf16.mxu1 %v5745_v0 }
0x29d9   :  { %5394 = vmatmul.mubr.msk.f32.vlgmr.msra.gmra.mrb[50].mxu1 %vm157_vm6, %v6182_v28 }
0x29da   :  { %5605 = vmatpush3.bf16.msra.mxu1 %v6308_v35  ;;  %5407 = vmatprep.mubr.msk.f32.mxu1 %vm5746_vm0, %v5747_v3 }
0x2aa4   :  { %v4122_v13 = vpop.f32.mrb[46].mxu1 }
0x2aa5   :  { %v4193_v32 = vadd.f32 %v4192_v16, %v4122_v13  ;;  %v5367_v33 = vpop.f32.mrb[47].mxu1 }
0x2aa7   :  { %v4196_v11 = vadd.f32 %v6355_v5, %v4193_v32 }
0x2aa8   :  { %v4265_v31 = vpop.f32.mrb[48].mxu1 }
0x2aa9   :  { %4775 = vst.msk [vmem:[%s6536_s11 + $0x8] sm:$0xf] %vm2962_vm8, %v4196_v11  ;;  %4270 = vrot.lane.b32.xlu0 %v4265_v31, %s5752_s8  ;;  %v5381_v45 = vpop.f32.mrb[49].mxu1 }
0x2aac   :  { %v4439_v28 = vpop.f32.mrb[50].mxu1 }
0x2aad   :  { %v5395_v37 = vpop.f32.mrb[51].mxu1 }
0x2b1b   :  { %v4271_v35 = vpop.permute.xlu0 %4270 }
0x2b1c   :  { %v4273_v36 = vadd.f32 %v4271_v35, %v6175_v9 }
0x2b1e   :  { %5729 = vtanh.f32 %v4273_v36  ;;  %v4777_v4 = vmul.f32 -1.442695, %v4273_v36 }
0x2b20   :  { %5731 = vpow2.f32 %v4777_v4 }
0x2b28   :  { %v5730_v30 = vpop.eup %5729 }
0x2b29   :  { %4283 = vrot.lane.b32.xlu1 %v5730_v30, %s5748_s6 }
0x2b2a   :  { %v5732_v38 = vpop.eup %5731 }
0x2b2b   :  { %v4277_v63 = vadd.f32 1.0, %v5732_v38 }
0x2b2d   :  { %5733 = vrcp.f32 %v4277_v63 }
0x2b37   :  { %v5734_v25 = vpop.eup %5733 }
0x2b38   :  { %v4281_v41 = vmul.f32 %v5734_v25, %v4044_v23 }
0x2b9b   :  { %v4284_v40 = vpop.permute.xlu1 %4283 }
0x2b9c   :  { %v4286_v2 = vmul.f32 %v5734_v25, %v4284_v40 }
0x2b9e   :  { %4288 = vrot.lane.b32.xlu0 %v4286_v2, %s5749_s27 }
0x2c10   :  { %v4289_v42 = vpop.permute.xlu0 %4288 }
0x2c11   :  { %v4291_v48 = vadd.f32 %v4289_v42, %v4281_v41 }
0x2c13   :  { %5735 = vtanh.f32 %v4291_v48 }
0x2c1d   :  { %v5736_v49 = vpop.eup %5735 }
0x2c1e   :  { %4294 = vrot.lane.b32.xlu1 %v5736_v49, %s5750_s28 }
0x2c90   :  { %v4295_v9 = vpop.permute.xlu1 %4294 }
0x2c91   :  { %v4297_v52 = vmul.f32 %v5734_v25, %v4295_v9 }
0x2c93   :  { %4299 = vrot.lane.b32.xlu0 %v4297_v52, %s5749_s27 }
0x2d05   :  { %v4300_v53 = vpop.permute.xlu0 %4299 }
0x2d06   :  { %5387 = vmatmul.mubr.msk.f32.vlgmr.msra.gmra.mrb[52].mxu0 %vm157_vm6, %v4300_v53 }
0x2d07   :  { %5602 = vmatpush3.bf16.msra.mxu0 %v6256_v46  ;;  %5400 = vmatprep.mubr.msk.f32.mxu0 %vm5746_vm0, %v5747_v3 }
0x2d08   :  { %5606 = vmatprep.subr.bf16.mxu0 %v5745_v0 }
0x2d0a   :  { %5401 = vmatmul.mubr.msk.f32.vlgmr.msra.gmra.mrb[54].mxu0 %vm157_vm6, %v4300_v53 }
0x2d0b   :  { %5608 = vmatpush3.bf16.msra.mxu0 %v6305_v34  ;;  %5414 = vmatprep.mubr.msk.f32.mxu0 %vm5746_vm0, %v5747_v3 }
0x2d0e   :  { %5415 = vmatmul.mubr.msk.f32.vlgmr.msra.gmra.mrb[56].mxu0 %vm157_vm6, %v6165_v1 }
0x2dd9   :  { %v4369_v54 = vpop.f32.mrb[52].mxu0 }
0x2dda   :  { %v4440_v55 = vadd.f32 %v4439_v28, %v4369_v54  ;;  %v5388_v57 = vpop.f32.mrb[53].mxu0 }
0x2ddc   :  { %v4443_v46 = vadd.f32 %v6355_v5, %v4440_v55 }
0x2ddd   :  { %v4512_v50 = vpop.f32.mrb[54].mxu0 }
0x2dde   :  { %4780 = vst.msk [vmem:[%s6536_s11 + $0x4] sm:$0xf] %vm2962_vm8, %v4443_v46  ;;  %4517 = vrot.lane.b32.xlu1 %v4512_v50, %s5752_s8  ;;  %v5402_v0 = vpop.f32.mrb[55].mxu0 }
0x2de1   :  { %v4686_v34 = vpop.f32.mrb[56].mxu0 }
0x2de2   :  { %v5416_v58 = vpop.f32.mrb[57].mxu0 }
0x2e50   :  { %v4518_v3 = vpop.permute.xlu1 %4517 }
0x2e51   :  { %v4520_v59 = vadd.f32 %v4518_v3, %v6151_v43 }
0x2e53   :  { %5737 = vtanh.f32 %v4520_v59  ;;  %v4782_v47 = vmul.f32 -1.442695, %v4520_v59 }
0x2e55   :  { %5739 = vpow2.f32 %v4782_v47 }
0x2e5d   :  { %v5738_v1 = vpop.eup %5737 }
0x2e5e   :  { %4530 = vrot.lane.b32.xlu0 %v5738_v1, %s5748_s6 }
0x2e5f   :  { %v5740_v60 = vpop.eup %5739 }
0x2e60   :  { %v4524_v24 = vadd.f32 1.0, %v5740_v60 }
0x2e62   :  { %5741 = vrcp.f32 %v4524_v24 }
0x2e6c   :  { %v5742_v61 = vpop.eup %5741 }
0x2e6d   :  { %v4528_v14 = vmul.f32 %v5742_v61, %v4291_v48 }
0x2ed0   :  { %v4531_v8 = vpop.permute.xlu0 %4530 }
0x2ed1   :  { %v4533_v62 = vmul.f32 %v5742_v61, %v4531_v8 }
0x2ed3   :  { %4535 = vrot.lane.b32.xlu1 %v4533_v62, %s5749_s27 }
0x2f45   :  { %v4536_v15 = vpop.permute.xlu1 %4535 }
0x2f46   :  { %v4538_v44 = vadd.f32 %v4536_v15, %v4528_v14 }
0x2f48   :  { %5743 = vtanh.f32 %v4538_v44 }
0x2f52   :  { %v5744_v16 = vpop.eup %5743 }
0x2f53   :  { %4541 = vrot.lane.b32.xlu0 %v5744_v16, %s5750_s28 }
0x2fc5   :  { %v4542_v43 = vpop.permute.xlu0 %4541 }
0x2fc6   :  { %v4544_v17 = vmul.f32 %v5742_v61, %v4542_v43 }
0x2fc8   :  { %4546 = vrot.lane.b32.xlu1 %v4544_v17, %s5749_s27 }
0x303a   :  { %v4547_v18 = vpop.permute.xlu1 %4546 }
0x303b   :  { %5408 = vmatmul.mubr.msk.f32.vlgmr.msra.gmra.mrb[52].mxu1 %vm157_vm6, %v4547_v18 }
0x310e   :  { %v4616_v19 = vpop.f32.mrb[52].mxu1 }
0x310f   :  { %v4687_v7 = vadd.f32 %v4686_v34, %v4616_v19  ;;  %v5409_v20 = vpop.f32.mrb[53].mxu1 }
0x3111   :  { %v4690_v39 = vadd.f32 %v6355_v5, %v4687_v7 }
0x3113   :  { %4691 = vst.msk [vmem:[%s6536_s11] sm:$0xf] %vm2962_vm8, %v4690_v39 }

</bundles_post_ra>
